<compile_context>
chip_gen: v6e
topology: v6e:2x2x1
jax: 0.10.0
libtpu: 0.0.40
codegen_flags: <defaults>
</compile_context>

<pallas_src>
import functools
import math

import jax
import jax.numpy as jnp
from jax.experimental import pallas as pl
from jax.experimental.pallas import tpu as pltpu

F32 = jnp.float32
BF16 = jnp.bfloat16
LN_EPS = 1e-12
NEG_INF = -1e9
VMEM_LIMIT = 32 * 1024 * 1024   # explicit scoped-VMEM budget (fits v5e/v6e/v7x)
ROW_TILE = 128                  # activation-row (M) tile
VOCAB_TILE = 256                # vocab (N) tile for the tied-embedding LM head


# --------------------------------------------------------------------------
# small helpers
# --------------------------------------------------------------------------
def _pick_tile(dim, target, align):
    """Largest divisor of `dim` that is <= target and a multiple of `align`;
    falls back to the full dim (always a legal block)."""
    if dim <= target:
        return dim
    t = (target // align) * align
    while t >= align:
        if dim % t == 0:
            return t
        t -= align
    return dim


def _cparams(n_axes):
    return pltpu.CompilerParams(
        dimension_semantics=("parallel",) * n_axes,   # shards across TCs on v7x
        vmem_limit_bytes=VMEM_LIMIT)


def _gelu(x):
    # TODO(synk): tanh-approx GELU; HF uses exact erf-GELU (tiny numeric diff).
    c = math.sqrt(2.0 / math.pi)
    return 0.5 * x * (1.0 + jnp.tanh(c * (x + 0.044715 * x * x * x)))


def _layernorm(x, g, b, eps=LN_EPS):
    mu = jnp.mean(x, axis=-1, keepdims=True)
    xc = x - mu
    var = jnp.mean(xc * xc, axis=-1, keepdims=True)
    return xc * jax.lax.rsqrt(var + eps) * g + b


# --------------------------------------------------------------------------
# Pallas kernels (fused per-layer blocks + heads)
# --------------------------------------------------------------------------
def _qkv_kernel(x_ref, w_ref, b_ref, o_ref):
    """Fused Q|K|V projection: o = x @ wqkv + bqkv  (x:(tm,H), wqkv:(H,3H))."""
    y = jnp.dot(x_ref[...], w_ref[...], preferred_element_type=jnp.float32)
    o_ref[...] = (y + b_ref[...]).astype(o_ref.dtype)


def _attn_block_kernel(q_ref, k_ref, v_ref, bias_ref, res_ref, wo_ref, bo_ref,
                       g_ref, beta_ref, o_ref, *, num_heads, head_dim):
    """All heads of one batch: softmax(q k^T + bias) v, per-head output
    projection (accumulated), fused residual add + LayerNorm.  Output is a
    lane-dense (1, S, H) block."""
    seq = q_ref.shape[2]
    hid = wo_ref.shape[1]
    bias = bias_ref[0]                                     # (S, S) f32 additive mask
    acc = jnp.zeros((seq, hid), jnp.float32)
    for h in range(num_heads):                             # static unroll
        q = q_ref[0, h]                                    # (S, Dh) bf16 (scale pre-folded)
        k = k_ref[0, h]
        v = v_ref[0, h]
        s = jax.lax.dot_general(q, k, (((1,), (1,)), ((), ())),
                                preferred_element_type=jnp.float32)      # (S, S)
        s = s + bias                                       # mask stays in f32 path
        m = jnp.max(s, axis=-1, keepdims=True)
        p = jnp.exp(s - m)
        denom = jnp.sum(p, axis=-1, keepdims=True)
        p = p * pl.reciprocal(denom, approx=True)          # EUP slot, frees VALU
        ctx = jnp.dot(p.astype(v.dtype), v, preferred_element_type=jnp.float32)
        # per-head slice of the output projection -> avoids lane-dim concat
        wo_h = wo_ref[h * head_dim:(h + 1) * head_dim, :]  # (Dh, H)
        acc = acc + jnp.dot(ctx.astype(wo_h.dtype), wo_h,
                            preferred_element_type=jnp.float32)
    y = acc + bo_ref[...] + res_ref[0].astype(jnp.float32)  # fused residual
    out = _layernorm(y, g_ref[...], beta_ref[...])
    o_ref[...] = out[None, :, :].astype(o_ref.dtype)


def _ffn_kernel(x_ref, w1_ref, b1_ref, w2_ref, b2_ref, g_ref, beta_ref, o_ref):
    """Fused FFN: dense -> GELU -> dense -> +residual -> LayerNorm."""
    x = x_ref[...]
    h = jnp.dot(x, w1_ref[...], preferred_element_type=jnp.float32) + b1_ref[...]
    h = _gelu(h)
    y = jnp.dot(h.astype(x.dtype), w2_ref[...],
                preferred_element_type=jnp.float32) + b2_ref[...]
    y = y + x.astype(jnp.float32)                          # fused residual
    o_ref[...] = _layernorm(y, g_ref[...], beta_ref[...]).astype(o_ref.dtype)


def _layernorm_kernel(x_ref, g_ref, b_ref, o_ref):
    x = x_ref[...].astype(jnp.float32)
    o_ref[...] = _layernorm(x, g_ref[...], b_ref[...]).astype(o_ref.dtype)


def _lm_head_kernel(x_ref, emb_ref, b_ref, o_ref):
    """logits = x @ word_emb^T + b, consuming the untransposed (V, H) embedding
    via contracting dims ((1,),(1,)) — no host-side transpose materialized."""
    logits = jax.lax.dot_general(x_ref[...], emb_ref[...],
                                 (((1,), (1,)), ((), ())),
                                 preferred_element_type=jnp.float32)
    o_ref[...] = logits + b_ref[...]


def _detection_kernel(x_ref, w_ref, b_ref, o_ref):
    """nn.Linear(H, 1): weight kept in its PyTorch (1, H) layout -> VPU+XLU
    reduction instead of a width-1 matmul."""
    x = x_ref[...].astype(jnp.float32)
    w = w_ref[...].astype(jnp.float32)                     # (1, H)
    o_ref[...] = jnp.sum(x * w, axis=-1, keepdims=True) + b_ref[...]


# --------------------------------------------------------------------------
# pallas_call wrappers (row/vocab tiling, parallel grids)
# --------------------------------------------------------------------------
def qkv_projection(x, w, b):
    M, H = x.shape
    N = w.shape[1]
    tm = _pick_tile(M, ROW_TILE, 8)
    return pl.pallas_call(
        _qkv_kernel,
        grid=(M // tm,),
        in_specs=[pl.BlockSpec((tm, H), lambda i: (i, 0)),
                  pl.BlockSpec((H, N), lambda i: (0, 0)),
                  pl.BlockSpec((1, N), lambda i: (0, 0))],
        out_specs=pl.BlockSpec((tm, N), lambda i: (i, 0)),
        out_shape=jax.ShapeDtypeStruct((M, N), BF16),
        compiler_params=_cparams(1),
    )(x, w, b.reshape(1, N))


def attention_block(q, k, v, bias, resid, wo, bo, gamma, beta):
    B, NH, S, Dh = q.shape
    H = NH * Dh
    qkv_spec = pl.BlockSpec((1, NH, S, Dh), lambda b: (b, 0, 0, 0))
    row_spec = pl.BlockSpec((1, H), lambda b: (0, 0))
    return pl.pallas_call(
        functools.partial(_attn_block_kernel, num_heads=NH, head_dim=Dh),
        grid=(B,),
        in_specs=[qkv_spec, qkv_spec, qkv_spec,
                  pl.BlockSpec((1, S, S), lambda b: (b, 0, 0)),
                  pl.BlockSpec((1, S, H), lambda b: (b, 0, 0)),
                  pl.BlockSpec((H, H), lambda b: (0, 0)),
                  row_spec, row_spec, row_spec],
        out_specs=pl.BlockSpec((1, S, H), lambda b: (b, 0, 0)),
        out_shape=jax.ShapeDtypeStruct((B, S, H), BF16),
        compiler_params=_cparams(1),
    )(q, k, v, bias, resid, wo,
      bo.reshape(1, H), gamma.reshape(1, H), beta.reshape(1, H))


def ffn_block(x, w1, b1, w2, b2, gamma, beta):
    M, H = x.shape
    I = w1.shape[1]
    tm = _pick_tile(M, ROW_TILE, 8)
    row_spec = pl.BlockSpec((1, H), lambda i: (0, 0))
    return pl.pallas_call(
        _ffn_kernel,
        grid=(M // tm,),
        in_specs=[pl.BlockSpec((tm, H), lambda i: (i, 0)),
                  pl.BlockSpec((H, I), lambda i: (0, 0)),
                  pl.BlockSpec((1, I), lambda i: (0, 0)),
                  pl.BlockSpec((I, H), lambda i: (0, 0)),
                  row_spec, row_spec, row_spec],
        out_specs=pl.BlockSpec((tm, H), lambda i: (i, 0)),
        out_shape=jax.ShapeDtypeStruct((M, H), BF16),
        compiler_params=_cparams(1),
    )(x, w1, b1.reshape(1, I), w2, b2.reshape(1, H),
      gamma.reshape(1, H), beta.reshape(1, H))


def layernorm(x, gamma, beta):
    M, H = x.shape
    tm = _pick_tile(M, ROW_TILE, 8)
    row_spec = pl.BlockSpec((1, H), lambda i: (0, 0))
    return pl.pallas_call(
        _layernorm_kernel,
        grid=(M // tm,),
        in_specs=[pl.BlockSpec((tm, H), lambda i: (i, 0)), row_spec, row_spec],
        out_specs=pl.BlockSpec((tm, H), lambda i: (i, 0)),
        out_shape=jax.ShapeDtypeStruct((M, H), BF16),
        compiler_params=_cparams(1),
    )(x, gamma.reshape(1, H), beta.reshape(1, H))


def lm_head(x, word_emb, bias):
    M, H = x.shape
    V = word_emb.shape[0]
    tm = _pick_tile(M, ROW_TILE, 8)
    tn = _pick_tile(V, VOCAB_TILE, 128)
    return pl.pallas_call(
        _lm_head_kernel,
        grid=(M // tm, V // tn),
        in_specs=[pl.BlockSpec((tm, H), lambda i, j: (i, 0)),
                  pl.BlockSpec((tn, H), lambda i, j: (j, 0)),
                  pl.BlockSpec((1, tn), lambda i, j: (0, j))],
        out_specs=pl.BlockSpec((tm, tn), lambda i, j: (i, j)),
        out_shape=jax.ShapeDtypeStruct((M, V), F32),
        compiler_params=_cparams(2),
    )(x, word_emb, bias.reshape(1, V))


def detection_head(x, w, b):
    M, H = x.shape
    tm = _pick_tile(M, ROW_TILE, 8)
    return pl.pallas_call(
        _detection_kernel,
        grid=(M // tm,),
        in_specs=[pl.BlockSpec((tm, H), lambda i: (i, 0)),
                  pl.BlockSpec((1, H), lambda i: (0, 0)),
                  pl.BlockSpec((1, 1), lambda i: (0, 0))],
        out_specs=pl.BlockSpec((tm, 1), lambda i: (i, 0)),
        out_shape=jax.ShapeDtypeStruct((M, 1), F32),
        compiler_params=_cparams(1),
    )(x, w, b.reshape(1, 1))


# --------------------------------------------------------------------------
# Parameters (deterministic synthetic init; weights bf16, biases/LN f32)
# --------------------------------------------------------------------------
def init_params(key, cfg):
    H, V, I = cfg["hidden"], cfg["vocab"], cfg["intermediate"]
    Dh = cfg["head_dim"]
    scale = 1.0 / math.sqrt(Dh)

    def nxt():
        nonlocal key
        key, sub = jax.random.split(key)
        return sub

    w = lambda shape: (0.02 * jax.random.normal(nxt(), shape, F32)).astype(BF16)
    bvec = lambda shape: 0.02 * jax.random.normal(nxt(), shape, F32)

    params = {
        "word_emb": w((V, H)),                 # tied with the LM-head projection
        "pos_emb": w((cfg["max_pos"], H)),
        "type_emb": w((2, H)),
        "emb_ln_g": jnp.ones((H,), F32),
        "emb_ln_b": jnp.zeros((H,), F32),
        "lm_b": bvec((V,)),                    # LM head bias
        "det_w": w((1, H)),                    # self.detection = nn.Linear(d_model, 1)
        "det_b": bvec((1,)),
        "layers": [],
    }
    for _ in range(cfg["layers"]):
        wq = 0.02 * jax.random.normal(nxt(), (H, H), F32)
        wk = 0.02 * jax.random.normal(nxt(), (H, H), F32)
        wv = 0.02 * jax.random.normal(nxt(), (H, H), F32)
        bq = 0.02 * jax.random.normal(nxt(), (H,), F32)
        bk = 0.02 * jax.random.normal(nxt(), (H,), F32)
        bv = 0.02 * jax.random.normal(nxt(), (H,), F32)
        params["layers"].append({
            # 1/sqrt(Dh) attention scale folded into the Q projection weights (free)
            "wqkv": jnp.concatenate([wq * scale, wk, wv], axis=1).astype(BF16),
            "bqkv": jnp.concatenate([bq * scale, bk, bv]).astype(F32),
            "wo": w((H, H)), "bo": bvec((H,)),
            "ln1_g": jnp.ones((H,), F32), "ln1_b": jnp.zeros((H,), F32),
            "w1": w((H, I)), "b1": bvec((I,)),
            "w2": w((I, H)), "b2": bvec((H,)),
            "ln2_g": jnp.ones((H,), F32), "ln2_b": jnp.zeros((H,), F32),
        })
    return params


# --------------------------------------------------------------------------
# Forward: inference path of XlnetFineTune.forward (text_labels=None)
# --------------------------------------------------------------------------
def xlnet_finetune_forward(params, input_ids, input_tyi, input_attn_mask, cfg):
    B, S = input_ids.shape
    H, NH, Dh, V = cfg["hidden"], cfg["heads"], cfg["head_dim"], cfg["vocab"]
    M = B * S

    # ---- module-level glue (mirrors the PyTorch forward) ----
    perm_mask = jnp.zeros((B, S, S), F32)                          # torch.zeros((B,S,S))
    target_mapping = jnp.tile(jnp.eye(S, dtype=F32), (B, 1, 1))    # torch.eye(S).repeat(B,1,1)
    # TODO(synk): two-stream attention not modeled; target_mapping==eye(S) is identity.
    del target_mapping

    # additive attention bias (f32): padding mask OR perm_mask (all-zeros here)
    key_mask = 1.0 - input_attn_mask.astype(F32)                   # (B, S)
    attn_bias = NEG_INF * jnp.maximum(key_mask[:, None, :],
                                      jnp.clip(perm_mask, 0.0, 1.0))   # (B, S, S)

    # ---- embeddings (gathers are plain-JAX glue) ----
    pos_ids = jnp.arange(S, dtype=jnp.int32)
    emb = (jnp.take(params["word_emb"], input_ids, axis=0).astype(F32)
           + jnp.take(params["pos_emb"], pos_ids, axis=0).astype(F32)[None]
           + jnp.take(params["type_emb"], input_tyi, axis=0).astype(F32))
    x = layernorm(emb.reshape(M, H).astype(BF16),
                  params["emb_ln_g"], params["emb_ln_b"])          # (M, H) bf16

    # ---- transformer layers: 3 fused pallas_calls per layer ----
    for layer in params["layers"]:
        qkv = qkv_projection(x, layer["wqkv"], layer["bqkv"])      # (M, 3H) bf16
        qkv = qkv.reshape(B, S, 3, NH, Dh).transpose(2, 0, 3, 1, 4)
        q, k, v = qkv[0], qkv[1], qkv[2]                           # (B, NH, S, Dh)
        x = attention_block(q, k, v, attn_bias, x.reshape(B, S, H),
                            layer["wo"], layer["bo"],
                            layer["ln1_g"], layer["ln1_b"]).reshape(M, H)
        x = ffn_block(x, layer["w1"], layer["b1"], layer["w2"], layer["b2"],
                      layer["ln2_g"], layer["ln2_b"])              # (M, H) bf16

    # ---- heads on hidden_states[-1] ----
    logits = lm_head(x, params["word_emb"], params["lm_b"]).reshape(B, S, V)
    prob = detection_head(x, params["det_w"], params["det_b"]).reshape(B, S, 1)
    return prob, logits       # == (self.detection(h), bert_outputs.logits)


# --------------------------------------------------------------------------
# Pure-JAX f32 reference (same params) for correctness checking
# --------------------------------------------------------------------------
def reference_forward(params, input_ids, input_tyi, input_attn_mask, cfg):
    B, S = input_ids.shape
    H, NH, Dh, V = cfg["hidden"], cfg["heads"], cfg["head_dim"], cfg["vocab"]
    f = lambda a: a.astype(F32)

    pos_ids = jnp.arange(S, dtype=jnp.int32)
    emb = (f(jnp.take(params["word_emb"], input_ids, axis=0))
           + f(jnp.take(params["pos_emb"], pos_ids, axis=0))[None]
           + f(jnp.take(params["type_emb"], input_tyi, axis=0)))
    x = _layernorm(emb.reshape(B * S, H), f(params["emb_ln_g"]), f(params["emb_ln_b"]))

    bias = NEG_INF * (1.0 - input_attn_mask.astype(F32))[:, None, :]   # (B,1,S) -> bcast

    for layer in params["layers"]:
        qkv = x @ f(layer["wqkv"]) + f(layer["bqkv"])
        qkv = qkv.reshape(B, S, 3, NH, Dh).transpose(2, 0, 3, 1, 4)
        q, k, v = qkv[0], qkv[1], qkv[2]                               # (B,NH,S,Dh)
        s = jnp.einsum("bhqd,bhkd->bhqk", q, k) + bias[:, None]
        p = jax.nn.softmax(s, axis=-1)
        ctx = jnp.einsum("bhqk,bhkd->bhqd", p, v)
        ctx = ctx.transpose(0, 2, 1, 3).reshape(B * S, H)
        attn_out = ctx @ f(layer["wo"]) + f(layer["bo"])
        x = _layernorm(x + attn_out, f(layer["ln1_g"]), f(layer["ln1_b"]))
        h1 = _gelu(x @ f(layer["w1"]) + f(layer["b1"]))
        ffn = h1 @ f(layer["w2"]) + f(layer["b2"])
        x = _layernorm(x + ffn, f(layer["ln2_g"]), f(layer["ln2_b"]))

    logits = x @ f(params["word_emb"]).T + f(params["lm_b"])
    prob = x @ f(params["det_w"]).T + f(params["det_b"])
    return prob.reshape(B, S, 1), logits.reshape(B, S, V)


# --------------------------------------------------------------------------
if __name__ == "__main__":
    cfg = dict(
        vocab=512,        # small stand-in for the XLNet vocab size
        hidden=128,       # d_model (lane-aligned: multiple of 128)
        layers=2,
        heads=2,
        head_dim=64,
        intermediate=512,
        max_pos=512,
    )

    key = jax.random.PRNGKey(0)
    pkey, ikey = jax.random.split(key)
    params = init_params(pkey, cfg)

    B, S = 2, 128
    input_ids = jax.random.randint(ikey, (B, S), 0, cfg["vocab"], dtype=jnp.int32)
    input_tyi = jnp.zeros((B, S), jnp.int32)
    input_attn_mask = jnp.ones((B, S), jnp.int32).at[1, -16:].set(0)

    fwd = jax.jit(functools.partial(xlnet_finetune_forward, cfg=cfg))
    prob, logits = fwd(params, input_ids, input_tyi, input_attn_mask)
    prob = jax.block_until_ready(prob)
    logits = jax.block_until_ready(logits)

    assert prob.shape == (B, S, 1)
    assert logits.shape == (B, S, cfg["vocab"])
    assert bool(jnp.all(jnp.isfinite(prob))) and bool(jnp.all(jnp.isfinite(logits)))

    # Pure-JAX f32 reference with the same (bf16-quantized) parameters.
    ref_prob, ref_logits = reference_forward(params, input_ids, input_tyi,
                                             input_attn_mask, cfg)
    assert bool(jnp.allclose(prob, ref_prob, atol=5e-2, rtol=5e-2))
    assert bool(jnp.allclose(logits, ref_logits, atol=5e-2, rtol=5e-2))

    print("KERNEL_OK")
</pallas_src>

<mosaic_0001>
module attributes {stable_mosaic.version = 11 : i64} {
  func.func @_layernorm_kernel(%arg0: i32, %arg1: memref<128x128xbf16, #tpu.memory_space<vmem>>, %arg2: memref<1x128xf32, #tpu.memory_space<vmem>>, %arg3: memref<1x128xf32, #tpu.memory_space<vmem>>, %arg4: memref<128x128xbf16, #tpu.memory_space<vmem>>) attributes {dimension_semantics = [#tpu.dimension_semantics<parallel>], iteration_bounds = array<i64: 2>, scalar_prefetch = 0 : i64, scratch_operands = 0 : i64, tpu.core_type = #tpu.core_type<tc>, window_params = [{transform_indices = @transform_0, window_bounds = array<i64: 128, 128>}, {pipeline_mode = #tpu.pipeline_mode<synchronous>, transform_indices = @transform_1, window_bounds = array<i64: 1, 128>}, {pipeline_mode = #tpu.pipeline_mode<synchronous>, transform_indices = @transform_2, window_bounds = array<i64: 1, 128>}, {transform_indices = @transform_3, window_bounds = array<i64: 128, 128>}]} {
    %c0 = arith.constant 0 : index
    %c0_0 = arith.constant 0 : index
    %0 = vector.load %arg1[%c0, %c0_0] : memref<128x128xbf16, #tpu.memory_space<vmem>>, vector<128x128xbf16>
    %1 = arith.extf %0 : vector<128x128xbf16> to vector<128x128xf32>
    %c0_1 = arith.constant 0 : index
    %c0_2 = arith.constant 0 : index
    %2 = vector.load %arg2[%c0_1, %c0_2] : memref<1x128xf32, #tpu.memory_space<vmem>>, vector<1x128xf32>
    %c0_3 = arith.constant 0 : index
    %c0_4 = arith.constant 0 : index
    %3 = vector.load %arg3[%c0_3, %c0_4] : memref<1x128xf32, #tpu.memory_space<vmem>>, vector<1x128xf32>
    %cst = arith.constant dense<0.000000e+00> : vector<128xf32>
    %4 = vector.multi_reduction <add>, %1, %cst [1] : vector<128x128xf32> to vector<128xf32>
    %5 = vector.shape_cast %4 : vector<128xf32> to vector<128x1xf32>
    %cst_5 = arith.constant 1.280000e+02 : f32
    %6 = vector.broadcast %cst_5 : f32 to vector<128x1xf32>
    %7 = arith.divf %5, %6 : vector<128x1xf32>
    %8 = vector.broadcast %7 : vector<128x1xf32> to vector<128x128xf32>
    %9 = arith.subf %1, %8 : vector<128x128xf32>
    %10 = arith.mulf %9, %9 : vector<128x128xf32>
    %cst_6 = arith.constant dense<0.000000e+00> : vector<128xf32>
    %11 = vector.multi_reduction <add>, %10, %cst_6 [1] : vector<128x128xf32> to vector<128xf32>
    %12 = vector.shape_cast %11 : vector<128xf32> to vector<128x1xf32>
    %cst_7 = arith.constant 1.280000e+02 : f32
    %13 = vector.broadcast %cst_7 : f32 to vector<128x1xf32>
    %14 = arith.divf %12, %13 : vector<128x1xf32>
    %cst_8 = arith.constant 9.99999996E-13 : f32
    %15 = vector.broadcast %cst_8 : f32 to vector<128x1xf32>
    %16 = arith.addf %14, %15 : vector<128x1xf32>
    %17 = math.rsqrt %16 : vector<128x1xf32>
    %18 = vector.broadcast %17 : vector<128x1xf32> to vector<128x128xf32>
    %19 = arith.mulf %9, %18 : vector<128x128xf32>
    %20 = vector.broadcast %2 : vector<1x128xf32> to vector<128x128xf32>
    %21 = arith.mulf %19, %20 : vector<128x128xf32>
    %22 = vector.broadcast %3 : vector<1x128xf32> to vector<128x128xf32>
    %23 = arith.addf %21, %22 : vector<128x128xf32>
    %24 = arith.truncf %23 : vector<128x128xf32> to vector<128x128xbf16>
    %c0_9 = arith.constant 0 : index
    %c0_10 = arith.constant 0 : index
    %25 = vector.load %arg4[%c0_9, %c0_10] : memref<128x128xbf16, #tpu.memory_space<vmem>>, vector<128x128xbf16>
    tpu.vector_store %arg4[%c0_9, %c0_10], %24 {strides = array<i32>} : memref<128x128xbf16, #tpu.memory_space<vmem>>, vector<128x128xbf16>,
    return
  }
  func.func @transform_0(%arg0: i32) -> (i32, i32) {
    %c0_i32 = arith.constant 0 : i32
    %c0_i32_0 = arith.constant 0 : i32
    return %arg0, %c0_i32 : i32, i32
  }
  func.func @transform_1(%arg0: i32) -> (i32, i32) {
    %c0_i32 = arith.constant 0 : i32
    %c0_i32_0 = arith.constant 0 : i32
    %c0_i32_1 = arith.constant 0 : i32
    return %c0_i32, %c0_i32_0 : i32, i32
  }
  func.func @transform_2(%arg0: i32) -> (i32, i32) {
    %c0_i32 = arith.constant 0 : i32
    %c0_i32_0 = arith.constant 0 : i32
    %c0_i32_1 = arith.constant 0 : i32
    return %c0_i32, %c0_i32_0 : i32, i32
  }
  func.func @transform_3(%arg0: i32) -> (i32, i32) {
    %c0_i32 = arith.constant 0 : i32
    %c0_i32_0 = arith.constant 0 : i32
    return %arg0, %c0_i32 : i32, i32
  }
}

module attributes {stable_mosaic.version = 11 : i64} {
  func.func @_qkv_kernel(%arg0: i32, %arg1: memref<128x128xbf16, #tpu.memory_space<vmem>>, %arg2: memref<128x384xbf16, #tpu.memory_space<vmem>>, %arg3: memref<1x384xf32, #tpu.memory_space<vmem>>, %arg4: memref<128x384xbf16, #tpu.memory_space<vmem>>) attributes {dimension_semantics = [#tpu.dimension_semantics<parallel>], iteration_bounds = array<i64: 2>, scalar_prefetch = 0 : i64, scratch_operands = 0 : i64, tpu.core_type = #tpu.core_type<tc>, window_params = [{transform_indices = @transform_0, window_bounds = array<i64: 128, 128>}, {pipeline_mode = #tpu.pipeline_mode<synchronous>, transform_indices = @transform_1, window_bounds = array<i64: 128, 384>}, {pipeline_mode = #tpu.pipeline_mode<synchronous>, transform_indices = @transform_2, window_bounds = array<i64: 1, 384>}, {transform_indices = @transform_3, window_bounds = array<i64: 128, 384>}]} {
    %c0 = arith.constant 0 : index
    %c0_0 = arith.constant 0 : index
    %0 = vector.load %arg1[%c0, %c0_0] : memref<128x128xbf16, #tpu.memory_space<vmem>>, vector<128x128xbf16>
    %c0_1 = arith.constant 0 : index
    %c0_2 = arith.constant 0 : index
    %1 = vector.load %arg2[%c0_1, %c0_2] : memref<128x384xbf16, #tpu.memory_space<vmem>>, vector<128x384xbf16>
    %cst = arith.constant dense<0.000000e+00> : vector<128x384xf32>
    %2 = tpu.matmul %0, %1, %cst {dimension_numbers = #tpu.dot_dimension_numbers<[1], [0], [0], [1], [0, 0, 1, 1], [], []>} : vector<128x128xbf16>, vector<128x384xbf16>, vector<128x384xf32> -> vector<128x384xf32>
    %c0_3 = arith.constant 0 : index
    %c0_4 = arith.constant 0 : index
    %3 = vector.load %arg3[%c0_3, %c0_4] : memref<1x384xf32, #tpu.memory_space<vmem>>, vector<1x384xf32>
    %4 = vector.broadcast %3 : vector<1x384xf32> to vector<128x384xf32>
    %5 = arith.addf %2, %4 : vector<128x384xf32>
    %6 = arith.truncf %5 : vector<128x384xf32> to vector<128x384xbf16>
    %c0_5 = arith.constant 0 : index
    %c0_6 = arith.constant 0 : index
    %7 = vector.load %arg4[%c0_5, %c0_6] : memref<128x384xbf16, #tpu.memory_space<vmem>>, vector<128x384xbf16>
    tpu.vector_store %arg4[%c0_5, %c0_6], %6 {strides = array<i32>} : memref<128x384xbf16, #tpu.memory_space<vmem>>, vector<128x384xbf16>,
    return
  }
  func.func @transform_0(%arg0: i32) -> (i32, i32) {
    %c0_i32 = arith.constant 0 : i32
    %c0_i32_0 = arith.constant 0 : i32
    return %arg0, %c0_i32 : i32, i32
  }
  func.func @transform_1(%arg0: i32) -> (i32, i32) {
    %c0_i32 = arith.constant 0 : i32
    %c0_i32_0 = arith.constant 0 : i32
    %c0_i32_1 = arith.constant 0 : i32
    return %c0_i32, %c0_i32_0 : i32, i32
  }
  func.func @transform_2(%arg0: i32) -> (i32, i32) {
    %c0_i32 = arith.constant 0 : i32
    %c0_i32_0 = arith.constant 0 : i32
    %c0_i32_1 = arith.constant 0 : i32
    return %c0_i32, %c0_i32_0 : i32, i32
  }
  func.func @transform_3(%arg0: i32) -> (i32, i32) {
    %c0_i32 = arith.constant 0 : i32
    %c0_i32_0 = arith.constant 0 : i32
    return %arg0, %c0_i32 : i32, i32
  }
}

module attributes {stable_mosaic.version = 11 : i64} {
  func.func @_attn_block_kernel(%arg0: i32, %arg1: memref<1x2x128x64xbf16, #tpu.memory_space<vmem>>, %arg2: memref<1x2x128x64xbf16, #tpu.memory_space<vmem>>, %arg3: memref<1x2x128x64xbf16, #tpu.memory_space<vmem>>, %arg4: memref<1x128x128xf32, #tpu.memory_space<vmem>>, %arg5: memref<1x128x128xbf16, #tpu.memory_space<vmem>>, %arg6: memref<128x128xbf16, #tpu.memory_space<vmem>>, %arg7: memref<1x128xf32, #tpu.memory_space<vmem>>, %arg8: memref<1x128xf32, #tpu.memory_space<vmem>>, %arg9: memref<1x128xf32, #tpu.memory_space<vmem>>, %arg10: memref<1x128x128xbf16, #tpu.memory_space<vmem>>) attributes {dimension_semantics = [#tpu.dimension_semantics<parallel>], iteration_bounds = array<i64: 2>, scalar_prefetch = 0 : i64, scratch_operands = 0 : i64, tpu.core_type = #tpu.core_type<tc>, window_params = [{transform_indices = @transform_0, window_bounds = array<i64: 1, 2, 128, 64>}, {transform_indices = @transform_1, window_bounds = array<i64: 1, 2, 128, 64>}, {transform_indices = @transform_2, window_bounds = array<i64: 1, 2, 128, 64>}, {transform_indices = @transform_3, window_bounds = array<i64: 1, 128, 128>}, {transform_indices = @transform_4, window_bounds = array<i64: 1, 128, 128>}, {pipeline_mode = #tpu.pipeline_mode<synchronous>, transform_indices = @transform_5, window_bounds = array<i64: 128, 128>}, {pipeline_mode = #tpu.pipeline_mode<synchronous>, transform_indices = @transform_6, window_bounds = array<i64: 1, 128>}, {pipeline_mode = #tpu.pipeline_mode<synchronous>, transform_indices = @transform_7, window_bounds = array<i64: 1, 128>}, {pipeline_mode = #tpu.pipeline_mode<synchronous>, transform_indices = @transform_8, window_bounds = array<i64: 1, 128>}, {transform_indices = @transform_9, window_bounds = array<i64: 1, 128, 128>}]} {
    %c0 = arith.constant 0 : index
    %c0_0 = arith.constant 0 : index
    %c0_1 = arith.constant 0 : index
    %0 = vector.load %arg4[%c0, %c0_0, %c0_1] : memref<1x128x128xf32, #tpu.memory_space<vmem>>, vector<1x128x128xf32>
    %1 = vector.shape_cast %0 : vector<1x128x128xf32> to vector<128x128xf32>
    %cst = arith.constant 0.000000e+00 : f32
    %2 = vector.broadcast %cst : f32 to vector<128x128xf32>
    %c0_2 = arith.constant 0 : index
    %c0_3 = arith.constant 0 : index
    %c0_4 = arith.constant 0 : index
    %c0_5 = arith.constant 0 : index
    %3 = vector.load %arg1[%c0_2, %c0_3, %c0_4, %c0_5] : memref<1x2x128x64xbf16, #tpu.memory_space<vmem>>, vector<1x1x128x64xbf16>
    %4 = vector.shape_cast %3 : vector<1x1x128x64xbf16> to vector<128x64xbf16>
    %c0_6 = arith.constant 0 : index
    %c0_7 = arith.constant 0 : index
    %c0_8 = arith.constant 0 : index
    %c0_9 = arith.constant 0 : index
    %5 = vector.load %arg2[%c0_6, %c0_7, %c0_8, %c0_9] : memref<1x2x128x64xbf16, #tpu.memory_space<vmem>>, vector<1x1x128x64xbf16>
    %6 = vector.shape_cast %5 : vector<1x1x128x64xbf16> to vector<128x64xbf16>
    %c0_10 = arith.constant 0 : index
    %c0_11 = arith.constant 0 : index
    %c0_12 = arith.constant 0 : index
    %c0_13 = arith.constant 0 : index
    %7 = vector.load %arg3[%c0_10, %c0_11, %c0_12, %c0_13] : memref<1x2x128x64xbf16, #tpu.memory_space<vmem>>, vector<1x1x128x64xbf16>
    %8 = vector.shape_cast %7 : vector<1x1x128x64xbf16> to vector<128x64xbf16>
    %cst_14 = arith.constant dense<0.000000e+00> : vector<128x128xf32>
    %9 = tpu.matmul %4, %6, %cst_14 {dimension_numbers = #tpu.dot_dimension_numbers<[1], [1], [0], [0], [0, 0, 1, 0], [], []>} : vector<128x64xbf16>, vector<128x64xbf16>, vector<128x128xf32> -> vector<128x128xf32>
    %10 = arith.addf %9, %1 : vector<128x128xf32>
    %cst_15 = arith.constant dense<0xFF800000> : vector<128xf32>
    %11 = vector.multi_reduction <maximumf>, %10, %cst_15 [1] : vector<128x128xf32> to vector<128xf32>
    %12 = vector.shape_cast %11 : vector<128xf32> to vector<128x1xf32>
    %13 = vector.broadcast %12 : vector<128x1xf32> to vector<128x128xf32>
    %14 = arith.subf %10, %13 : vector<128x128xf32>
    %15 = math.exp %14 : vector<128x128xf32>
    %cst_16 = arith.constant dense<0.000000e+00> : vector<128xf32>
    %16 = vector.multi_reduction <add>, %15, %cst_16 [1] : vector<128x128xf32> to vector<128xf32>
    %17 = vector.shape_cast %16 : vector<128xf32> to vector<128x1xf32>
    %18 = tpu.reciprocal %17 {approx = true} : vector<128x1xf32> -> vector<128x1xf32>
    %19 = vector.broadcast %18 : vector<128x1xf32> to vector<128x128xf32>
    %20 = arith.mulf %15, %19 : vector<128x128xf32>
    %21 = arith.truncf %20 : vector<128x128xf32> to vector<128x128xbf16>
    %cst_17 = arith.constant dense<0.000000e+00> : vector<128x64xf32>
    %22 = tpu.matmul %21, %8, %cst_17 {dimension_numbers = #tpu.dot_dimension_numbers<[1], [0], [0], [1], [0, 0, 1, 1], [], []>} : vector<128x128xbf16>, vector<128x64xbf16>, vector<128x64xf32> -> vector<128x64xf32>
    %c0_18 = arith.constant 0 : index
    %c0_19 = arith.constant 0 : index
    %23 = vector.load %arg6[%c0_18, %c0_19] : memref<128x128xbf16, #tpu.memory_space<vmem>>, vector<64x128xbf16>
    %24 = arith.truncf %22 : vector<128x64xf32> to vector<128x64xbf16>
    %cst_20 = arith.constant dense<0.000000e+00> : vector<128x128xf32>
    %25 = tpu.matmul %24, %23, %cst_20 {dimension_numbers = #tpu.dot_dimension_numbers<[1], [0], [0], [1], [0, 0, 1, 1], [], []>} : vector<128x64xbf16>, vector<64x128xbf16>, vector<128x128xf32> -> vector<128x128xf32>
    %26 = arith.addf %2, %25 : vector<128x128xf32>
    %c0_21 = arith.constant 0 : index
    %c1 = arith.constant 1 : index
    %c0_22 = arith.constant 0 : index
    %c0_23 = arith.constant 0 : index
    %27 = vector.load %arg1[%c0_21, %c1, %c0_22, %c0_23] : memref<1x2x128x64xbf16, #tpu.memory_space<vmem>>, vector<1x1x128x64xbf16>
    %28 = vector.shape_cast %27 : vector<1x1x128x64xbf16> to vector<128x64xbf16>
    %c0_24 = arith.constant 0 : index
    %c1_25 = arith.constant 1 : index
    %c0_26 = arith.constant 0 : index
    %c0_27 = arith.constant 0 : index
    %29 = vector.load %arg2[%c0_24, %c1_25, %c0_26, %c0_27] : memref<1x2x128x64xbf16, #tpu.memory_space<vmem>>, vector<1x1x128x64xbf16>
    %30 = vector.shape_cast %29 : vector<1x1x128x64xbf16> to vector<128x64xbf16>
    %c0_28 = arith.constant 0 : index
    %c1_29 = arith.constant 1 : index
    %c0_30 = arith.constant 0 : index
    %c0_31 = arith.constant 0 : index
    %31 = vector.load %arg3[%c0_28, %c1_29, %c0_30, %c0_31] : memref<1x2x128x64xbf16, #tpu.memory_space<vmem>>, vector<1x1x128x64xbf16>
    %32 = vector.shape_cast %31 : vector<1x1x128x64xbf16> to vector<128x64xbf16>
    %cst_32 = arith.constant dense<0.000000e+00> : vector<128x128xf32>
    %33 = tpu.matmul %28, %30, %cst_32 {dimension_numbers = #tpu.dot_dimension_numbers<[1], [1], [0], [0], [0, 0, 1, 0], [], []>} : vector<128x64xbf16>, vector<128x64xbf16>, vector<128x128xf32> -> vector<128x128xf32>
    %34 = arith.addf %33, %1 : vector<128x128xf32>
    %cst_33 = arith.constant dense<0xFF800000> : vector<128xf32>
    %35 = vector.multi_reduction <maximumf>, %34, %cst_33 [1] : vector<128x128xf32> to vector<128xf32>
    %36 = vector.shape_cast %35 : vector<128xf32> to vector<128x1xf32>
    %37 = vector.broadcast %36 : vector<128x1xf32> to vector<128x128xf32>
    %38 = arith.subf %34, %37 : vector<128x128xf32>
    %39 = math.exp %38 : vector<128x128xf32>
    %cst_34 = arith.constant dense<0.000000e+00> : vector<128xf32>
    %40 = vector.multi_reduction <add>, %39, %cst_34 [1] : vector<128x128xf32> to vector<128xf32>
    %41 = vector.shape_cast %40 : vector<128xf32> to vector<128x1xf32>
    %42 = tpu.reciprocal %41 {approx = true} : vector<128x1xf32> -> vector<128x1xf32>
    %43 = vector.broadcast %42 : vector<128x1xf32> to vector<128x128xf32>
    %44 = arith.mulf %39, %43 : vector<128x128xf32>
    %45 = arith.truncf %44 : vector<128x128xf32> to vector<128x128xbf16>
    %cst_35 = arith.constant dense<0.000000e+00> : vector<128x64xf32>
    %46 = tpu.matmul %45, %32, %cst_35 {dimension_numbers = #tpu.dot_dimension_numbers<[1], [0], [0], [1], [0, 0, 1, 1], [], []>} : vector<128x128xbf16>, vector<128x64xbf16>, vector<128x64xf32> -> vector<128x64xf32>
    %c64 = arith.constant 64 : index
    %c0_36 = arith.constant 0 : index
    %47 = vector.load %arg6[%c64, %c0_36] : memref<128x128xbf16, #tpu.memory_space<vmem>>, vector<64x128xbf16>
    %48 = arith.truncf %46 : vector<128x64xf32> to vector<128x64xbf16>
    %cst_37 = arith.constant dense<0.000000e+00> : vector<128x128xf32>
    %49 = tpu.matmul %48, %47, %cst_37 {dimension_numbers = #tpu.dot_dimension_numbers<[1], [0], [0], [1], [0, 0, 1, 1], [], []>} : vector<128x64xbf16>, vector<64x128xbf16>, vector<128x128xf32> -> vector<128x128xf32>
    %50 = arith.addf %26, %49 : vector<128x128xf32>
    %c0_38 = arith.constant 0 : index
    %c0_39 = arith.constant 0 : index
    %51 = vector.load %arg7[%c0_38, %c0_39] : memref<1x128xf32, #tpu.memory_space<vmem>>, vector<1x128xf32>
    %52 = vector.broadcast %51 : vector<1x128xf32> to vector<128x128xf32>
    %53 = arith.addf %50, %52 : vector<128x128xf32>
    %c0_40 = arith.constant 0 : index
    %c0_41 = arith.constant 0 : index
    %c0_42 = arith.constant 0 : index
    %54 = vector.load %arg5[%c0_40, %c0_41, %c0_42] : memref<1x128x128xbf16, #tpu.memory_space<vmem>>, vector<1x128x128xbf16>
    %55 = vector.shape_cast %54 : vector<1x128x128xbf16> to vector<128x128xbf16>
    %56 = arith.extf %55 : vector<128x128xbf16> to vector<128x128xf32>
    %57 = arith.addf %53, %56 : vector<128x128xf32>
    %c0_43 = arith.constant 0 : index
    %c0_44 = arith.constant 0 : index
    %58 = vector.load %arg8[%c0_43, %c0_44] : memref<1x128xf32, #tpu.memory_space<vmem>>, vector<1x128xf32>
    %c0_45 = arith.constant 0 : index
    %c0_46 = arith.constant 0 : index
    %59 = vector.load %arg9[%c0_45, %c0_46] : memref<1x128xf32, #tpu.memory_space<vmem>>, vector<1x128xf32>
    %cst_47 = arith.constant dense<0.000000e+00> : vector<128xf32>
    %60 = vector.multi_reduction <add>, %57, %cst_47 [1] : vector<128x128xf32> to vector<128xf32>
    %61 = vector.shape_cast %60 : vector<128xf32> to vector<128x1xf32>
    %cst_48 = arith.constant 1.280000e+02 : f32
    %62 = vector.broadcast %cst_48 : f32 to vector<128x1xf32>
    %63 = arith.divf %61, %62 : vector<128x1xf32>
    %64 = vector.broadcast %63 : vector<128x1xf32> to vector<128x128xf32>
    %65 = arith.subf %57, %64 : vector<128x128xf32>
    %66 = arith.mulf %65, %65 : vector<128x128xf32>
    %cst_49 = arith.constant dense<0.000000e+00> : vector<128xf32>
    %67 = vector.multi_reduction <add>, %66, %cst_49 [1] : vector<128x128xf32> to vector<128xf32>
    %68 = vector.shape_cast %67 : vector<128xf32> to vector<128x1xf32>
    %cst_50 = arith.constant 1.280000e+02 : f32
    %69 = vector.broadcast %cst_50 : f32 to vector<128x1xf32>
    %70 = arith.divf %68, %69 : vector<128x1xf32>
    %cst_51 = arith.constant 9.99999996E-13 : f32
    %71 = vector.broadcast %cst_51 : f32 to vector<128x1xf32>
    %72 = arith.addf %70, %71 : vector<128x1xf32>
    %73 = math.rsqrt %72 : vector<128x1xf32>
    %74 = vector.broadcast %73 : vector<128x1xf32> to vector<128x128xf32>
    %75 = arith.mulf %65, %74 : vector<128x128xf32>
    %76 = vector.broadcast %58 : vector<1x128xf32> to vector<128x128xf32>
    %77 = arith.mulf %75, %76 : vector<128x128xf32>
    %78 = vector.broadcast %59 : vector<1x128xf32> to vector<128x128xf32>
    %79 = arith.addf %77, %78 : vector<128x128xf32>
    %80 = vector.shape_cast %79 : vector<128x128xf32> to vector<1x128x128xf32>
    %81 = arith.truncf %80 : vector<1x128x128xf32> to vector<1x128x128xbf16>
    %c0_52 = arith.constant 0 : index
    %c0_53 = arith.constant 0 : index
    %c0_54 = arith.constant 0 : index
    %82 = vector.load %arg10[%c0_52, %c0_53, %c0_54] : memref<1x128x128xbf16, #tpu.memory_space<vmem>>, vector<1x128x128xbf16>
    tpu.vector_store %arg10[%c0_52, %c0_53, %c0_54], %81 {strides = array<i32>} : memref<1x128x128xbf16, #tpu.memory_space<vmem>>, vector<1x128x128xbf16>,
    return
  }
  func.func @transform_0(%arg0: i32) -> (i32, i32, i32, i32) {
    %c0_i32 = arith.constant 0 : i32
    %c0_i32_0 = arith.constant 0 : i32
    %c0_i32_1 = arith.constant 0 : i32
    %c0_i32_2 = arith.constant 0 : i32
    return %arg0, %c0_i32, %c0_i32_0, %c0_i32_1 : i32, i32, i32, i32
  }
  func.func @transform_1(%arg0: i32) -> (i32, i32, i32, i32) {
    %c0_i32 = arith.constant 0 : i32
    %c0_i32_0 = arith.constant 0 : i32
    %c0_i32_1 = arith.constant 0 : i32
    %c0_i32_2 = arith.constant 0 : i32
    return %arg0, %c0_i32, %c0_i32_0, %c0_i32_1 : i32, i32, i32, i32
  }
  func.func @transform_2(%arg0: i32) -> (i32, i32, i32, i32) {
    %c0_i32 = arith.constant 0 : i32
    %c0_i32_0 = arith.constant 0 : i32
    %c0_i32_1 = arith.constant 0 : i32
    %c0_i32_2 = arith.constant 0 : i32
    return %arg0, %c0_i32, %c0_i32_0, %c0_i32_1 : i32, i32, i32, i32
  }
  func.func @transform_3(%arg0: i32) -> (i32, i32, i32) {
    %c0_i32 = arith.constant 0 : i32
    %c0_i32_0 = arith.constant 0 : i32
    %c0_i32_1 = arith.constant 0 : i32
    return %arg0, %c0_i32, %c0_i32_0 : i32, i32, i32
  }
  func.func @transform_4(%arg0: i32) -> (i32, i32, i32) {
    %c0_i32 = arith.constant 0 : i32
    %c0_i32_0 = arith.constant 0 : i32
    %c0_i32_1 = arith.constant 0 : i32
    return %arg0, %c0_i32, %c0_i32_0 : i32, i32, i32
  }
  func.func @transform_5(%arg0: i32) -> (i32, i32) {
    %c0_i32 = arith.constant 0 : i32
    %c0_i32_0 = arith.constant 0 : i32
    %c0_i32_1 = arith.constant 0 : i32
    return %c0_i32, %c0_i32_0 : i32, i32
  }
  func.func @transform_6(%arg0: i32) -> (i32, i32) {
    %c0_i32 = arith.constant 0 : i32
    %c0_i32_0 = arith.constant 0 : i32
    %c0_i32_1 = arith.constant 0 : i32
    return %c0_i32, %c0_i32_0 : i32, i32
  }
  func.func @transform_7(%arg0: i32) -> (i32, i32) {
    %c0_i32 = arith.constant 0 : i32
    %c0_i32_0 = arith.constant 0 : i32
    %c0_i32_1 = arith.constant 0 : i32
    return %c0_i32, %c0_i32_0 : i32, i32
  }
  func.func @transform_8(%arg0: i32) -> (i32, i32) {
    %c0_i32 = arith.constant 0 : i32
    %c0_i32_0 = arith.constant 0 : i32
    %c0_i32_1 = arith.constant 0 : i32
    return %c0_i32, %c0_i32_0 : i32, i32
  }
  func.func @transform_9(%arg0: i32) -> (i32, i32, i32) {
    %c0_i32 = arith.constant 0 : i32
    %c0_i32_0 = arith.constant 0 : i32
    %c0_i32_1 = arith.constant 0 : i32
    return %arg0, %c0_i32, %c0_i32_0 : i32, i32, i32
  }
}

module attributes {stable_mosaic.version = 11 : i64} {
  func.func @_lm_head_kernel(%arg0: i32, %arg1: i32, %arg2: memref<128x128xbf16, #tpu.memory_space<vmem>>, %arg3: memref<256x128xbf16, #tpu.memory_space<vmem>>, %arg4: memref<1x256xf32, #tpu.memory_space<vmem>>, %arg5: memref<128x256xf32, #tpu.memory_space<vmem>>) attributes {dimension_semantics = [#tpu.dimension_semantics<parallel>, #tpu.dimension_semantics<parallel>], iteration_bounds = array<i64: 2, 2>, scalar_prefetch = 0 : i64, scratch_operands = 0 : i64, tpu.core_type = #tpu.core_type<tc>, window_params = [{transform_indices = @transform_0, window_bounds = array<i64: 128, 128>}, {transform_indices = @transform_1, window_bounds = array<i64: 256, 128>}, {transform_indices = @transform_2, window_bounds = array<i64: 1, 256>}, {transform_indices = @transform_3, window_bounds = array<i64: 128, 256>}]} {
    %c0 = arith.constant 0 : index
    %c0_0 = arith.constant 0 : index
    %0 = vector.load %arg2[%c0, %c0_0] : memref<128x128xbf16, #tpu.memory_space<vmem>>, vector<128x128xbf16>
    %c0_1 = arith.constant 0 : index
    %c0_2 = arith.constant 0 : index
    %1 = vector.load %arg3[%c0_1, %c0_2] : memref<256x128xbf16, #tpu.memory_space<vmem>>, vector<256x128xbf16>
    %cst = arith.constant dense<0.000000e+00> : vector<128x256xf32>
    %2 = tpu.matmul %0, %1, %cst {dimension_numbers = #tpu.dot_dimension_numbers<[1], [1], [0], [0], [0, 0, 1, 0], [], []>} : vector<128x128xbf16>, vector<256x128xbf16>, vector<128x256xf32> -> vector<128x256xf32>
    %c0_3 = arith.constant 0 : index
    %c0_4 = arith.constant 0 : index
    %3 = vector.load %arg4[%c0_3, %c0_4] : memref<1x256xf32, #tpu.memory_space<vmem>>, vector<1x256xf32>
    %4 = vector.broadcast %3 : vector<1x256xf32> to vector<128x256xf32>
    %5 = arith.addf %2, %4 : vector<128x256xf32>
    %c0_5 = arith.constant 0 : index
    %c0_6 = arith.constant 0 : index
    %6 = vector.load %arg5[%c0_5, %c0_6] : memref<128x256xf32, #tpu.memory_space<vmem>>, vector<128x256xf32>
    tpu.vector_store %arg5[%c0_5, %c0_6], %5 {strides = array<i32>} : memref<128x256xf32, #tpu.memory_space<vmem>>, vector<128x256xf32>,
    return
  }
  func.func @transform_0(%arg0: i32, %arg1: i32) -> (i32, i32) {
    %c0_i32 = arith.constant 0 : i32
    %c0_i32_0 = arith.constant 0 : i32
    return %arg0, %c0_i32 : i32, i32
  }
  func.func @transform_1(%arg0: i32, %arg1: i32) -> (i32, i32) {
    %c0_i32 = arith.constant 0 : i32
    %c0_i32_0 = arith.constant 0 : i32
    return %arg1, %c0_i32 : i32, i32
  }
  func.func @transform_2(%arg0: i32, %arg1: i32) -> (i32, i32) {
    %c0_i32 = arith.constant 0 : i32
    %c0_i32_0 = arith.constant 0 : i32
    return %c0_i32, %arg1 : i32, i32
  }
  func.func @transform_3(%arg0: i32, %arg1: i32) -> (i32, i32) {
    %c0_i32 = arith.constant 0 : i32
    return %arg0, %arg1 : i32, i32
  }
}

module attributes {stable_mosaic.version = 11 : i64} {
  func.func @_ffn_kernel(%arg0: i32, %arg1: memref<128x128xbf16, #tpu.memory_space<vmem>>, %arg2: memref<128x512xbf16, #tpu.memory_space<vmem>>, %arg3: memref<1x512xf32, #tpu.memory_space<vmem>>, %arg4: memref<512x128xbf16, #tpu.memory_space<vmem>>, %arg5: memref<1x128xf32, #tpu.memory_space<vmem>>, %arg6: memref<1x128xf32, #tpu.memory_space<vmem>>, %arg7: memref<1x128xf32, #tpu.memory_space<vmem>>, %arg8: memref<128x128xbf16, #tpu.memory_space<vmem>>) attributes {dimension_semantics = [#tpu.dimension_semantics<parallel>], iteration_bounds = array<i64: 2>, scalar_prefetch = 0 : i64, scratch_operands = 0 : i64, tpu.core_type = #tpu.core_type<tc>, window_params = [{transform_indices = @transform_0, window_bounds = array<i64: 128, 128>}, {pipeline_mode = #tpu.pipeline_mode<synchronous>, transform_indices = @transform_1, window_bounds = array<i64: 128, 512>}, {pipeline_mode = #tpu.pipeline_mode<synchronous>, transform_indices = @transform_2, window_bounds = array<i64: 1, 512>}, {pipeline_mode = #tpu.pipeline_mode<synchronous>, transform_indices = @transform_3, window_bounds = array<i64: 512, 128>}, {pipeline_mode = #tpu.pipeline_mode<synchronous>, transform_indices = @transform_4, window_bounds = array<i64: 1, 128>}, {pipeline_mode = #tpu.pipeline_mode<synchronous>, transform_indices = @transform_5, window_bounds = array<i64: 1, 128>}, {pipeline_mode = #tpu.pipeline_mode<synchronous>, transform_indices = @transform_6, window_bounds = array<i64: 1, 128>}, {transform_indices = @transform_7, window_bounds = array<i64: 128, 128>}]} {
    %c0 = arith.constant 0 : index
    %c0_0 = arith.constant 0 : index
    %0 = vector.load %arg1[%c0, %c0_0] : memref<128x128xbf16, #tpu.memory_space<vmem>>, vector<128x128xbf16>
    %c0_1 = arith.constant 0 : index
    %c0_2 = arith.constant 0 : index
    %1 = vector.load %arg2[%c0_1, %c0_2] : memref<128x512xbf16, #tpu.memory_space<vmem>>, vector<128x512xbf16>
    %cst = arith.constant dense<0.000000e+00> : vector<128x512xf32>
    %2 = tpu.matmul %0, %1, %cst {dimension_numbers = #tpu.dot_dimension_numbers<[1], [0], [0], [1], [0, 0, 1, 1], [], []>} : vector<128x128xbf16>, vector<128x512xbf16>, vector<128x512xf32> -> vector<128x512xf32>
    %c0_3 = arith.constant 0 : index
    %c0_4 = arith.constant 0 : index
    %3 = vector.load %arg3[%c0_3, %c0_4] : memref<1x512xf32, #tpu.memory_space<vmem>>, vector<1x512xf32>
    %4 = vector.broadcast %3 : vector<1x512xf32> to vector<128x512xf32>
    %5 = arith.addf %2, %4 : vector<128x512xf32>
    %cst_5 = arith.constant 5.000000e-01 : f32
    %6 = vector.broadcast %cst_5 : f32 to vector<128x512xf32>
    %7 = arith.mulf %6, %5 : vector<128x512xf32>
    %cst_6 = arith.constant 4.471500e-02 : f32
    %8 = vector.broadcast %cst_6 : f32 to vector<128x512xf32>
    %9 = arith.mulf %8, %5 : vector<128x512xf32>
    %10 = arith.mulf %9, %5 : vector<128x512xf32>
    %11 = arith.mulf %10, %5 : vector<128x512xf32>
    %12 = arith.addf %5, %11 : vector<128x512xf32>
    %cst_7 = arith.constant 0.797884583 : f32
    %13 = vector.broadcast %cst_7 : f32 to vector<128x512xf32>
    %14 = arith.mulf %13, %12 : vector<128x512xf32>
    %15 = math.tanh %14 : vector<128x512xf32>
    %cst_8 = arith.constant 1.000000e+00 : f32
    %16 = vector.broadcast %cst_8 : f32 to vector<128x512xf32>
    %17 = arith.addf %16, %15 : vector<128x512xf32>
    %18 = arith.mulf %7, %17 : vector<128x512xf32>
    %19 = arith.truncf %18 : vector<128x512xf32> to vector<128x512xbf16>
    %c0_9 = arith.constant 0 : index
    %c0_10 = arith.constant 0 : index
    %20 = vector.load %arg4[%c0_9, %c0_10] : memref<512x128xbf16, #tpu.memory_space<vmem>>, vector<512x128xbf16>
    %cst_11 = arith.constant dense<0.000000e+00> : vector<128x128xf32>
    %21 = tpu.matmul %19, %20, %cst_11 {dimension_numbers = #tpu.dot_dimension_numbers<[1], [0], [0], [1], [0, 0, 1, 1], [], []>} : vector<128x512xbf16>, vector<512x128xbf16>, vector<128x128xf32> -> vector<128x128xf32>
    %c0_12 = arith.constant 0 : index
    %c0_13 = arith.constant 0 : index
    %22 = vector.load %arg5[%c0_12, %c0_13] : memref<1x128xf32, #tpu.memory_space<vmem>>, vector<1x128xf32>
    %23 = vector.broadcast %22 : vector<1x128xf32> to vector<128x128xf32>
    %24 = arith.addf %21, %23 : vector<128x128xf32>
    %25 = arith.extf %0 : vector<128x128xbf16> to vector<128x128xf32>
    %26 = arith.addf %24, %25 : vector<128x128xf32>
    %c0_14 = arith.constant 0 : index
    %c0_15 = arith.constant 0 : index
    %27 = vector.load %arg6[%c0_14, %c0_15] : memref<1x128xf32, #tpu.memory_space<vmem>>, vector<1x128xf32>
    %c0_16 = arith.constant 0 : index
    %c0_17 = arith.constant 0 : index
    %28 = vector.load %arg7[%c0_16, %c0_17] : memref<1x128xf32, #tpu.memory_space<vmem>>, vector<1x128xf32>
    %cst_18 = arith.constant dense<0.000000e+00> : vector<128xf32>
    %29 = vector.multi_reduction <add>, %26, %cst_18 [1] : vector<128x128xf32> to vector<128xf32>
    %30 = vector.shape_cast %29 : vector<128xf32> to vector<128x1xf32>
    %cst_19 = arith.constant 1.280000e+02 : f32
    %31 = vector.broadcast %cst_19 : f32 to vector<128x1xf32>
    %32 = arith.divf %30, %31 : vector<128x1xf32>
    %33 = vector.broadcast %32 : vector<128x1xf32> to vector<128x128xf32>
    %34 = arith.subf %26, %33 : vector<128x128xf32>
    %35 = arith.mulf %34, %34 : vector<128x128xf32>
    %cst_20 = arith.constant dense<0.000000e+00> : vector<128xf32>
    %36 = vector.multi_reduction <add>, %35, %cst_20 [1] : vector<128x128xf32> to vector<128xf32>
    %37 = vector.shape_cast %36 : vector<128xf32> to vector<128x1xf32>
    %cst_21 = arith.constant 1.280000e+02 : f32
    %38 = vector.broadcast %cst_21 : f32 to vector<128x1xf32>
    %39 = arith.divf %37, %38 : vector<128x1xf32>
    %cst_22 = arith.constant 9.99999996E-13 : f32
    %40 = vector.broadcast %cst_22 : f32 to vector<128x1xf32>
    %41 = arith.addf %39, %40 : vector<128x1xf32>
    %42 = math.rsqrt %41 : vector<128x1xf32>
    %43 = vector.broadcast %42 : vector<128x1xf32> to vector<128x128xf32>
    %44 = arith.mulf %34, %43 : vector<128x128xf32>
    %45 = vector.broadcast %27 : vector<1x128xf32> to vector<128x128xf32>
    %46 = arith.mulf %44, %45 : vector<128x128xf32>
    %47 = vector.broadcast %28 : vector<1x128xf32> to vector<128x128xf32>
    %48 = arith.addf %46, %47 : vector<128x128xf32>
    %49 = arith.truncf %48 : vector<128x128xf32> to vector<128x128xbf16>
    %c0_23 = arith.constant 0 : index
    %c0_24 = arith.constant 0 : index
    %50 = vector.load %arg8[%c0_23, %c0_24] : memref<128x128xbf16, #tpu.memory_space<vmem>>, vector<128x128xbf16>
    tpu.vector_store %arg8[%c0_23, %c0_24], %49 {strides = array<i32>} : memref<128x128xbf16, #tpu.memory_space<vmem>>, vector<128x128xbf16>,
    return
  }
  func.func @transform_0(%arg0: i32) -> (i32, i32) {
    %c0_i32 = arith.constant 0 : i32
    %c0_i32_0 = arith.constant 0 : i32
    return %arg0, %c0_i32 : i32, i32
  }
  func.func @transform_1(%arg0: i32) -> (i32, i32) {
    %c0_i32 = arith.constant 0 : i32
    %c0_i32_0 = arith.constant 0 : i32
    %c0_i32_1 = arith.constant 0 : i32
    return %c0_i32, %c0_i32_0 : i32, i32
  }
  func.func @transform_2(%arg0: i32) -> (i32, i32) {
    %c0_i32 = arith.constant 0 : i32
    %c0_i32_0 = arith.constant 0 : i32
    %c0_i32_1 = arith.constant 0 : i32
    return %c0_i32, %c0_i32_0 : i32, i32
  }
  func.func @transform_3(%arg0: i32) -> (i32, i32) {
    %c0_i32 = arith.constant 0 : i32
    %c0_i32_0 = arith.constant 0 : i32
    %c0_i32_1 = arith.constant 0 : i32
    return %c0_i32, %c0_i32_0 : i32, i32
  }
  func.func @transform_4(%arg0: i32) -> (i32, i32) {
    %c0_i32 = arith.constant 0 : i32
    %c0_i32_0 = arith.constant 0 : i32
    %c0_i32_1 = arith.constant 0 : i32
    return %c0_i32, %c0_i32_0 : i32, i32
  }
  func.func @transform_5(%arg0: i32) -> (i32, i32) {
    %c0_i32 = arith.constant 0 : i32
    %c0_i32_0 = arith.constant 0 : i32
    %c0_i32_1 = arith.constant 0 : i32
    return %c0_i32, %c0_i32_0 : i32, i32
  }
  func.func @transform_6(%arg0: i32) -> (i32, i32) {
    %c0_i32 = arith.constant 0 : i32
    %c0_i32_0 = arith.constant 0 : i32
    %c0_i32_1 = arith.constant 0 : i32
    return %c0_i32, %c0_i32_0 : i32, i32
  }
  func.func @transform_7(%arg0: i32) -> (i32, i32) {
    %c0_i32 = arith.constant 0 : i32
    %c0_i32_0 = arith.constant 0 : i32
    return %arg0, %c0_i32 : i32, i32
  }
}

module attributes {stable_mosaic.version = 11 : i64} {
  func.func @_detection_kernel(%arg0: i32, %arg1: memref<128x128xbf16, #tpu.memory_space<vmem>>, %arg2: memref<1x128xbf16, #tpu.memory_space<vmem>>, %arg3: memref<1x1xf32, #tpu.memory_space<vmem>>, %arg4: memref<128x1xf32, #tpu.memory_space<vmem>>) attributes {dimension_semantics = [#tpu.dimension_semantics<parallel>], iteration_bounds = array<i64: 2>, scalar_prefetch = 0 : i64, scratch_operands = 0 : i64, tpu.core_type = #tpu.core_type<tc>, window_params = [{transform_indices = @transform_0, window_bounds = array<i64: 128, 128>}, {pipeline_mode = #tpu.pipeline_mode<synchronous>, transform_indices = @transform_1, window_bounds = array<i64: 1, 128>}, {pipeline_mode = #tpu.pipeline_mode<synchronous>, transform_indices = @transform_2, window_bounds = array<i64: 1, 1>}, {transform_indices = @transform_3, window_bounds = array<i64: 128, 1>}]} {
    %c0 = arith.constant 0 : index
    %c0_0 = arith.constant 0 : index
    %0 = vector.load %arg1[%c0, %c0_0] : memref<128x128xbf16, #tpu.memory_space<vmem>>, vector<128x128xbf16>
    %1 = arith.extf %0 : vector<128x128xbf16> to vector<128x128xf32>
    %c0_1 = arith.constant 0 : index
    %c0_2 = arith.constant 0 : index
    %2 = vector.load %arg2[%c0_1, %c0_2] : memref<1x128xbf16, #tpu.memory_space<vmem>>, vector<1x128xbf16>
    %3 = arith.extf %2 : vector<1x128xbf16> to vector<1x128xf32>
    %4 = vector.broadcast %3 : vector<1x128xf32> to vector<128x128xf32>
    %5 = arith.mulf %1, %4 : vector<128x128xf32>
    %cst = arith.constant dense<0.000000e+00> : vector<128xf32>
    %6 = vector.multi_reduction <add>, %5, %cst [1] : vector<128x128xf32> to vector<128xf32>
    %7 = vector.shape_cast %6 : vector<128xf32> to vector<128x1xf32>
    %c0_3 = arith.constant 0 : index
    %c0_4 = arith.constant 0 : index
    %8 = vector.load %arg3[%c0_3, %c0_4] : memref<1x1xf32, #tpu.memory_space<vmem>>, vector<1x1xf32>
    %9 = vector.broadcast %8 : vector<1x1xf32> to vector<128x1xf32>
    %10 = arith.addf %7, %9 : vector<128x1xf32>
    %c0_5 = arith.constant 0 : index
    %c0_6 = arith.constant 0 : index
    %11 = vector.load %arg4[%c0_5, %c0_6] : memref<128x1xf32, #tpu.memory_space<vmem>>, vector<128x1xf32>
    tpu.vector_store %arg4[%c0_5, %c0_6], %10 {strides = array<i32>} : memref<128x1xf32, #tpu.memory_space<vmem>>, vector<128x1xf32>,
    return
  }
  func.func @transform_0(%arg0: i32) -> (i32, i32) {
    %c0_i32 = arith.constant 0 : i32
    %c0_i32_0 = arith.constant 0 : i32
    return %arg0, %c0_i32 : i32, i32
  }
  func.func @transform_1(%arg0: i32) -> (i32, i32) {
    %c0_i32 = arith.constant 0 : i32
    %c0_i32_0 = arith.constant 0 : i32
    %c0_i32_1 = arith.constant 0 : i32
    return %c0_i32, %c0_i32_0 : i32, i32
  }
  func.func @transform_2(%arg0: i32) -> (i32, i32) {
    %c0_i32 = arith.constant 0 : i32
    %c0_i32_0 = arith.constant 0 : i32
    %c0_i32_1 = arith.constant 0 : i32
    return %c0_i32, %c0_i32_0 : i32, i32
  }
  func.func @transform_3(%arg0: i32) -> (i32, i32) {
    %c0_i32 = arith.constant 0 : i32
    %c0_i32_0 = arith.constant 0 : i32
    return %arg0, %c0_i32 : i32, i32
  }
}

</mosaic_0001>

<bundles_post_ra>
// kernel: xlnet_finetune_forward.9
= control target key start
LH: loop header
LB: loop body
LE: loop exit
PB: predicated region body
PF: predicated region fallthrough
CT: control target
= control target key end

     0   :  { %s764_s12 = smov 0   ;;  %s970_s0 = inlined_call_operand.vmem [shape: bf16[256,128], index: 0, kind: input, shape index: {}]   ;;  %s971_s1 = inlined_call_operand.vmem [shape: f32[1,128], index: 1, kind: input, shape index: {}]   ;;  %s972_s2 = inlined_call_operand.vmem [shape: f32[1,128], index: 2, kind: input, shape index: {}]   ;;  %s973_s3 = inlined_call_operand.vmem [shape: bf16[256,128], index: 3, kind: output, shape index: {}]  }
   0x1 LB: > { %s565_s13 = sadd.s32 4294967295, %s742_s12   ;;  %p569_p0 = scmp.ge.s32.totalorder %s742_s12, 1  ;;  %s742_s12 = sphi %s764_s12, %s13_s12  }
   0x2   : > { %p138_p1 = scmp.lt.s32.totalorder %s742_s12, 3 }
   0x4   : > { %p139_p2 = pnand %p569_p0, %p138_p1 }
   0x5   : > { %s570_s14 = sshll.u32 (!%p139_p2), %s565_s13, 4 }
   0x6   : > { %142 = sbr.rel (%p139_p2) target bundleno = 358 (0x166), region = 32  ;;  %p163_p3 = scmp.lt.s32.totalorder (!%p139_p2), %s570_s14, 31 }
   0xb   : > { %s975_s14 = smov (!%p163_p3, %s570_s14), 31 }
   0xc   : > { %s571_s15 = sshll.u32 %s975_s14, 2 }
   0xd   : > { %s780_s18 = scalar_lea.vmem %s970_s0, %s571_s15  ;;  %s918_s25 = scalar_lea.vmem %s973_s3, %s571_s15 }
   0xe   : > { %v611_v0 = vld [vmem:[%s780_s18] sm:$0xff]   ;;  %v682_v1 = vld [vmem:[%s780_s18 + $0x8] sm:$0xff]   ;;  %v683_v6 = vld [vmem:[%s780_s18 + $0x10] sm:$0xff]  }
   0xf   : > { %v612_v2 = vunpack.c.l.bf16 %v611_v0  ;;  %v616_v3 = vunpack.c.l.bf16 %v682_v1  ;;  %v613_v4 = vunpack.c.h.bf16 %v611_v0  ;;  %v617_v5 = vunpack.c.h.bf16 %v682_v1  ;;  %v684_v9 = vld [vmem:[%s780_s18 + $0x18] sm:$0xff]   ;;  %v787_v12 = vld [vmem:[%s780_s18 + $0x20] sm:$0xff]   ;;  %v792_v15 = vld [vmem:[%s780_s18 + $0x28] sm:$0xff]  }
  0x10   : > { %v620_v7 = vunpack.c.l.bf16 %v683_v6  ;;  %v621_v8 = vunpack.c.h.bf16 %v683_v6  ;;  %v624_v10 = vunpack.c.l.bf16 %v684_v9  ;;  %v625_v11 = vunpack.c.h.bf16 %v684_v9  ;;  %v797_v18 = vld [vmem:[%s780_s18 + $0x30] sm:$0xff]   ;;  %v806_v21 = vld [vmem:[%s780_s18 + $0x38] sm:$0xff]  }
  0x11   : > { %208 = vadd.xlane.f32.xlu0 %v612_v2  ;;  %212 = vadd.xlane.f32.xlu1 %v616_v3  ;;  %v628_v13 = vunpack.c.l.bf16 %v787_v12  ;;  %v629_v14 = vunpack.c.h.bf16 %v787_v12  ;;  %v632_v16 = vunpack.c.l.bf16 %v792_v15  ;;  %v633_v17 = vunpack.c.h.bf16 %v792_v15 }
  0x12   : > { %v636_v19 = vunpack.c.l.bf16 %v797_v18  ;;  %v637_v20 = vunpack.c.h.bf16 %v797_v18  ;;  %v640_v22 = vunpack.c.l.bf16 %v806_v21  ;;  %v641_v23 = vunpack.c.h.bf16 %v806_v21 }
  0x15   : > { %210 = vadd.xlane.f32.xlu0 %v613_v4  ;;  %214 = vadd.xlane.f32.xlu1 %v617_v5 }
  0x19   : > { %216 = vadd.xlane.f32.xlu0 %v620_v7  ;;  %218 = vadd.xlane.f32.xlu1 %v621_v8 }
  0x1d   : > { %220 = vadd.xlane.f32.xlu0 %v624_v10  ;;  %222 = vadd.xlane.f32.xlu1 %v625_v11 }
  0x21   : > { %224 = vadd.xlane.f32.xlu0 %v628_v13  ;;  %226 = vadd.xlane.f32.xlu1 %v629_v14 }
  0x25   : > { %228 = vadd.xlane.f32.xlu0 %v632_v16  ;;  %230 = vadd.xlane.f32.xlu1 %v633_v17 }
  0x29   : > { %232 = vadd.xlane.f32.xlu0 %v636_v19  ;;  %234 = vadd.xlane.f32.xlu1 %v637_v20 }
  0x2d   : > { %236 = vadd.xlane.f32.xlu0 %v640_v22  ;;  %238 = vadd.xlane.f32.xlu1 %v641_v23 }
  0x9a   : > { %v209_v24 = vpop.xlane.xlu0 %208  ;;  %v213_v25 = vpop.xlane.xlu1 %212 }
  0x9b   : > { %v241_v26 = vmul.f32 0.0078125, %v209_v24  ;;  %v243_v27 = vmul.f32 0.0078125, %v213_v25 }
  0x9d   : > { %v818_v28 = vsub.f32 %v612_v2, %v241_v26  ;;  %v820_v29 = vsub.f32 %v616_v3, %v243_v27 }
  0x9e   : > { %v211_v30 = vpop.xlane.xlu0 %210  ;;  %v215_v31 = vpop.xlane.xlu1 %214 }
  0x9f   : > { %v242_v32 = vmul.f32 0.0078125, %v211_v30  ;;  %v273_v33 = vmul.f32 %v818_v28, %v818_v28  ;;  %v244_v34 = vmul.f32 0.0078125, %v215_v31  ;;  %v275_v37 = vmul.f32 %v820_v29, %v820_v29 }
  0xa1   : > { %v824_v35 = vsub.f32 %v613_v4, %v242_v32  ;;  %289 = vadd.xlane.f32.xlu0 %v273_v33  ;;  %v826_v36 = vsub.f32 %v617_v5, %v244_v34 }
  0xa2   : > { %v217_v38 = vpop.xlane.xlu0 %216  ;;  %v219_v39 = vpop.xlane.xlu1 %218 }
  0xa3   : > { %v245_v40 = vmul.f32 0.0078125, %v217_v38  ;;  %v274_v41 = vmul.f32 %v824_v35, %v824_v35  ;;  %v246_v42 = vmul.f32 0.0078125, %v219_v39  ;;  %v276_v45 = vmul.f32 %v826_v36, %v826_v36 }
  0xa5   : > { %v832_v43 = vsub.f32 %v620_v7, %v245_v40  ;;  %293 = vadd.xlane.f32.xlu0 %v275_v37  ;;  %291 = vadd.xlane.f32.xlu1 %v274_v41  ;;  %v834_v44 = vsub.f32 %v621_v8, %v246_v42 }
  0xa6   : > { %v221_v46 = vpop.xlane.xlu0 %220  ;;  %v223_v47 = vpop.xlane.xlu1 %222 }
  0xa7   : > { %v247_v48 = vmul.f32 0.0078125, %v221_v46  ;;  %v277_v49 = vmul.f32 %v832_v43, %v832_v43  ;;  %v248_v50 = vmul.f32 0.0078125, %v223_v47  ;;  %v278_v53 = vmul.f32 %v834_v44, %v834_v44 }
  0xa9   : > { %v840_v51 = vsub.f32 %v624_v10, %v247_v48  ;;  %295 = vadd.xlane.f32.xlu1 %v276_v45  ;;  %297 = vadd.xlane.f32.xlu0 %v277_v49  ;;  %v842_v52 = vsub.f32 %v625_v11, %v248_v50 }
  0xaa   : > { %v225_v54 = vpop.xlane.xlu0 %224  ;;  %v227_v55 = vpop.xlane.xlu1 %226 }
  0xab   : > { %v249_v56 = vmul.f32 0.0078125, %v225_v54  ;;  %v279_v57 = vmul.f32 %v840_v51, %v840_v51  ;;  %v250_v58 = vmul.f32 0.0078125, %v227_v55  ;;  %v280_v61 = vmul.f32 %v842_v52, %v842_v52 }
  0xad   : > { %v848_v59 = vsub.f32 %v628_v13, %v249_v56  ;;  %299 = vadd.xlane.f32.xlu1 %v278_v53  ;;  %301 = vadd.xlane.f32.xlu0 %v279_v57  ;;  %v850_v60 = vsub.f32 %v629_v14, %v250_v58  ;;  %v897_v58 = vld [vmem:[%s971_s1] ss:$0 sm:$0xff] }
  0xae   : > { %v229_v62 = vpop.xlane.xlu0 %228  ;;  %v231_v63 = vpop.xlane.xlu1 %230 }
  0xaf   : > { %v251_v0 = vmul.f32 0.0078125, %v229_v62  ;;  %v281_v1 = vmul.f32 %v848_v59, %v848_v59  ;;  %v252_v2 = vmul.f32 0.0078125, %v231_v63  ;;  %v282_v5 = vmul.f32 %v850_v60, %v850_v60 }
  0xb1   : > { %v858_v3 = vsub.f32 %v632_v16, %v251_v0  ;;  %303 = vadd.xlane.f32.xlu1 %v280_v61  ;;  %305 = vadd.xlane.f32.xlu0 %v281_v1  ;;  %v862_v4 = vsub.f32 %v633_v17, %v252_v2 }
  0xb2   : > { %v233_v6 = vpop.xlane.xlu0 %232  ;;  %v235_v7 = vpop.xlane.xlu1 %234 }
  0xb3   : > { %v253_v8 = vmul.f32 0.0078125, %v233_v6  ;;  %v283_v9 = vmul.f32 %v858_v3, %v858_v3  ;;  %v254_v10 = vmul.f32 0.0078125, %v235_v7  ;;  %v284_v13 = vmul.f32 %v862_v4, %v862_v4 }
  0xb5   : > { %v870_v11 = vsub.f32 %v636_v19, %v253_v8  ;;  %307 = vadd.xlane.f32.xlu1 %v282_v5  ;;  %309 = vadd.xlane.f32.xlu0 %v283_v9  ;;  %v874_v12 = vsub.f32 %v637_v20, %v254_v10  ;;  %v904_v9 = vld [vmem:[%s972_s2] ss:$0 sm:$0xff] }
  0xb6   : > { %v237_v14 = vpop.xlane.xlu0 %236  ;;  %v239_v15 = vpop.xlane.xlu1 %238 }
  0xb7   : > { %v255_v16 = vmul.f32 0.0078125, %v237_v14  ;;  %v285_v17 = vmul.f32 %v870_v11, %v870_v11  ;;  %v256_v24 = vmul.f32 0.0078125, %v239_v15  ;;  %v286_v20 = vmul.f32 %v874_v12, %v874_v12 }
  0xb9   : > { %v882_v19 = vsub.f32 %v640_v22, %v255_v16  ;;  %311 = vadd.xlane.f32.xlu1 %v284_v13  ;;  %313 = vadd.xlane.f32.xlu0 %v285_v17  ;;  %v886_v18 = vsub.f32 %v641_v23, %v256_v24 }
  0xbb   : > { %v287_v25 = vmul.f32 %v882_v19, %v882_v19  ;;  %v288_v26 = vmul.f32 %v886_v18, %v886_v18 }
  0xbd   : > { %315 = vadd.xlane.f32.xlu1 %v286_v20  ;;  %317 = vadd.xlane.f32.xlu0 %v287_v25 }
  0xc1   : > { %319 = vadd.xlane.f32.xlu1 %v288_v26 }
 0x12a   : > { %v290_v22 = vpop.xlane.xlu0 %289 }
 0x12b   : > { %v321_v27 = vmul.f32 0.0078125, %v290_v22 }
 0x12d   : > { %v337_v30 = vadd.f32 1e-12, %v321_v27 }
 0x12e   : > { %v292_v31 = vpop.xlane.xlu1 %291  ;;  %v294_v32 = vpop.xlane.xlu0 %293 }
 0x12f   : > { %704 = vrsqrt.f32 %v337_v30  ;;  %v322_v21 = vmul.f32 0.0078125, %v292_v31  ;;  %v323_v23 = vmul.f32 0.0078125, %v294_v32 }
 0x131   : > { %v338_v33 = vadd.f32 1e-12, %v322_v21  ;;  %v339_v34 = vadd.f32 1e-12, %v323_v23 }
 0x132   : > { %v296_v37 = vpop.xlane.xlu1 %295  ;;  %v298_v38 = vpop.xlane.xlu0 %297 }
 0x133   : > { %706 = vrsqrt.f32 %v338_v33  ;;  %v324_v39 = vmul.f32 0.0078125, %v296_v37  ;;  %v325_v40 = vmul.f32 0.0078125, %v298_v38 }
 0x134   : > { %708 = vrsqrt.f32 %v339_v34 }
 0x135   : > { %v340_v41 = vadd.f32 1e-12, %v324_v39  ;;  %v341_v42 = vadd.f32 1e-12, %v325_v40 }
 0x136   : > { %v300_v45 = vpop.xlane.xlu1 %299  ;;  %v302_v46 = vpop.xlane.xlu0 %301 }
 0x137   : > { %710 = vrsqrt.f32 %v340_v41  ;;  %v326_v47 = vmul.f32 0.0078125, %v300_v45  ;;  %v327_v48 = vmul.f32 0.0078125, %v302_v46 }
 0x138   : > { %712 = vrsqrt.f32 %v341_v42 }
 0x139   : > { %v342_v49 = vadd.f32 1e-12, %v326_v47  ;;  %v343_v50 = vadd.f32 1e-12, %v327_v48 }
 0x13a   : > { %v304_v53 = vpop.xlane.xlu1 %303  ;;  %v306_v54 = vpop.xlane.xlu0 %305 }
 0x13b   : > { %714 = vrsqrt.f32 %v342_v49  ;;  %v328_v55 = vmul.f32 0.0078125, %v304_v53  ;;  %v329_v56 = vmul.f32 0.0078125, %v306_v54 }
 0x13c   : > { %v705_v57 = vpop.eup %704  ;;  %716 = vrsqrt.f32 %v343_v50 }
 0x13d   : > { %v369_v61 = vmul.f32 %v705_v57, %v818_v28  ;;  %v344_v62 = vadd.f32 1e-12, %v328_v55  ;;  %v345_v63 = vadd.f32 1e-12, %v329_v56 }
 0x13e   : > { %v308_v0 = vpop.xlane.xlu1 %307  ;;  %v310_v1 = vpop.xlane.xlu0 %309 }
 0x13f   : > { %718 = vrsqrt.f32 %v344_v62  ;;  %v330_v2 = vmul.f32 0.0078125, %v308_v0  ;;  %v331_v5 = vmul.f32 0.0078125, %v310_v1  ;;  %v391_v7 = vmul.f32 %v897_v58, %v369_v61 }
 0x140   : > { %v707_v6 = vpop.eup %706  ;;  %720 = vrsqrt.f32 %v345_v63 }
 0x141   : > { %v709_v8 = vpop.eup %708  ;;  %v370_v10 = vmul.f32 %v707_v6, %v824_v35  ;;  %v346_v28 = vadd.f32 1e-12, %v330_v2  ;;  %v347_v13 = vadd.f32 1e-12, %v331_v5  ;;  %v413_v26 = vadd.f32 %v904_v9, %v391_v7 }
 0x142   : > { %v371_v14 = vmul.f32 %v709_v8, %v820_v29  ;;  %v312_v15 = vpop.xlane.xlu1 %311  ;;  %v314_v16 = vpop.xlane.xlu0 %313 }
 0x143   : > { %v392_v17 = vmul.f32 %v897_v58, %v370_v10  ;;  %722 = vrsqrt.f32 %v346_v28  ;;  %v332_v24 = vmul.f32 0.0078125, %v312_v15  ;;  %v333_v20 = vmul.f32 0.0078125, %v314_v16 }
 0x144   : > { %v711_v25 = vpop.eup %710  ;;  %v393_v22 = vmul.f32 %v897_v58, %v371_v14  ;;  %724 = vrsqrt.f32 %v347_v13 }
 0x145   : > { %v713_v27 = vpop.eup %712  ;;  %v414_v35 = vadd.f32 %v904_v9, %v392_v17  ;;  %v372_v30 = vmul.f32 %v711_v25, %v826_v36  ;;  %v348_v29 = vadd.f32 1e-12, %v332_v24  ;;  %v349_v31 = vadd.f32 1e-12, %v333_v20 }
 0x146   : > { %v373_v32 = vmul.f32 %v713_v27, %v832_v43  ;;  %v316_v21 = vpop.xlane.xlu1 %315  ;;  %v318_v23 = vpop.xlane.xlu0 %317  ;;  %v415_v41 = vadd.f32 %v904_v9, %v393_v22 }
 0x147   : > { %v645_v33 = vpack.c.bf16 %v414_v35, %v413_v26  ;;  %v394_v34 = vmul.f32 %v897_v58, %v372_v30  ;;  %726 = vrsqrt.f32 %v348_v29  ;;  %v334_v37 = vmul.f32 0.0078125, %v316_v21 }
 0x148   : > { %v715_v38 = vpop.eup %714  ;;  %v395_v36 = vmul.f32 %v897_v58, %v373_v32  ;;  %728 = vrsqrt.f32 %v349_v31  ;;  %v335_v39 = vmul.f32 0.0078125, %v318_v23 }
 0x149   : > { %v717_v40 = vpop.eup %716  ;;  %646 = vst [vmem:[%s918_s25] sm:$0xff] %v645_v33   ;;  %v416_v42 = vadd.f32 %v904_v9, %v394_v34  ;;  %v374_v43 = vmul.f32 %v715_v38, %v834_v44  ;;  %v350_v45 = vadd.f32 1e-12, %v334_v37 }
 0x14a   : > { %v375_v46 = vmul.f32 %v717_v40, %v840_v51  ;;  %v351_v47 = vadd.f32 1e-12, %v335_v39  ;;  %v320_v48 = vpop.xlane.xlu1 %319  ;;  %v417_v55 = vadd.f32 %v904_v9, %v395_v36 }
 0x14b   : > { %v650_v49 = vpack.c.bf16 %v416_v42, %v415_v41  ;;  %v396_v50 = vmul.f32 %v897_v58, %v374_v43  ;;  %730 = vrsqrt.f32 %v350_v45  ;;  %v336_v53 = vmul.f32 0.0078125, %v320_v48 }
 0x14c   : > { %v719_v54 = vpop.eup %718  ;;  %732 = vrsqrt.f32 %v351_v47  ;;  %v397_v44 = vmul.f32 %v897_v58, %v375_v46 }
 0x14d   : > { %v721_v56 = vpop.eup %720  ;;  %689 = vst [vmem:[%s918_s25 + $0x8] sm:$0xff] %v650_v49   ;;  %v418_v57 = vadd.f32 %v904_v9, %v396_v50  ;;  %v376_v51 = vmul.f32 %v719_v54, %v842_v52  ;;  %v352_v61 = vadd.f32 1e-12, %v336_v53 }
 0x14e   : > { %v377_v62 = vmul.f32 %v721_v56, %v848_v59  ;;  %v419_v5 = vadd.f32 %v904_v9, %v397_v44 }
 0x14f   : > { %v655_v63 = vpack.c.bf16 %v418_v57, %v417_v55  ;;  %v398_v0 = vmul.f32 %v897_v58, %v376_v51  ;;  %734 = vrsqrt.f32 %v352_v61 }
 0x150   : > { %v723_v1 = vpop.eup %722  ;;  %v399_v7 = vmul.f32 %v897_v58, %v377_v62 }
 0x151   : > { %v725_v2 = vpop.eup %724  ;;  %690 = vst [vmem:[%s918_s25 + $0x10] sm:$0xff] %v655_v63   ;;  %v420_v6 = vadd.f32 %v904_v9, %v398_v0  ;;  %v378_v8 = vmul.f32 %v723_v1, %v850_v60 }
 0x152   : > { %v379_v52 = vmul.f32 %v725_v2, %v858_v3  ;;  %v421_v14 = vadd.f32 %v904_v9, %v399_v7 }
 0x153   : > { %v660_v59 = vpack.c.bf16 %v420_v6, %v419_v5  ;;  %v400_v10 = vmul.f32 %v897_v58, %v378_v8 }
 0x154   : > { %v727_v28 = vpop.eup %726  ;;  %v401_v16 = vmul.f32 %v897_v58, %v379_v52 }
 0x155   : > { %v729_v13 = vpop.eup %728  ;;  %691 = vst [vmem:[%s918_s25 + $0x18] sm:$0xff] %v660_v59   ;;  %v422_v15 = vadd.f32 %v904_v9, %v400_v10  ;;  %v380_v17 = vmul.f32 %v727_v28, %v862_v4 }
 0x156   : > { %v381_v60 = vmul.f32 %v729_v13, %v870_v11  ;;  %v423_v26 = vadd.f32 %v904_v9, %v401_v16 }
 0x157   : > { %v665_v24 = vpack.c.bf16 %v422_v15, %v421_v14  ;;  %v402_v3 = vmul.f32 %v897_v58, %v380_v17 }
 0x158   : > { %v731_v20 = vpop.eup %730  ;;  %v403_v27 = vmul.f32 %v897_v58, %v381_v60 }
 0x159   : > { %v733_v25 = vpop.eup %732  ;;  %692 = vst [vmem:[%s918_s25 + $0x20] sm:$0xff] %v665_v24   ;;  %v424_v22 = vadd.f32 %v904_v9, %v402_v3  ;;  %v382_v35 = vmul.f32 %v731_v20, %v874_v12 }
 0x15a   : > { %v383_v4 = vmul.f32 %v733_v25, %v882_v19  ;;  %v425_v31 = vadd.f32 %v904_v9, %v403_v27 }
 0x15b   : > { %v670_v30 = vpack.c.bf16 %v424_v22, %v423_v26  ;;  %v404_v11 = vmul.f32 %v897_v58, %v382_v35 }
 0x15c   : > { %v735_v29 = vpop.eup %734  ;;  %v405_v21 = vmul.f32 %v897_v58, %v383_v4 }
 0x15d   : > { %693 = vst [vmem:[%s918_s25 + $0x28] sm:$0xff] %v670_v30   ;;  %v426_v32 = vadd.f32 %v904_v9, %v404_v11  ;;  %v384_v23 = vmul.f32 %v735_v29, %v886_v18 }
 0x15e   : > { %v427_v12 = vadd.f32 %v904_v9, %v405_v21 }
 0x15f   : > { %v675_v33 = vpack.c.bf16 %v426_v32, %v425_v31  ;;  %v406_v34 = vmul.f32 %v897_v58, %v384_v23 }
 0x161   : > { %694 = vst [vmem:[%s918_s25 + $0x30] sm:$0xff] %v675_v33   ;;  %v428_v19 = vadd.f32 %v904_v9, %v406_v34 }
 0x163   : > { %v680_v37 = vpack.c.bf16 %v428_v19, %v427_v12 }
 0x165   : > { %695 = vst [vmem:[%s918_s25 + $0x38] sm:$0xff] %v680_v37  }
 0x166 PF: > { %s13_s12 = sadd.s32 1, %s742_s12  }
 0x167   : > { %p10_p4 = scmp.ge.s32.totalorder %s13_s12, 4  }
 0x169   :  { %12 = sbr.rel (!%p10_p4) target bundleno = 1 (0x1), region = 62 }

// kernel: xlnet_finetune_forward.10
= control target key start
LH: loop header
LB: loop body
LE: loop exit
PB: predicated region body
PF: predicated region fallthrough
CT: control target
= control target key end

     0   :  { %s1112_s12 = smov 0   ;;  %s1314_s0 = inlined_call_operand.vmem [shape: bf16[256,128], index: 0, kind: input, shape index: {}]   ;;  %s1315_s1 = inlined_call_operand.vmem [shape: bf16[128,384], index: 1, kind: input, shape index: {}]   ;;  %s1316_s2 = inlined_call_operand.vmem [shape: f32[1,384], index: 2, kind: input, shape index: {}]   ;;  %s1317_s3 = inlined_call_operand.vmem [shape: bf16[256,384], index: 3, kind: output, shape index: {}]  }
   0x1 LB: > { %s878_s13 = sadd.s32 4294967295, %s1089_s12   ;;  %p882_p0 = scmp.ge.s32.totalorder %s1089_s12, 1  ;;  %s1089_s12 = sphi %s1112_s12, %s13_s12  }
   0x2   : > { %p138_p1 = scmp.lt.s32.totalorder %s1089_s12, 3 }
   0x4   : > { %p139_p2 = pnand %p882_p0, %p138_p1 }
   0x5   : > { %s883_s16 = sshll.u32 (!%p139_p2), %s878_s13, 4 }
   0x6   : > { %142 = sbr.rel (%p139_p2) target bundleno = 304 (0x130), region = 32  ;;  %p164_p3 = scmp.lt.s32.totalorder (!%p139_p2), %s883_s16, 31 }
   0xb   : > { %v1043_v0 = vld [vmem:[%s1315_s1 + $0xac] ss:$12 sps:$4 sm:$0xff]   ;;  %v1045_v1 = vld [vmem:[%s1315_s1 + $0xa8] ss:$12 sps:$4 sm:$0xff]   ;;  %v1091_v2 = vmov 0   ;;  %s1319_s16 = smov (!%p164_p3, %s883_s16), 31  ;;  %v227_v33 = vlaneseq }
   0xc   : > { %450 = vmatprep.mubr.bf16.mxu0 %v1091_v2  ;;  %418 = vmatprep.subr.bf16.mxu0 %v1043_v0  ;;  %v1046_v3 = vld [vmem:[%s1315_s1 + $0x94] ss:$12 sps:$4 sm:$0xff]   ;;  %v1048_v4 = vld [vmem:[%s1315_s1 + $0x90] ss:$12 sps:$4 sm:$0xff]   ;;  %v1051_v6 = vld [vmem:[%s1315_s1 + $0x78] ss:$12 sps:$4 sm:$0xff]  }
   0xd   : > { %419 = vmatpush1.bf16.msra.mxu0 %v1045_v1  ;;  %v1049_v5 = vld [vmem:[%s1315_s1 + $0x7c] ss:$12 sps:$4 sm:$0xff]   ;;  %s884_s27 = sshll.u32 %s1319_s16, 2  ;;  %v1052_v7 = vld [vmem:[%s1315_s1 + $0x64] ss:$12 sps:$4 sm:$0xff]   ;;  %v228_v34 = vshrl.u32 %v227_v33, 7 }
   0xe   : > { %420 = vmatprep.subr.bf16.mxu0 %v1046_v3  ;;  %v1064_v8 = vld [vmem:[%s1315_s1 + $0xb0] ss:$12 sps:$4 sm:$0xff]   ;;  %s1151_s7 = scalar_lea.vmem %s1314_s0, %s884_s27  ;;  %v1054_v9 = vld [vmem:[%s1315_s1 + $0x60] ss:$12 sps:$4 sm:$0xff]   ;;  %v1068_v11 = vld [vmem:[%s1315_s1 + $0x98] ss:$12 sps:$4 sm:$0xff]  }
   0xf   : > { %v1055_v10 = vld [vmem:[%s1315_s1 + $0x4c] ss:$12 sps:$4 sm:$0xff]   ;;  %1001 = vmatprep.subr.bf16.mxu1 %v1064_v8  ;;  %v1069_v12 = vld [vmem:[%s1151_s7] sm:$0xff]   ;;  %v1057_v14 = vld [vmem:[%s1315_s1 + $0x48] ss:$12 sps:$4 sm:$0xff]   ;;  %v229_v35 = vsub.s32 0, %v228_v34 }
  0x10   : > { %1002 = vmatpush3.bf16.msra.mxu1 %v1064_v8  ;;  %v1070_v13 = vld [vmem:[%s1315_s1 + $0x80] ss:$12 sps:$4 sm:$0xff]   ;;  %1017 = vmatprep.mubr.bf16.mxu1 %v1069_v12  ;;  %v1071_v16 = vld [vmem:[%s1315_s1 + $0x68] ss:$12 sps:$4 sm:$0xff]   ;;  %v1060_v17 = vld [vmem:[%s1315_s1 + $0x30] ss:$12 sps:$4 sm:$0xff]  }
  0x11   : > { %421 = vmatpush1.bf16.msra.mxu0 %v1048_v4  ;;  %1003 = vmatprep.subr.bf16.mxu1 %v1068_v11  ;;  %v1058_v15 = vld [vmem:[%s1315_s1 + $0x34] ss:$12 sps:$4 sm:$0xff]   ;;  %v1061_v18 = vld [vmem:[%s1315_s1 + $0x1c] ss:$12 sps:$4 sm:$0xff]   ;;  %v1063_v20 = vld [vmem:[%s1315_s1 + $0x18] ss:$12 sps:$4 sm:$0xff]  }
  0x12   : > { %422 = vmatprep.subr.bf16.mxu0 %v1049_v5  ;;  %v1073_v19 = vld [vmem:[%s1315_s1 + $0x50] ss:$12 sps:$4 sm:$0xff]   ;;  %v1074_v22 = vld [vmem:[%s1315_s1 + $0x38] ss:$12 sps:$4 sm:$0xff]   ;;  %v1067_v23 = vld [vmem:[%s1315_s1] ss:$12 sps:$4 sm:$0xff]  }
  0x13   : > { %v1065_v21 = vld [vmem:[%s1315_s1 + $0x4] ss:$12 sps:$4 sm:$0xff]   ;;  %v1076_v24 = vld [vmem:[%s1315_s1 + $0x20] ss:$12 sps:$4 sm:$0xff]   ;;  %v1077_v25 = vld [vmem:[%s1315_s1 + $0x8] ss:$12 sps:$4 sm:$0xff]  }
  0x14   : > { %1004 = vmatpush3.bf16.msra.mxu1 %v1068_v11  ;;  %v1072_v26 = vld [vmem:[%s1151_s7 + $0x8] sm:$0xff]   ;;  %v1075_v27 = vld [vmem:[%s1151_s7 + $0x10] sm:$0xff]   ;;  %v1078_v28 = vld [vmem:[%s1151_s7 + $0x18] sm:$0xff]   ;;  %v233_v36 = vsub.s32 1, %v228_v34  ;;  %v237_v44 = vsub.s32 2, %v228_v34 }
  0x15   : > { %423 = vmatpush1.bf16.msra.mxu0 %v1051_v6  ;;  %1005 = vmatprep.subr.bf16.mxu1 %v1070_v13  ;;  %v1079_v29 = vld [vmem:[%s1151_s7 + $0x20] sm:$0xff]   ;;  %v1081_v30 = vld [vmem:[%s1151_s7 + $0x30] sm:$0xff]   ;;  %v1080_v31 = vld [vmem:[%s1151_s7 + $0x28] sm:$0xff]  }
  0x16   : > { %424 = vmatprep.subr.bf16.mxu0 %v1052_v7  ;;  %v1082_v32 = vld [vmem:[%s1151_s7 + $0x38] sm:$0xff]   ;;  %v225_v37 = vld [vmem:[%s1316_s2] sm:$0x7]  ;;  %s1033_s7 = smul.u32 12, %s1319_s16 }
  0x17   : > { %v1219_v38 = vrot.slane %v225_v37, %v229_v35  ;;  %v1221_v39 = vrot.slane %v225_v37, %v233_v36  ;;  %v1234_v50 = vrot.slane %v225_v37, %v237_v44 }
  0x18   : > { %1006 = vmatpush3.bf16.msra.mxu1 %v1070_v13  ;;  %s1229_s22 = scalar_lea.vmem %s1317_s3, %s1033_s7 }
  0x19   : > { %425 = vmatpush1.bf16.msra.mxu0 %v1054_v9  ;;  %1007 = vmatprep.subr.bf16.mxu1 %v1071_v16 }
  0x1a   : > { %426 = vmatprep.subr.bf16.mxu0 %v1055_v10 }
  0x1c   : > { %1008 = vmatpush3.bf16.msra.mxu1 %v1071_v16 }
  0x1d   : > { %427 = vmatpush1.bf16.msra.mxu0 %v1057_v14  ;;  %1009 = vmatprep.subr.bf16.mxu1 %v1073_v19 }
  0x1e   : > { %428 = vmatprep.subr.bf16.mxu0 %v1058_v15 }
  0x20   : > { %1010 = vmatpush3.bf16.msra.mxu1 %v1073_v19 }
  0x21   : > { %429 = vmatpush1.bf16.msra.mxu0 %v1060_v17  ;;  %1011 = vmatprep.subr.bf16.mxu1 %v1074_v22 }
  0x22   : > { %430 = vmatprep.subr.bf16.mxu0 %v1061_v18 }
  0x24   : > { %1012 = vmatpush3.bf16.msra.mxu1 %v1074_v22 }
  0x25   : > { %431 = vmatpush1.bf16.msra.mxu0 %v1063_v20  ;;  %1013 = vmatprep.subr.bf16.mxu1 %v1076_v24 }
  0x26   : > { %432 = vmatprep.subr.bf16.mxu0 %v1065_v21 }
  0x28   : > { %1014 = vmatpush3.bf16.msra.mxu1 %v1076_v24 }
  0x29   : > { %433 = vmatpush1.bf16.msra.mxu0 %v1067_v23  ;;  %1015 = vmatprep.subr.bf16.mxu1 %v1077_v25 }
  0x2c   : > { %451 = vmatmul.mubr.bf16.vlgmr.msra.gmra.mxu0 %v1069_v12  ;;  %1016 = vmatpush3.bf16.msra.mxu1 %v1077_v25 }
  0x2d   : > { %460 = vmatprep.mubr.bf16.mxu0 %v1091_v2 }
  0x2f   : > { %1018 = vmatmul.mubr.bf16.vlgmr.msra.gmra.mxu1 %v1072_v26 }
  0x30   : > { %1021 = vmatprep.mubr.bf16.mxu1 %v1075_v27 }
  0x34   : > { %461 = vmatmul.mubr.bf16.gmra.mxu0 %v1072_v26 }
  0x35   : > { %470 = vmatprep.mubr.bf16.mxu0 %v1091_v2 }
  0x37   : > { %1022 = vmatmul.mubr.bf16.gmra.mxu1 %v1078_v28 }
  0x38   : > { %1025 = vmatprep.mubr.bf16.mxu1 %v1079_v29 }
  0x3c   : > { %471 = vmatmul.mubr.bf16.gmra.mxu0 %v1075_v27 }
  0x3d   : > { %480 = vmatprep.mubr.bf16.mxu0 %v1091_v2 }
  0x3f   : > { %1026 = vmatmul.mubr.bf16.gmra.mxu1 %v1080_v31 }
  0x40   : > { %1029 = vmatprep.mubr.bf16.mxu1 %v1081_v30 }
  0x44   : > { %481 = vmatmul.mubr.bf16.gmra.mxu0 %v1078_v28 }
  0x45   : > { %490 = vmatprep.mubr.bf16.mxu0 %v1091_v2 }
  0x47   : > { %1030 = vmatmul.mubr.bf16.gmra.mxu1 %v1082_v32 }
  0x4c   : > { %491 = vmatmul.mubr.bf16.gmra.mxu0 %v1079_v29 }
  0x4d   : > { %500 = vmatprep.mubr.bf16.mxu0 %v1091_v2 }
  0x54   : > { %501 = vmatmul.mubr.bf16.gmra.mxu0 %v1080_v31 }
  0x55   : > { %510 = vmatprep.mubr.bf16.mxu0 %v1091_v2 }
  0x5c   : > { %511 = vmatmul.mubr.bf16.gmra.mxu0 %v1081_v30 }
  0x5d   : > { %520 = vmatprep.mubr.bf16.mxu0 %v1091_v2 }
  0x64   : > { %521 = vmatmul.mubr.bf16.gmra.mxu0 %v1082_v32 }
  0xec   : > { %v452_v40 = vpop.f32.mrf.mxu0 }
  0xed   : > { %v453_v42 = vadd.f32 %v452_v40, %v1219_v38 }
  0xee   : > { %v454_v41 = vpop.f32.mrf.mxu0 }
  0xef   : > { %v455_v43 = vadd.f32 %v454_v41, %v1221_v39  ;;  %v1019_v54 = vpop.f32.mrf.mxu1 }
  0xf0   : > { %v456_v45 = vpop.f32.mrf.mxu0  ;;  %v574_v57 = vadd.f32 %v1019_v54, %v1234_v50 }
  0xf1   : > { %v953_v46 = vpack.c.bf16 %v455_v43, %v453_v42  ;;  %v457_v48 = vadd.f32 %v456_v45, %v1219_v38  ;;  %v565_v59 = vpop.f32.mrf.mxu1 }
  0xf2   : > { %v458_v47 = vpop.f32.mrf.mxu0  ;;  %v958_v61 = vpack.c.bf16 %v574_v57, %v574_v57  ;;  %v566_v62 = vadd.f32 %v565_v59, %v1234_v50 }
  0xf3   : > { %788 = vst [vmem:[%s1229_s22] sm:$0xff] %v953_v46  ;;  %v459_v49 = vadd.f32 %v458_v47, %v1221_v39  ;;  %v1020_v0 = vpop.f32.mrf.mxu1 }
  0xf4   : > { %v462_v51 = vpop.f32.mrf.mxu0  ;;  %793 = vst [vmem:[%s1229_s22 + $0x20] sm:$0xf] %v958_v61  ;;  %v954_v3 = vpack.c.bf16 %v566_v62, %v566_v62  ;;  %v577_v4 = vadd.f32 %v1020_v0, %v1234_v50 }
  0xf5   : > { %v955_v52 = vpack.c.bf16 %v459_v49, %v457_v48  ;;  %v463_v55 = vadd.f32 %v462_v51, %v1219_v38  ;;  %v568_v6 = vpop.f32.mrf.mxu1 }
  0xf6   : > { %v464_v53 = vpop.f32.mrf.mxu0  ;;  %789 = vst [vmem:[%s1229_s22 + $0x8] sm:$0xf] %v954_v3  ;;  %v960_v8 = vpack.c.bf16 %v577_v4, %v577_v4  ;;  %v569_v9 = vadd.f32 %v568_v6, %v1234_v50 }
  0xf7   : > { %790 = vst [vmem:[%s1229_s22 + $0xc] sm:$0xff] %v955_v52  ;;  %v465_v56 = vadd.f32 %v464_v53, %v1221_v39  ;;  %v1023_v11 = vpop.f32.mrf.mxu1 }
  0xf8   : > { %v466_v58 = vpop.f32.mrf.mxu0  ;;  %795 = vst [vmem:[%s1229_s22 + $0x2c] sm:$0xf] %v960_v8  ;;  %v956_v14 = vpack.c.bf16 %v569_v9, %v569_v9  ;;  %v590_v15 = vadd.f32 %v1023_v11, %v1234_v50 }
  0xf9   : > { %v957_v60 = vpack.c.bf16 %v465_v56, %v463_v55  ;;  %v467_v1 = vadd.f32 %v466_v58, %v1219_v38  ;;  %v581_v17 = vpop.f32.mrf.mxu1 }
  0xfa   : > { %v468_v63 = vpop.f32.mrf.mxu0  ;;  %791 = vst [vmem:[%s1229_s22 + $0x14] sm:$0xf] %v956_v14  ;;  %v966_v19 = vpack.c.bf16 %v590_v15, %v590_v15  ;;  %v582_v20 = vadd.f32 %v581_v17, %v1234_v50 }
  0xfb   : > { %792 = vst [vmem:[%s1229_s22 + $0x18] sm:$0xff] %v957_v60  ;;  %v469_v2 = vadd.f32 %v468_v63, %v1221_v39  ;;  %v1024_v22 = vpop.f32.mrf.mxu1 }
  0xfc   : > { %v472_v5 = vpop.f32.mrf.mxu0  ;;  %801 = vst [vmem:[%s1229_s22 + $0x50] sm:$0xf] %v966_v19  ;;  %v962_v25 = vpack.c.bf16 %v582_v20, %v582_v20  ;;  %v593_v26 = vadd.f32 %v1024_v22, %v1234_v50 }
  0xfd   : > { %v959_v7 = vpack.c.bf16 %v469_v2, %v467_v1  ;;  %v473_v12 = vadd.f32 %v472_v5, %v1219_v38  ;;  %v584_v28 = vpop.f32.mrf.mxu1 }
  0xfe   : > { %v474_v10 = vpop.f32.mrf.mxu0  ;;  %797 = vst [vmem:[%s1229_s22 + $0x38] sm:$0xf] %v962_v25  ;;  %v968_v30 = vpack.c.bf16 %v593_v26, %v593_v26  ;;  %v585_v31 = vadd.f32 %v584_v28, %v1234_v50 }
  0xff   : > { %794 = vst [vmem:[%s1229_s22 + $0x24] sm:$0xff] %v959_v7  ;;  %v475_v13 = vadd.f32 %v474_v10, %v1221_v39  ;;  %v1027_v33 = vpop.f32.mrf.mxu1 }
 0x100   : > { %v476_v16 = vpop.f32.mrf.mxu0  ;;  %803 = vst [vmem:[%s1229_s22 + $0x5c] sm:$0xf] %v968_v30  ;;  %v964_v36 = vpack.c.bf16 %v585_v31, %v585_v31  ;;  %v606_v37 = vadd.f32 %v1027_v33, %v1234_v50 }
 0x101   : > { %v961_v18 = vpack.c.bf16 %v475_v13, %v473_v12  ;;  %v477_v23 = vadd.f32 %v476_v16, %v1219_v38  ;;  %v597_v41 = vpop.f32.mrf.mxu1 }
 0x102   : > { %v478_v21 = vpop.f32.mrf.mxu0  ;;  %799 = vst [vmem:[%s1229_s22 + $0x44] sm:$0xf] %v964_v36  ;;  %v974_v43 = vpack.c.bf16 %v606_v37, %v606_v37  ;;  %v598_v44 = vadd.f32 %v597_v41, %v1234_v50 }
 0x103   : > { %796 = vst [vmem:[%s1229_s22 + $0x30] sm:$0xff] %v961_v18  ;;  %v479_v24 = vadd.f32 %v478_v21, %v1221_v39  ;;  %v1028_v46 = vpop.f32.mrf.mxu1 }
 0x104   : > { %v482_v27 = vpop.f32.mrf.mxu0  ;;  %809 = vst [vmem:[%s1229_s22 + $0x80] sm:$0xf] %v974_v43  ;;  %v970_v49 = vpack.c.bf16 %v598_v44, %v598_v44  ;;  %v609_v51 = vadd.f32 %v1028_v46, %v1234_v50 }
 0x105   : > { %v963_v29 = vpack.c.bf16 %v479_v24, %v477_v23  ;;  %v483_v34 = vadd.f32 %v482_v27, %v1219_v38  ;;  %v600_v53 = vpop.f32.mrf.mxu1 }
 0x106   : > { %v484_v32 = vpop.f32.mrf.mxu0  ;;  %805 = vst [vmem:[%s1229_s22 + $0x68] sm:$0xf] %v970_v49  ;;  %v976_v55 = vpack.c.bf16 %v609_v51, %v609_v51  ;;  %v601_v56 = vadd.f32 %v600_v53, %v1234_v50 }
 0x107   : > { %798 = vst [vmem:[%s1229_s22 + $0x3c] sm:$0xff] %v963_v29  ;;  %v485_v35 = vadd.f32 %v484_v32, %v1221_v39  ;;  %v1031_v58 = vpop.f32.mrf.mxu1 }
 0x108   : > { %v486_v40 = vpop.f32.mrf.mxu0  ;;  %811 = vst [vmem:[%s1229_s22 + $0x8c] sm:$0xf] %v976_v55  ;;  %v972_v61 = vpack.c.bf16 %v601_v56, %v601_v56  ;;  %v622_v62 = vadd.f32 %v1031_v58, %v1234_v50 }
 0x109   : > { %v965_v42 = vpack.c.bf16 %v485_v35, %v483_v34  ;;  %v487_v47 = vadd.f32 %v486_v40, %v1219_v38  ;;  %v613_v0 = vpop.f32.mrf.mxu1 }
 0x10a   : > { %v488_v45 = vpop.f32.mrf.mxu0  ;;  %807 = vst [vmem:[%s1229_s22 + $0x74] sm:$0xf] %v972_v61  ;;  %v982_v2 = vpack.c.bf16 %v622_v62, %v622_v62  ;;  %v614_v3 = vadd.f32 %v613_v0, %v1234_v50 }
 0x10b   : > { %800 = vst [vmem:[%s1229_s22 + $0x48] sm:$0xff] %v965_v42  ;;  %v489_v48 = vadd.f32 %v488_v45, %v1221_v39  ;;  %v1032_v5 = vpop.f32.mrf.mxu1 }
 0x10c   : > { %v492_v52 = vpop.f32.mrf.mxu0  ;;  %817 = vst [vmem:[%s1229_s22 + $0xb0] sm:$0xf] %v982_v2  ;;  %v978_v8 = vpack.c.bf16 %v614_v3, %v614_v3  ;;  %v625_v9 = vadd.f32 %v1032_v5, %v1234_v50 }
 0x10d   : > { %v967_v54 = vpack.c.bf16 %v489_v48, %v487_v47  ;;  %v493_v59 = vadd.f32 %v492_v52, %v1219_v38  ;;  %v616_v11 = vpop.f32.mrf.mxu1 }
 0x10e   : > { %v494_v57 = vpop.f32.mrf.mxu0  ;;  %813 = vst [vmem:[%s1229_s22 + $0x98] sm:$0xf] %v978_v8  ;;  %v984_v13 = vpack.c.bf16 %v625_v9, %v625_v9  ;;  %v617_v14 = vadd.f32 %v616_v11, %v1234_v50 }
 0x10f   : > { %802 = vst [vmem:[%s1229_s22 + $0x54] sm:$0xff] %v967_v54  ;;  %v495_v60 = vadd.f32 %v494_v57, %v1221_v39 }
 0x110   : > { %v496_v63 = vpop.f32.mrf.mxu0  ;;  %819 = vst [vmem:[%s1229_s22 + $0xbc] sm:$0xf] %v984_v13  ;;  %v980_v18 = vpack.c.bf16 %v617_v14, %v617_v14 }
 0x111   : > { %v969_v1 = vpack.c.bf16 %v495_v60, %v493_v59  ;;  %v497_v6 = vadd.f32 %v496_v63, %v1219_v38 }
 0x112   : > { %v498_v4 = vpop.f32.mrf.mxu0  ;;  %815 = vst [vmem:[%s1229_s22 + $0xa4] sm:$0xf] %v980_v18 }
 0x113   : > { %804 = vst [vmem:[%s1229_s22 + $0x60] sm:$0xff] %v969_v1  ;;  %v499_v7 = vadd.f32 %v498_v4, %v1221_v39 }
 0x114   : > { %v502_v10 = vpop.f32.mrf.mxu0 }
 0x115   : > { %v971_v12 = vpack.c.bf16 %v499_v7, %v497_v6  ;;  %v503_v16 = vadd.f32 %v502_v10, %v1219_v38 }
 0x116   : > { %v504_v15 = vpop.f32.mrf.mxu0 }
 0x117   : > { %806 = vst [vmem:[%s1229_s22 + $0x6c] sm:$0xff] %v971_v12  ;;  %v505_v17 = vadd.f32 %v504_v15, %v1221_v39 }
 0x118   : > { %v506_v19 = vpop.f32.mrf.mxu0 }
 0x119   : > { %v973_v20 = vpack.c.bf16 %v505_v17, %v503_v16  ;;  %v507_v22 = vadd.f32 %v506_v19, %v1219_v38 }
 0x11a   : > { %v508_v21 = vpop.f32.mrf.mxu0 }
 0x11b   : > { %808 = vst [vmem:[%s1229_s22 + $0x78] sm:$0xff] %v973_v20  ;;  %v509_v23 = vadd.f32 %v508_v21, %v1221_v39 }
 0x11c   : > { %v512_v50 = vpop.f32.mrf.mxu0 }
 0x11d   : > { %v975_v24 = vpack.c.bf16 %v509_v23, %v507_v22  ;;  %v513_v26 = vadd.f32 %v512_v50, %v1219_v38 }
 0x11e   : > { %v514_v25 = vpop.f32.mrf.mxu0 }
 0x11f   : > { %810 = vst [vmem:[%s1229_s22 + $0x84] sm:$0xff] %v975_v24  ;;  %v515_v27 = vadd.f32 %v514_v25, %v1221_v39 }
 0x120   : > { %v516_v28 = vpop.f32.mrf.mxu0 }
 0x121   : > { %v977_v29 = vpack.c.bf16 %v515_v27, %v513_v26  ;;  %v517_v31 = vadd.f32 %v516_v28, %v1219_v38 }
 0x122   : > { %v518_v30 = vpop.f32.mrf.mxu0 }
 0x123   : > { %812 = vst [vmem:[%s1229_s22 + $0x90] sm:$0xff] %v977_v29  ;;  %v519_v32 = vadd.f32 %v518_v30, %v1221_v39 }
 0x124   : > { %v522_v33 = vpop.f32.mrf.mxu0 }
 0x125   : > { %v979_v34 = vpack.c.bf16 %v519_v32, %v517_v31  ;;  %v523_v36 = vadd.f32 %v522_v33, %v1219_v38 }
 0x126   : > { %v524_v35 = vpop.f32.mrf.mxu0 }
 0x127   : > { %814 = vst [vmem:[%s1229_s22 + $0x9c] sm:$0xff] %v979_v34  ;;  %v525_v37 = vadd.f32 %v524_v35, %v1221_v39 }
 0x128   : > { %v526_v40 = vpop.f32.mrf.mxu0 }
 0x129   : > { %v981_v41 = vpack.c.bf16 %v525_v37, %v523_v36  ;;  %v527_v43 = vadd.f32 %v526_v40, %v1219_v38 }
 0x12a   : > { %v528_v42 = vpop.f32.mrf.mxu0 }
 0x12b   : > { %816 = vst [vmem:[%s1229_s22 + $0xa8] sm:$0xff] %v981_v41  ;;  %v529_v44 = vadd.f32 %v528_v42, %v1221_v39 }
 0x12d   : > { %v983_v45 = vpack.c.bf16 %v529_v44, %v527_v43 }
 0x12f   : > { %818 = vst [vmem:[%s1229_s22 + $0xb4] sm:$0xff] %v983_v45 }
 0x130 PF: > { %s13_s12 = sadd.s32 1, %s1089_s12  }
 0x131   : > { %p10_p4 = scmp.ge.s32.totalorder %s13_s12, 4  }
 0x133   :  { %12 = sbr.rel (!%p10_p4) target bundleno = 1 (0x1), region = 62 }

// kernel: xlnet_finetune_forward.16
= control target key start
LH: loop header
LB: loop body
LE: loop exit
PB: predicated region body
PF: predicated region fallthrough
CT: control target
= control target key end

     0   :  { %8 = vsyncpa [#allocation3], 0  ;;  %s1250_s0 = inlined_call_operand.vmem [shape: bf16[256,128], index: 0, kind: input, shape index: {}]   ;;  %s1251_s1 = inlined_call_operand.vmem [shape: bf16[512,128], index: 1, kind: input, shape index: {}]   ;;  %s1252_s2 = inlined_call_operand.vmem [shape: f32[1,512], index: 2, kind: input, shape index: {}]   ;;  %s1253_s3 = inlined_call_operand.hbm [shape: f32[256,512], index: 3, kind: output, shape index: {}]  }
   0x1   :  { %10 = vsyncpa [#allocation3 + $0x1], 0  ;;  %s999_s12 = smov 0   ;;  %s1001_s13 = smov 0  }
   0x2   :  { %s1003_s14 = smov 0   ;;  %s1005_s15 = smov 0  }
   0x3   :  { %s1007_s16 = smov 0   ;;  %s1009_s17 = smov 0  }
   0x4   :  { %s1011_s18 = smov 0   ;;  %s1013_s19 = smov 0  }
   0x5 LB: > { %s692_s20 = sadd.s32 4294967295, %s973_s19   ;;  %s693_s21 = sadd.s32 4294967294, %s973_s19   ;;  %s973_s19 = sphi %s1013_s19, %s16_s19   ;;  %s969_s18 = sphi %s1011_s18, %s1262_s18   ;;  %s965_s17 = sphi %s1009_s17, %s1261_s17   ;;  %s961_s16 = sphi %s1007_s16, %s1260_s16   ;;  %s957_s15 = sphi %s1005_s15, %s1259_s15   ;;  %s953_s14 = sphi %s1003_s14, %s1258_s14   ;;  %s949_s13 = sphi %s1001_s13, %s1257_s13   ;;  %s945_s12 = sphi %s999_s12, %s1256_s12  }
   0x6   : > { %s25_s22 = sadd.s32 1, %s965_s17  ;;  %s28_s23 = sadd.s32 1, %s969_s18 }
   0x7   : > { %p26_p0 = scmp.ge.s32.totalorder %s25_s22, 2  ;;  %p125_p1 = scmp.ne.s32.totalorder %s953_s14, %s949_s13 }
   0x8   : > { %p126_p2 = scmp.eq.s32.totalorder %s692_s20, 3  ;;  %p131_p5 = scmp.ne.s32.totalorder %s949_s13, %s945_s12 }
   0x9   : > { %s1264_s22 = smov (%p26_p0, %s25_s22), 0  ;;  %s1266_s23 = smov (!%p26_p0, %s28_s23), %s969_s18 }
   0xa   : > { %s111_s24 = ssub.s32 %s965_s17, %s1264_s22  ;;  %p1050_p3 = por %p126_p2, %p125_p1 }
   0xb   : > { %p30_p4 = scmp.ge.s32.totalorder %s1266_s23, 2  ;;  %p132_p6 = scmp.eq.s32.totalorder %s693_s21, 3 }
   0xc   : > { %p696_p7 = scmp.ge.s32.totalorder %s973_s19, 1  ;;  %p176_p9 = scmp.lt.s32.totalorder %s973_s19, 5 }
   0xd   : > { %s1268_s23 = smov (%p30_p4, %s1266_s23), 0  ;;  %p1059_p8 = por %p132_p6, %p131_p5 }
   0xe   : > { %s110_s27 = ssub.s32 %s969_s18, %s1268_s23  ;;  %s115_s28 = sadd.s32 1, %s953_s14 }
   0xf   : > { %s112_s29 = sor.u32 %s111_s24, %s110_s27  ;;  %p177_p10 = pnand %p696_p7, %p176_p9 }
  0x10   : > { %p113_p11 = scmp.eq.s32.totalorder %s112_s29, 0  ;;  %s700_s4 = sshll.u32 (!%p177_p10), %s957_s15, 5 }
  0x11   : > { %180 = sbr.rel (%p177_p10) target bundleno = 330 (0x14a), region = 32  ;;  %p216_p12 = scmp.lt.s32.totalorder (!%p177_p10), %s700_s4, 63 }
  0x12   : > { %s1068_s30 = scalar_select %p113_p11, %s953_s14, %s115_s28  }
  0x13   : > { %s698_s9 = sshll.u32 (!%p177_p10), %s961_s16, 4  ;;  %s1107_s24 = sshll.u32 (!%p177_p10), %s957_s15, 1 }
  0x14   : > { %p210_p13 = scmp.lt.s32.totalorder (!%p177_p10), %s698_s9, 31  ;;  %p222_p0 = scmp.lt.s32.totalorder (!%p177_p10), %s1107_s24, 3 }
  0x15   : > { %s734_s7 = sshll.u32 (!%p177_p10), %s961_s16, 6 }
  0x16   : > { %s1270_s4 = smov (!%p216_p12, %s700_s4), 63  ;;  %s1272_s9 = smov (!%p210_p13, %s698_s9), 31  ;;  %v279_v24 = vlaneseq }
  0x17   : > { %s701_s5 = sshll.u32 %s1270_s4, 2  ;;  %s699_s10 = sshll.u32 %s1272_s9, 2 }
  0x18   : > { %s1074_s8 = scalar_lea.vmem %s1251_s1, %s701_s5  ;;  %s1085_s21 = scalar_lea.vmem %s1250_s0, %s699_s10  ;;  %v280_v25 = vshrl.u32 %v279_v24, 7 }
  0x19   : > { %v857_v0 = vld [vmem:[%s1074_s8 + $0x78] sm:$0xff]   ;;  %v859_v2 = vld [vmem:[%s1074_s8 + $0x70] sm:$0xff]   ;;  %v861_v4 = vld [vmem:[%s1074_s8 + $0x68] sm:$0xff]   ;;  %s223_s27 = scalar_select %p222_p0, %s1107_s24, 3 }
  0x1a   : > { %v858_v1 = vld [vmem:[%s1074_s8 + $0x38] sm:$0xff]   ;;  %735 = vmatprep.subr.bf16.mxu0 %v857_v0  ;;  %767 = vmatprep.subr.bf16.mxu1 %v857_v0  ;;  %v860_v3 = vld [vmem:[%s1074_s8 + $0x30] sm:$0xff]   ;;  %v862_v5 = vld [vmem:[%s1074_s8 + $0x28] sm:$0xff]   ;;  %v281_v26 = vsub.s32 0, %v280_v25  ;;  %s206_s5 = sand.u32 1, %s949_s13   ;;  %v285_v28 = vsub.s32 1, %v280_v25 }
  0x1b   : > { %736 = vmatpush3.bf16.xpose.msra.mxu0 %v858_v1  ;;  %775 = vmatpush3.bf16.xpose.msra.mxu1 %v858_v1  ;;  %v863_v6 = vld [vmem:[%s1074_s8 + $0x60] sm:$0xff]   ;;  %v865_v10 = vld [vmem:[%s1074_s8 + $0x58] sm:$0xff]   ;;  %v867_v12 = vld [vmem:[%s1074_s8 + $0x50] sm:$0xff]   ;;  %s224_s4 = scalar_lea.vmem %s1252_s2, %s223_s27  ;;  %s697_s6 = sshll.u32 %s206_s5, 8 }
  0x1c   : > { %737 = vmatprep.subr.bf16.mxu0 %v859_v2  ;;  %768 = vmatprep.subr.bf16.mxu1 %v859_v2  ;;  %v873_v7 = vld [vmem:[%s1085_s21] sm:$0xff]   ;;  %v866_v11 = vld [vmem:[%s1074_s8 + $0x18] sm:$0xff]   ;;  %v868_v13 = vld [vmem:[%s1074_s8 + $0x10] sm:$0xff]   ;;  %s1123_s15 = scalar_lea.vmem [#allocation2], %s697_s6  ;;  %s975_s27 = smov [#allocation2]  }
  0x1d   : > { %v874_v8 = vld [vmem:[%s1085_s21 + $0x20] sm:$0xff]   ;;  %751 = vmatprep.mubr.bf16.mxu0 %v873_v7  ;;  %v869_v14 = vld [vmem:[%s1074_s8 + $0x48] sm:$0xff]   ;;  %v877_v20 = vld [vmem:[%s1085_s21 + $0x10] sm:$0xff]   ;;  %s595_s9 = sshll.u32 %s1123_s15, 4  ;;  %s885_s28 = sshll.u32 %s975_s27, 4  ;;  %s1189_s9 = int_to_ptr.vmem [resolvable:$true] %s595_s9  ;;  %s886_s28 = int_to_ptr.vmem [resolvable:$false] %s885_s28 }
  0x1e   : > { %759 = vmatprep.mubr.bf16.mxu1 %v874_v8  ;;  %v864_v9 = vld [vmem:[%s1074_s8 + $0x20] sm:$0xff]   ;;  %v870_v15 = vld [vmem:[%s1074_s8 + $0x8] sm:$0xff]   ;;  %v878_v21 = vld [vmem:[%s1085_s21 + $0x30] sm:$0xff]   ;;  %s887_s29 = scalar_lea.vmem %s886_s28, 8192  ;;  %p888_p5 = scmp.lt.s32.totalorder %s1189_s9, %s886_s28 }
  0x1f   : > { %v871_v16 = vld [vmem:[%s1074_s8 + $0x40] sm:$0xff]   ;;  %v875_v18 = vld [vmem:[%s1085_s21 + $0x8] sm:$0xff]   ;;  %v879_v22 = vld [vmem:[%s1085_s21 + $0x18] sm:$0xff]  }
  0x20   : > { %v872_v17 = vld [vmem:[%s1074_s8] sm:$0xff]   ;;  %v876_v19 = vld [vmem:[%s1085_s21 + $0x28] sm:$0xff]   ;;  %v880_v23 = vld [vmem:[%s1085_s21 + $0x38] sm:$0xff]   ;;  %s592_s8 = sadd.s32 %s734_s7, %s1107_s24  ;;  %s1199_s21 = scalar_lea.sflag [#allocation3], %s206_s5 }
  0x21   : > { %v277_v27 = vld [vmem:[%s224_s4] sm:$0x3]  ;;  %s731_s16 = sshll.u32 %s592_s8, 7  ;;  %s881_s24 = scalar_lea.vmem %s1189_s9, 4096 }
  0x22   : > { %v1117_v29 = vrot.slane %v277_v27, %v281_v26  ;;  %v1119_v30 = vrot.slane %v277_v27, %v285_v28  ;;  %s1187_s20 = scalar_lea.hbm %s1253_s3, %s731_s16  ;;  %p882_p1 = scmp.ne.s32.totalorder %s1189_s9, %s881_s24 }
  0x23   : > { %738 = vmatpush3.bf16.xpose.msra.mxu0 %v860_v3  ;;  %776 = vmatpush3.bf16.xpose.msra.mxu1 %v860_v3  ;;  %p889_p6 = scmp.lt.s32.totalorder %s887_s29, %s881_s24 }
  0x24   : > { %739 = vmatprep.subr.bf16.mxu0 %v861_v4  ;;  %769 = vmatprep.subr.bf16.mxu1 %v861_v4  ;;  %p883_p2 = pnand %p882_p1, %p1050_p3 }
  0x25   : > { %p890_p7 = por %p889_p6, %p888_p5 }
  0x26   : > { %p884_p4 = pneg %p883_p2 }
  0x28   : > { %p891_p9 = pnand %p890_p7, %p884_p4 }
  0x2b   : > { %740 = vmatpush3.bf16.xpose.msra.mxu0 %v862_v5  ;;  %777 = vmatpush3.bf16.xpose.msra.mxu1 %v862_v5 }
  0x2c   : > { %741 = vmatprep.subr.bf16.mxu0 %v863_v6  ;;  %770 = vmatprep.subr.bf16.mxu1 %v863_v6 }
  0x33   : > { %742 = vmatpush3.bf16.xpose.msra.mxu0 %v864_v9  ;;  %778 = vmatpush3.bf16.xpose.msra.mxu1 %v864_v9 }
  0x34   : > { %743 = vmatprep.subr.bf16.mxu0 %v865_v10  ;;  %771 = vmatprep.subr.bf16.mxu1 %v865_v10 }
  0x3b   : > { %744 = vmatpush3.bf16.xpose.msra.mxu0 %v866_v11  ;;  %779 = vmatpush3.bf16.xpose.msra.mxu1 %v866_v11 }
  0x3c   : > { %745 = vmatprep.subr.bf16.mxu0 %v867_v12  ;;  %772 = vmatprep.subr.bf16.mxu1 %v867_v12 }
  0x43   : > { %746 = vmatpush3.bf16.xpose.msra.mxu0 %v868_v13  ;;  %780 = vmatpush3.bf16.xpose.msra.mxu1 %v868_v13 }
  0x44   : > { %747 = vmatprep.subr.bf16.mxu0 %v869_v14  ;;  %773 = vmatprep.subr.bf16.mxu1 %v869_v14 }
  0x4b   : > { %748 = vmatpush3.bf16.xpose.msra.mxu0 %v870_v15  ;;  %781 = vmatpush3.bf16.xpose.msra.mxu1 %v870_v15 }
  0x4c   : > { %749 = vmatprep.subr.bf16.mxu0 %v871_v16  ;;  %774 = vmatprep.subr.bf16.mxu1 %v871_v16 }
  0x53   : > { %750 = vmatpush3.bf16.xpose.msra.mxu0 %v872_v17  ;;  %782 = vmatpush3.bf16.xpose.msra.mxu1 %v872_v17 }
  0x5a   : > { %752 = vmatmul.mubr.bf16.vlgmr.msra.gmra.mxu0 %v873_v7  ;;  %760 = vmatmul.mubr.bf16.vlgmr.msra.gmra.mxu1 %v874_v8 }
  0x5b   : > { %753 = vmatprep.mubr.bf16.mxu0 %v875_v18  ;;  %761 = vmatprep.mubr.bf16.mxu1 %v876_v19 }
  0x62   : > { %754 = vmatmul.mubr.bf16.gmra.mxu0 %v875_v18  ;;  %762 = vmatmul.mubr.bf16.gmra.mxu1 %v876_v19 }
  0x63   : > { %755 = vmatprep.mubr.bf16.mxu0 %v877_v20  ;;  %763 = vmatprep.mubr.bf16.mxu1 %v878_v21 }
  0x6a   : > { %756 = vmatmul.mubr.bf16.gmra.mxu0 %v877_v20  ;;  %764 = vmatmul.mubr.bf16.gmra.mxu1 %v878_v21 }
  0x6b   : > { %757 = vmatprep.mubr.bf16.mxu0 %v879_v22  ;;  %765 = vmatprep.mubr.bf16.mxu1 %v880_v23 }
  0x72   : > { %758 = vmatmul.mubr.bf16.gmra.mxu0 %v879_v22  ;;  %766 = vmatmul.mubr.bf16.gmra.mxu1 %v880_v23 }
 0x11a   : > { %v467_v31 = vpop.f32.mrf.mxu0  ;;  %v507_v32 = vpop.f32.mrf.mxu1 }
 0x11b   : > { %v468_v33 = vadd.f32 %v467_v31, %v1117_v29  ;;  %v508_v34 = vadd.f32 %v507_v32, %v1117_v29 }
 0x11c   : > { %v469_v35 = vpop.f32.mrf.mxu0  ;;  %v509_v36 = vpop.f32.mrf.mxu1 }
 0x11d   : > { %546 = vst [vmem:[%s1123_s15] sm:$0xff] %v468_v33  ;;  %562 = vst [vmem:[%s1123_s15 + $0x80] sm:$0xff] %v508_v34  ;;  %v470_v37 = vadd.f32 %v469_v35, %v1119_v30  ;;  %v510_v38 = vadd.f32 %v509_v36, %v1119_v30 }
 0x11e   : > { %v471_v39 = vpop.f32.mrf.mxu0  ;;  %v511_v40 = vpop.f32.mrf.mxu1 }
 0x11f   : > { %547 = vst [vmem:[%s1123_s15 + $0x8] sm:$0xff] %v470_v37  ;;  %563 = vst [vmem:[%s1123_s15 + $0x88] sm:$0xff] %v510_v38  ;;  %v472_v41 = vadd.f32 %v471_v39, %v1117_v29  ;;  %v512_v42 = vadd.f32 %v511_v40, %v1117_v29 }
 0x120   : > { %v473_v43 = vpop.f32.mrf.mxu0  ;;  %v513_v44 = vpop.f32.mrf.mxu1 }
 0x121   : > { %548 = vst [vmem:[%s1123_s15 + $0x10] sm:$0xff] %v472_v41  ;;  %564 = vst [vmem:[%s1123_s15 + $0x90] sm:$0xff] %v512_v42  ;;  %v474_v45 = vadd.f32 %v473_v43, %v1119_v30  ;;  %v514_v46 = vadd.f32 %v513_v44, %v1119_v30 }
 0x122   : > { %v477_v47 = vpop.f32.mrf.mxu0  ;;  %v517_v48 = vpop.f32.mrf.mxu1 }
 0x123   : > { %549 = vst [vmem:[%s1123_s15 + $0x18] sm:$0xff] %v474_v45  ;;  %565 = vst [vmem:[%s1123_s15 + $0x98] sm:$0xff] %v514_v46  ;;  %v478_v49 = vadd.f32 %v477_v47, %v1117_v29  ;;  %v518_v50 = vadd.f32 %v517_v48, %v1117_v29 }
 0x124   : > { %v479_v51 = vpop.f32.mrf.mxu0  ;;  %v519_v52 = vpop.f32.mrf.mxu1 }
 0x125   : > { %550 = vst [vmem:[%s1123_s15 + $0x20] sm:$0xff] %v478_v49  ;;  %566 = vst [vmem:[%s1123_s15 + $0xa0] sm:$0xff] %v518_v50  ;;  %v480_v53 = vadd.f32 %v479_v51, %v1119_v30  ;;  %v520_v54 = vadd.f32 %v519_v52, %v1119_v30 }
 0x126   : > { %v481_v55 = vpop.f32.mrf.mxu0  ;;  %v521_v56 = vpop.f32.mrf.mxu1 }
 0x127   : > { %551 = vst [vmem:[%s1123_s15 + $0x28] sm:$0xff] %v480_v53  ;;  %567 = vst [vmem:[%s1123_s15 + $0xa8] sm:$0xff] %v520_v54  ;;  %v482_v57 = vadd.f32 %v481_v55, %v1117_v29  ;;  %v522_v58 = vadd.f32 %v521_v56, %v1117_v29 }
 0x128   : > { %v483_v59 = vpop.f32.mrf.mxu0  ;;  %v523_v60 = vpop.f32.mrf.mxu1 }
 0x129   : > { %552 = vst [vmem:[%s1123_s15 + $0x30] sm:$0xff] %v482_v57  ;;  %568 = vst [vmem:[%s1123_s15 + $0xb0] sm:$0xff] %v522_v58  ;;  %v484_v61 = vadd.f32 %v483_v59, %v1119_v30  ;;  %v524_v62 = vadd.f32 %v523_v60, %v1119_v30 }
 0x12a   : > { %v487_v63 = vpop.f32.mrf.mxu0  ;;  %v527_v0 = vpop.f32.mrf.mxu1 }
 0x12b   : > { %553 = vst [vmem:[%s1123_s15 + $0x38] sm:$0xff] %v484_v61  ;;  %569 = vst [vmem:[%s1123_s15 + $0xb8] sm:$0xff] %v524_v62  ;;  %v488_v1 = vadd.f32 %v487_v63, %v1117_v29  ;;  %v528_v2 = vadd.f32 %v527_v0, %v1117_v29 }
 0x12c   : > { %v489_v3 = vpop.f32.mrf.mxu0  ;;  %v529_v4 = vpop.f32.mrf.mxu1 }
 0x12d   : > { %554 = vst [vmem:[%s1123_s15 + $0x40] sm:$0xff] %v488_v1  ;;  %570 = vst [vmem:[%s1123_s15 + $0xc0] sm:$0xff] %v528_v2  ;;  %v490_v5 = vadd.f32 %v489_v3, %v1119_v30  ;;  %v530_v6 = vadd.f32 %v529_v4, %v1119_v30 }
 0x12e   : > { %v491_v7 = vpop.f32.mrf.mxu0  ;;  %v531_v8 = vpop.f32.mrf.mxu1 }
 0x12f   : > { %555 = vst [vmem:[%s1123_s15 + $0x48] sm:$0xff] %v490_v5  ;;  %571 = vst [vmem:[%s1123_s15 + $0xc8] sm:$0xff] %v530_v6  ;;  %v492_v9 = vadd.f32 %v491_v7, %v1117_v29  ;;  %v532_v10 = vadd.f32 %v531_v8, %v1117_v29 }
 0x130   : > { %v493_v11 = vpop.f32.mrf.mxu0  ;;  %v533_v12 = vpop.f32.mrf.mxu1 }
 0x131   : > { %556 = vst [vmem:[%s1123_s15 + $0x50] sm:$0xff] %v492_v9  ;;  %572 = vst [vmem:[%s1123_s15 + $0xd0] sm:$0xff] %v532_v10  ;;  %v494_v13 = vadd.f32 %v493_v11, %v1119_v30  ;;  %v534_v14 = vadd.f32 %v533_v12, %v1119_v30 }
 0x132   : > { %v497_v15 = vpop.f32.mrf.mxu0  ;;  %v537_v16 = vpop.f32.mrf.mxu1 }
 0x133   : > { %557 = vst [vmem:[%s1123_s15 + $0x58] sm:$0xff] %v494_v13  ;;  %573 = vst [vmem:[%s1123_s15 + $0xd8] sm:$0xff] %v534_v14  ;;  %v498_v17 = vadd.f32 %v497_v15, %v1117_v29  ;;  %v538_v18 = vadd.f32 %v537_v16, %v1117_v29 }
 0x134   : > { %v499_v19 = vpop.f32.mrf.mxu0  ;;  %v539_v20 = vpop.f32.mrf.mxu1 }
 0x135   : > { %558 = vst [vmem:[%s1123_s15 + $0x60] sm:$0xff] %v498_v17  ;;  %574 = vst [vmem:[%s1123_s15 + $0xe0] sm:$0xff] %v538_v18  ;;  %v500_v21 = vadd.f32 %v499_v19, %v1119_v30  ;;  %v540_v22 = vadd.f32 %v539_v20, %v1119_v30 }
 0x136   : > { %v501_v23 = vpop.f32.mrf.mxu0  ;;  %v541_v24 = vpop.f32.mrf.mxu1 }
 0x137   : > { %559 = vst [vmem:[%s1123_s15 + $0x68] sm:$0xff] %v500_v21  ;;  %575 = vst [vmem:[%s1123_s15 + $0xe8] sm:$0xff] %v540_v22  ;;  %v502_v25 = vadd.f32 %v501_v23, %v1117_v29  ;;  %v542_v26 = vadd.f32 %v541_v24, %v1117_v29 }
 0x138   : > { %v503_v27 = vpop.f32.mrf.mxu0  ;;  %v543_v28 = vpop.f32.mrf.mxu1 }
 0x139   : > { %560 = vst [vmem:[%s1123_s15 + $0x70] sm:$0xff] %v502_v25  ;;  %576 = vst [vmem:[%s1123_s15 + $0xf0] sm:$0xff] %v542_v26  ;;  %v504_v31 = vadd.f32 %v503_v27, %v1119_v30  ;;  %v544_v32 = vadd.f32 %v543_v28, %v1119_v30 }
 0x13b   : > { %561 = vst [vmem:[%s1123_s15 + $0x78] sm:$0xff] %v504_v31  ;;  %577 = vst [vmem:[%s1123_s15 + $0xf8] sm:$0xff] %v544_v32 }
 0x13c   : > { %894 = shalt.err (!%p891_p9)
}
 0x13d   : > { %s895_s4 = scalar_lea.hbm %s1187_s20, 4096  ;;  %s899_s15 = scalar_lea.hbm %s1253_s3, 16384 }
 0x13e   : > { %p896_p10 = scmp.ne.s32.totalorder %s1187_s20, %s895_s4  ;;  %p900_p13 = scmp.lt.s32.totalorder %s1187_s20, %s1253_s3 }
 0x13f   : > { %p901_p0 = scmp.lt.s32.totalorder %s899_s15, %s895_s4 }
 0x140   : > { %p897_p11 = pnand %p896_p10, %p1050_p3 }
 0x141   : > { %p902_p1 = por %p901_p0, %p900_p13 }
 0x142   : > { %p898_p12 = pneg %p897_p11 }
 0x144   : > { %p903_p2 = pnand %p902_p1, %p898_p12 }
 0x146   : > { %906 = shalt.err (!%p903_p2)
}
 0x147   : > { %s976_s16 = smov 256   ;;  %s977_s10 = smov 512  }
 0x148   : > { %s978_s11 = smov 16  }
 0x149   : > { %783 = dma.vmem_to_hbm [thread:$0]  (%p1050_p3), %s1189_s9, 4096, %s1187_s20, %s1199_s21, %s976_s16, %s977_s10, %s978_s11  }
 0x14a PF: > { %p789_p4 = scmp.ge.s32.totalorder %s973_s19, 2  ;;  %s610_s24 = sand.u32 1, %s945_s12  }
 0x14b   : > { %s611_s27 = scalar_lea.sflag [#allocation3], %s610_s24 }
 0x14c   : > { %p786_p5 = pnand %p789_p4, %p1059_p8 }
 0x14e   : > { %p787_p6 = pneg %p786_p5 }
 0x150   : > { %940 = dma.done.wait (%p787_p6), %s611_s27, 4096  }
 0x151   : > { %942 = vsyncadd (%p787_p6), %s611_s27, 4294963200  ;;  %s16_s19 = sadd.s32 1, %s973_s19   ;;  %s1256_s12 = smov %s949_s13 }
 0x152   : > { %p13_p7 = scmp.ge.s32.totalorder %s16_s19, 6   ;;  %s1257_s13 = smov %s953_s14 }
 0x153   : > { %s1258_s14 = smov %s1068_s30  ;;  %s1259_s15 = smov %s965_s17 }
 0x154   : > { %s1260_s16 = smov %s969_s18  ;;  %s1261_s17 = smov %s1264_s22 }
 0x155   : > { %s1262_s18 = smov %s1268_s23  ;;  %15 = sbr.rel (!%p13_p7) target bundleno = 5 (0x5), region = 73 }
 0x15a   :  { %616 = vsyncpa [#allocation3], 1 }
 0x15b   :  { %618 = vsyncpa [#allocation3 + $0x1], 1 }

// kernel: xlnet_finetune_forward.11
= control target key start
LH: loop header
LB: loop body
LE: loop exit
PB: predicated region body
PF: predicated region fallthrough
CT: control target
= control target key end

     0   :  { %s3217_s30 = smov 0   ;;  %s3939_s0 = inlined_call_operand.vmem [shape: bf16[2,2,128,64], index: 0, kind: input, shape index: {}]   ;;  %s3940_s1 = inlined_call_operand.vmem [shape: bf16[2,2,128,64], index: 1, kind: input, shape index: {}]   ;;  %s3941_s2 = inlined_call_operand.vmem [shape: bf16[2,2,128,64], index: 2, kind: input, shape index: {}]   ;;  %s3942_s3 = inlined_call_operand.vmem [shape: f32[2,128,128], index: 3, kind: input, shape index: {}]   ;;  %s3943_s4 = inlined_call_operand.vmem [shape: bf16[2,128,128], index: 4, kind: input, shape index: {}]   ;;  %s3944_s5 = inlined_call_operand.vmem [shape: bf16[128,128], index: 5, kind: input, shape index: {}]   ;;  %s3945_s6 = inlined_call_operand.vmem [shape: f32[1,128], index: 6, kind: input, shape index: {}]   ;;  %s3946_s7 = inlined_call_operand.vmem [shape: f32[1,128], index: 7, kind: input, shape index: {}]   ;;  %s3947_s8 = inlined_call_operand.vmem [shape: f32[1,128], index: 8, kind: input, shape index: {}]   ;;  %s3948_s9 = inlined_call_operand.vmem [shape: bf16[2,128,128], index: 9, kind: output, shape index: {}]  }
   0x1 LB: > { %s2373_s10 = sadd.s32 4294967295, %s3165_s30   ;;  %p2377_p0 = scmp.ge.s32.totalorder %s3165_s30, 1  ;;  %s3165_s30 = sphi %s3217_s30, %s19_s30  }
   0x2   : > { %p327_p1 = scmp.lt.s32.totalorder %s3165_s30, 3 }
   0x4   : > { %p328_p2 = pnand %p2377_p0, %p327_p1 }
   0x5   : > { %p383_p3 = scmp.lt.s32.totalorder (!%p328_p2), %s2373_s10, 1 }
   0x6   : > { %331 = sbr.rel (%p328_p2) target bundleno = 1921 (0x781), region = 56 }
   0xb   : > { %s3950_s10 = smov (!%p383_p3, %s2373_s10), 1  ;;  %vm558_vm0 = vcmask 523264  }
   0xc   : > { %s3228_s11 = sshll.u32 %s3950_s10, 7  ;;  %s2551_s21 = sshll.u32 %s3950_s10, 6 }
   0xd   : > { %s3234_s14 = scalar_lea.vmem %s3940_s1, %s3228_s11  ;;  %s3245_s17 = scalar_lea.vmem %s3939_s0, %s3228_s11 }
   0xe   : > { %v2943_v0 = vld [vmem:[%s3234_s14 + $0x38] sm:$0xff]   ;;  %v2944_v1 = vld [vmem:[%s3234_s14 + $0x30] sm:$0xff]   ;;  %v2945_v3 = vld [vmem:[%s3234_s14 + $0x28] sm:$0xff]   ;;  %s3286_s20 = scalar_lea.vmem %s3942_s3, %s3228_s11  ;;  %s3404_s23 = scalar_lea.vmem %s3941_s2, %s3228_s11 }
   0xf   : > { %2919 = vmatprep.subr.msk.bf16.mxu0 %vm558_vm0, %v2943_v0  ;;  %v605_v2 = vsel %vm558_vm0, %v2943_v0, 0  ;;  %v602_v4 = vsel %vm558_vm0, %v2944_v1, 0  ;;  %v2951_v5 = vld [vmem:[%s3245_s17] sm:$0xff]   ;;  %v599_v7 = vsel %vm558_vm0, %v2945_v3, 0  ;;  %v2947_v9 = vld [vmem:[%s3234_s14 + $0x18] sm:$0xff]   ;;  %v2948_v11 = vld [vmem:[%s3234_s14 + $0x10] sm:$0xff]   ;;  %s3704_s24 = scalar_lea.vmem %s3943_s4, %s2551_s21 }
  0x10   : > { %2744 = vmatpush3.bf16.xpose.msra.mxu0 %v605_v2  ;;  %2759 = vmatprep.mubr.msk.bf16.mxu0 %vm558_vm0, %v2951_v5  ;;  %v2946_v6 = vld [vmem:[%s3234_s14 + $0x20] sm:$0xff]   ;;  %v593_v10 = vsel %vm558_vm0, %v2947_v9, 0  ;;  %v590_v12 = vsel %vm558_vm0, %v2948_v11, 0  ;;  %v2949_v13 = vld [vmem:[%s3234_s14 + $0x8] sm:$0xff]   ;;  %v2953_v18 = vld [vmem:[%s3245_s17 + $0x10] sm:$0xff]  }
  0x11   : > { %2920 = vmatprep.subr.msk.bf16.mxu0 %vm558_vm0, %v2944_v1  ;;  %v596_v8 = vsel %vm558_vm0, %v2946_v6, 0  ;;  %v587_v14 = vsel %vm558_vm0, %v2949_v13, 0  ;;  %v2950_v15 = vld [vmem:[%s3234_s14] sm:$0xff]   ;;  %v2952_v17 = vld [vmem:[%s3245_s17 + $0x8] sm:$0xff]   ;;  %v2954_v19 = vld [vmem:[%s3245_s17 + $0x18] sm:$0xff]  }
  0x12   : > { %v584_v16 = vsel %vm558_vm0, %v2950_v15, 0  ;;  %v2955_v20 = vld [vmem:[%s3245_s17 + $0x20] sm:$0xff]   ;;  %v2956_v21 = vld [vmem:[%s3245_s17 + $0x28] sm:$0xff]   ;;  %v2957_v22 = vld [vmem:[%s3245_s17 + $0x30] sm:$0xff]  }
  0x13   : > { %v2958_v23 = vld [vmem:[%s3245_s17 + $0x38] sm:$0xff]   ;;  %v3289_v24 = vld [vmem:[%s3286_s20 + $0x10] sm:$0xff]  ;;  %v3292_v26 = vld [vmem:[%s3286_s20] sm:$0xff] }
  0x14   : > { %v3298_v29 = vld [vmem:[%s3286_s20 + $0x18] sm:$0xff]  ;;  %v3305_v32 = vld [vmem:[%s3286_s20 + $0x8] sm:$0xff]  ;;  %v3316_v37 = vld [vmem:[%s3286_s20 + $0x20] sm:$0xff] }
  0x15   : > { %v3320_v38 = vld [vmem:[%s3286_s20 + $0x30] sm:$0xff]  ;;  %v3326_v42 = vld [vmem:[%s3286_s20 + $0x28] sm:$0xff]  ;;  %v3333_v44 = vld [vmem:[%s3286_s20 + $0x38] sm:$0xff] }
  0x16   : > { %v3339_v48 = vld [vmem:[%s3286_s20 + $0x40] sm:$0xff]  ;;  %v3347_v50 = vld [vmem:[%s3286_s20 + $0x50] sm:$0xff]  ;;  %v3353_v54 = vld [vmem:[%s3286_s20 + $0x48] sm:$0xff] }
  0x17   : > { %v3361_v56 = vld [vmem:[%s3286_s20 + $0x58] sm:$0xff]  ;;  %v3367_v60 = vld [vmem:[%s3286_s20 + $0x60] sm:$0xff]  ;;  %v3375_v62 = vld [vmem:[%s3286_s20 + $0x70] sm:$0xff] }
  0x18   : > { %2746 = vmatpush3.bf16.xpose.msra.mxu0 %v602_v4  ;;  %v3381_v2 = vld [vmem:[%s3286_s20 + $0x68] sm:$0xff]  ;;  %v3389_v4 = vld [vmem:[%s3286_s20 + $0x78] sm:$0xff] }
  0x19   : > { %2921 = vmatprep.subr.msk.bf16.mxu0 %vm558_vm0, %v2945_v3 }
  0x20   : > { %2748 = vmatpush3.bf16.xpose.msra.mxu0 %v599_v7 }
  0x21   : > { %2922 = vmatprep.subr.msk.bf16.mxu0 %vm558_vm0, %v2946_v6 }
  0x28   : > { %2750 = vmatpush3.bf16.xpose.msra.mxu0 %v596_v8  ;;  %v2959_v8 = vld [vmem:[%s3404_s23 + $0x38] sm:$0xff]  }
  0x29   : > { %2923 = vmatprep.subr.msk.bf16.mxu0 %vm558_vm0, %v2947_v9  ;;  %v2960_v9 = vld [vmem:[%s3404_s23 + $0x30] sm:$0xff]   ;;  %2775 = vmatprep.subr.bf16.mxu1 %v2959_v8 }
  0x2a   : > { %2776 = vmatpush3.bf16.msra.mxu1 %v2959_v8 }
  0x2b   : > { %2777 = vmatprep.subr.bf16.mxu1 %v2960_v9 }
  0x2e   : > { %2778 = vmatpush3.bf16.msra.mxu1 %v2960_v9 }
  0x30   : > { %2752 = vmatpush3.bf16.xpose.msra.mxu0 %v593_v10 }
  0x31   : > { %2924 = vmatprep.subr.msk.bf16.mxu0 %vm558_vm0, %v2948_v11 }
  0x38   : > { %2754 = vmatpush3.bf16.xpose.msra.mxu0 %v590_v12 }
  0x39   : > { %2925 = vmatprep.subr.msk.bf16.mxu0 %vm558_vm0, %v2949_v13 }
  0x40   : > { %2756 = vmatpush3.bf16.xpose.msra.mxu0 %v587_v14 }
  0x41   : > { %2926 = vmatprep.subr.msk.bf16.mxu0 %vm558_vm0, %v2950_v15 }
  0x48   : > { %2758 = vmatpush3.bf16.xpose.msra.mxu0 %v584_v16 }
  0x4f   : > { %2760 = vmatmul.mubr.msk.bf16.vlgmr.msra.gmra.mxu0 %vm558_vm0, %v2952_v17 }
  0x50   : > { %2763 = vmatprep.mubr.msk.bf16.mxu0 %vm558_vm0, %v2953_v18 }
  0x57   : > { %2764 = vmatmul.mubr.msk.bf16.gmra.mxu0 %vm558_vm0, %v2954_v19 }
  0x58   : > { %2767 = vmatprep.mubr.msk.bf16.mxu0 %vm558_vm0, %v2955_v20 }
  0x5f   : > { %2768 = vmatmul.mubr.msk.bf16.gmra.mxu0 %vm558_vm0, %v2956_v21 }
  0x60   : > { %2771 = vmatprep.mubr.msk.bf16.mxu0 %vm558_vm0, %v2957_v22 }
  0x67   : > { %2772 = vmatmul.mubr.msk.bf16.gmra.mxu0 %vm558_vm0, %v2958_v23 }
 0x10f   : > { %v2761_v25 = vpop.f32.mrf.mxu0 }
 0x110   : > { %v3295_v27 = vadd.f32 %v2761_v25, %v3289_v24 }
 0x111   : > { %v641_v28 = vpop.f32.mrf.mxu0 }
 0x112   : > { %v3301_v30 = vadd.f32 %v641_v28, %v3292_v26  ;;  %708 = vmax.xlane.f32.xlu1 %v3295_v27 }
 0x113   : > { %v2762_v31 = vpop.f32.mrf.mxu0 }
 0x114   : > { %v3308_v33 = vadd.f32 %v2762_v31, %v3298_v29  ;;  %704 = vmax.xlane.f32.xlu0 %v3301_v30 }
 0x115   : > { %v644_v34 = vpop.f32.mrf.mxu0 }
 0x116   : > { %v3312_v35 = vadd.f32 %v644_v34, %v3305_v32  ;;  %710 = vmax.xlane.f32.xlu1 %v3308_v33 }
 0x117   : > { %v2765_v36 = vpop.f32.mrf.mxu0 }
 0x118   : > { %706 = vmax.xlane.f32.xlu0 %v3312_v35  ;;  %v3329_v43 = vadd.f32 %v2765_v36, %v3320_v38 }
 0x119   : > { %v657_v39 = vpop.f32.mrf.mxu0 }
 0x11a   : > { %v3323_v40 = vadd.f32 %v657_v39, %v3316_v37 }
 0x11b   : > { %v2766_v41 = vpop.f32.mrf.mxu0 }
 0x11c   : > { %712 = vmax.xlane.f32.xlu0 %v3323_v40  ;;  %v3342_v49 = vadd.f32 %v2766_v41, %v3333_v44 }
 0x11d   : > { %v660_v45 = vpop.f32.mrf.mxu0 }
 0x11e   : > { %v3336_v46 = vadd.f32 %v660_v45, %v3326_v42 }
 0x11f   : > { %v2769_v47 = vpop.f32.mrf.mxu0 }
 0x120   : > { %714 = vmax.xlane.f32.xlu1 %v3336_v46  ;;  %716 = vmax.xlane.f32.xlu0 %v3329_v43  ;;  %v3356_v55 = vadd.f32 %v2769_v47, %v3347_v50 }
 0x121   : > { %v673_v51 = vpop.f32.mrf.mxu0 }
 0x122   : > { %v3350_v52 = vadd.f32 %v673_v51, %v3339_v48 }
 0x123   : > { %v2770_v53 = vpop.f32.mrf.mxu0 }
 0x124   : > { %718 = vmax.xlane.f32.xlu1 %v3342_v49  ;;  %720 = vmax.xlane.f32.xlu0 %v3350_v52  ;;  %v3370_v61 = vadd.f32 %v2770_v53, %v3361_v56 }
 0x125   : > { %v676_v57 = vpop.f32.mrf.mxu0 }
 0x126   : > { %v3364_v58 = vadd.f32 %v676_v57, %v3353_v54 }
 0x127   : > { %v2773_v59 = vpop.f32.mrf.mxu0 }
 0x128   : > { %722 = vmax.xlane.f32.xlu1 %v3364_v58  ;;  %724 = vmax.xlane.f32.xlu0 %v3356_v55  ;;  %v3384_v3 = vadd.f32 %v2773_v59, %v3375_v62 }
 0x129   : > { %v689_v63 = vpop.f32.mrf.mxu0 }
 0x12a   : > { %v3378_v0 = vadd.f32 %v689_v63, %v3367_v60 }
 0x12b   : > { %v2774_v1 = vpop.f32.mrf.mxu0 }
 0x12c   : > { %726 = vmax.xlane.f32.xlu1 %v3370_v61  ;;  %728 = vmax.xlane.f32.xlu0 %v3378_v0  ;;  %v3395_v7 = vadd.f32 %v2774_v1, %v3389_v4 }
 0x12d   : > { %v692_v5 = vpop.f32.mrf.mxu0 }
 0x12e   : > { %v3392_v6 = vadd.f32 %v692_v5, %v3381_v2 }
 0x130   : > { %730 = vmax.xlane.f32.xlu1 %v3392_v6  ;;  %732 = vmax.xlane.f32.xlu0 %v3384_v3 }
 0x134   : > { %734 = vmax.xlane.f32.xlu1 %v3395_v7 }
 0x19b   : > { %v709_v10 = vpop.xlane.xlu1 %708 }
 0x19c   : > { %v738_v11 = vsub.f32 %v3295_v27, %v709_v10 }
 0x19d   : > { %v705_v12 = vpop.xlane.xlu0 %704 }
 0x19e   : > { %v736_v13 = vsub.f32 %v3301_v30, %v705_v12  ;;  %v756_v16 = vmul.f32 1.442695, %v738_v11 }
 0x19f   : > { %v711_v14 = vpop.xlane.xlu1 %710 }
 0x1a0   : > { %v752_v15 = vmul.f32 1.442695, %v736_v13  ;;  %v739_v17 = vsub.f32 %v3308_v33, %v711_v14 }
 0x1a1   : > { %v707_v18 = vpop.xlane.xlu0 %706 }
 0x1a2   : > { %2999 = vpow2.f32 %v752_v15  ;;  %v737_v19 = vsub.f32 %v3312_v35, %v707_v18  ;;  %v758_v21 = vmul.f32 1.442695, %v739_v17 }
 0x1a3   : > { %3001 = vpow2.f32 %v756_v16 }
 0x1a4   : > { %v754_v20 = vmul.f32 1.442695, %v737_v19 }
 0x1a5   : > { %v713_v22 = vpop.xlane.xlu0 %712 }
 0x1a6   : > { %3003 = vpow2.f32 %v754_v20  ;;  %v740_v23 = vsub.f32 %v3323_v40, %v713_v22  ;;  %v2963_v22 = vld [vmem:[%s3404_s23 + $0x18] sm:$0xff]  }
 0x1a7   : > { %3005 = vpow2.f32 %v758_v21 }
 0x1a8   : > { %v760_v25 = vmul.f32 1.442695, %v740_v23 }
 0x1a9   : > { %v715_v27 = vpop.xlane.xlu1 %714  ;;  %v717_v28 = vpop.xlane.xlu0 %716 }
 0x1aa   : > { %3007 = vpow2.f32 %v760_v25  ;;  %v741_v30 = vsub.f32 %v3336_v46, %v715_v27  ;;  %v742_v31 = vsub.f32 %v3329_v43, %v717_v28  ;;  %v2964_v25 = vld [vmem:[%s3404_s23 + $0x10] sm:$0xff]  }
 0x1ac   : > { %v762_v33 = vmul.f32 1.442695, %v741_v30  ;;  %v764_v34 = vmul.f32 1.442695, %v742_v31  ;;  %v2965_v30 = vld [vmem:[%s3404_s23 + $0x8] sm:$0xff]  }
 0x1ad   : > { %v719_v36 = vpop.xlane.xlu1 %718  ;;  %v721_v35 = vpop.xlane.xlu0 %720 }
 0x1ae   : > { %3009 = vpow2.f32 %v762_v33  ;;  %v743_v39 = vsub.f32 %v3342_v49, %v719_v36  ;;  %v744_v41 = vsub.f32 %v3350_v52, %v721_v35  ;;  %v2967_v35 = vld [vmem:[%s3234_s14 + $0x78] sm:$0xff]  }
 0x1af   : > { %v3417_v45 = vpop.eup %2999  ;;  %3011 = vpow2.f32 %v764_v34  ;;  %v2966_v34 = vld [vmem:[%s3404_s23] sm:$0xff]  }
 0x1b0   : > { %v766_v40 = vmul.f32 1.442695, %v743_v39  ;;  %v768_v47 = vmul.f32 1.442695, %v744_v41  ;;  %784 = vadd.xlane.f32.xlu0 %v3417_v45  ;;  %v3420_v53 = vpop.eup %3001 }
 0x1b1   : > { %v723_v51 = vpop.xlane.xlu1 %722  ;;  %v725_v46 = vpop.xlane.xlu0 %724 }
 0x1b2   : > { %3013 = vpow2.f32 %v766_v40  ;;  %v745_v43 = vsub.f32 %v3364_v58, %v723_v51  ;;  %v746_v57 = vsub.f32 %v3356_v55, %v725_v46 }
 0x1b3   : > { %v3424_v59 = vpop.eup %3003  ;;  %3015 = vpow2.f32 %v768_v47 }
 0x1b4   : > { %v770_v49 = vmul.f32 1.442695, %v745_v43  ;;  %v772_v52 = vmul.f32 1.442695, %v746_v57  ;;  %788 = vadd.xlane.f32.xlu0 %v3420_v53  ;;  %786 = vadd.xlane.f32.xlu1 %v3424_v59  ;;  %v3428_v5 = vpop.eup %3005 }
 0x1b5   : > { %v727_v63 = vpop.xlane.xlu1 %726  ;;  %v729_v1 = vpop.xlane.xlu0 %728 }
 0x1b6   : > { %3017 = vpow2.f32 %v770_v49  ;;  %v747_v8 = vsub.f32 %v3370_v61, %v727_v63  ;;  %v748_v58 = vsub.f32 %v3378_v0, %v729_v1  ;;  %v2961_v61 = vld [vmem:[%s3404_s23 + $0x28] sm:$0xff]  }
 0x1b7   : > { %v3432_v55 = vpop.eup %3007  ;;  %3019 = vpow2.f32 %v772_v52  ;;  %2779 = vmatprep.subr.bf16.mxu1 %v2961_v61 }
 0x1b8   : > { %v774_v9 = vmul.f32 1.442695, %v747_v8  ;;  %v776_v10 = vmul.f32 1.442695, %v748_v58  ;;  %790 = vadd.xlane.f32.xlu1 %v3428_v5  ;;  %792 = vadd.xlane.f32.xlu0 %v3432_v55 }
 0x1b9   : > { %v731_v11 = vpop.xlane.xlu1 %730  ;;  %v733_v12 = vpop.xlane.xlu0 %732  ;;  %2780 = vmatpush3.bf16.msra.mxu1 %v2961_v61 }
 0x1ba   : > { %3021 = vpow2.f32 %v774_v9  ;;  %v749_v13 = vsub.f32 %v3392_v6, %v731_v11  ;;  %v750_v14 = vsub.f32 %v3384_v3, %v733_v12  ;;  %v2962_v3 = vld [vmem:[%s3404_s23 + $0x20] sm:$0xff]  }
 0x1bb   : > { %v3439_v15 = vpop.eup %3009  ;;  %3023 = vpow2.f32 %v776_v10  ;;  %2781 = vmatprep.subr.bf16.mxu1 %v2962_v3 }
 0x1bc   : > { %v3441_v0 = vpop.eup %3011  ;;  %v778_v16 = vmul.f32 1.442695, %v749_v13  ;;  %v780_v17 = vmul.f32 1.442695, %v750_v14  ;;  %794 = vadd.xlane.f32.xlu1 %v3439_v15 }
 0x1bd   : > { %796 = vadd.xlane.f32.xlu0 %v3441_v0  ;;  %v735_v18 = vpop.xlane.xlu1 %734  ;;  %2782 = vmatpush3.bf16.msra.mxu1 %v2962_v3 }
 0x1be   : > { %3025 = vpow2.f32 %v778_v16  ;;  %v751_v6 = vsub.f32 %v3395_v7, %v735_v18  ;;  %2783 = vmatprep.subr.bf16.mxu1 %v2963_v22  ;;  %v2968_v18 = vld [vmem:[%s3234_s14 + $0x70] sm:$0xff]  }
 0x1bf   : > { %v3447_v19 = vpop.eup %3013  ;;  %3027 = vpow2.f32 %v780_v17 }
 0x1c0   : > { %v3449_v20 = vpop.eup %3015  ;;  %v782_v21 = vmul.f32 1.442695, %v751_v6  ;;  %798 = vadd.xlane.f32.xlu1 %v3447_v19 }
 0x1c1   : > { %800 = vadd.xlane.f32.xlu0 %v3449_v20  ;;  %2784 = vmatpush3.bf16.msra.mxu1 %v2963_v22 }
 0x1c2   : > { %3029 = vpow2.f32 %v782_v21  ;;  %2785 = vmatprep.subr.bf16.mxu1 %v2964_v25 }
 0x1c3   : > { %v3454_v23 = vpop.eup %3017 }
 0x1c4   : > { %v3456_v7 = vpop.eup %3019  ;;  %802 = vadd.xlane.f32.xlu1 %v3454_v23 }
 0x1c5   : > { %804 = vadd.xlane.f32.xlu0 %v3456_v7  ;;  %2786 = vmatpush3.bf16.msra.mxu1 %v2964_v25 }
 0x1c6   : > { %2787 = vmatprep.subr.bf16.mxu1 %v2965_v30 }
 0x1c7   : > { %v3461_v27 = vpop.eup %3021 }
 0x1c8   : > { %v3463_v28 = vpop.eup %3023  ;;  %806 = vadd.xlane.f32.xlu1 %v3461_v27 }
 0x1c9   : > { %808 = vadd.xlane.f32.xlu0 %v3463_v28  ;;  %2788 = vmatpush3.bf16.msra.mxu1 %v2965_v30 }
 0x1ca   : > { %2789 = vmatprep.subr.bf16.mxu1 %v2966_v34 }
 0x1cb   : > { %v3468_v31 = vpop.eup %3025 }
 0x1cc   : > { %v3470_v33 = vpop.eup %3027  ;;  %810 = vadd.xlane.f32.xlu1 %v3468_v31 }
 0x1cd   : > { %812 = vadd.xlane.f32.xlu0 %v3470_v33  ;;  %2790 = vmatpush3.bf16.msra.mxu1 %v2966_v34 }
 0x1ce   : > { %2927 = vmatprep.subr.msk.bf16.mxu1 %vm558_vm0, %v2967_v35 }
 0x1cf   : > { %v3475_v36 = vpop.eup %3029 }
 0x1d0   : > { %814 = vadd.xlane.f32.xlu1 %v3475_v36 }
 0x239   : > { %v785_v39 = vpop.xlane.xlu0 %784 }
 0x23a   : > { %3031 = vrcp.f32 %v785_v39 }
 0x23d   : > { %v787_v41 = vpop.xlane.xlu1 %786  ;;  %v789_v40 = vpop.xlane.xlu0 %788 }
 0x23e   : > { %3033 = vrcp.f32 %v787_v41  ;;  %v1191_v41 = vsel %vm558_vm0, %v2968_v18, 0 }
 0x23f   : > { %3035 = vrcp.f32 %v789_v40  ;;  %v2969_v40 = vld [vmem:[%s3234_s14 + $0x68] sm:$0xff]  }
 0x241   : > { %v791_v47 = vpop.xlane.xlu1 %790  ;;  %v793_v51 = vpop.xlane.xlu0 %792 }
 0x242   : > { %3037 = vrcp.f32 %v791_v47 }
 0x243   : > { %3039 = vrcp.f32 %v793_v51 }
 0x245   : > { %v795_v46 = vpop.xlane.xlu1 %794 }
 0x246   : > { %3041 = vrcp.f32 %v795_v46  ;;  %v797_v43 = vpop.xlane.xlu0 %796 }
 0x247   : > { %3043 = vrcp.f32 %v797_v43  ;;  %v3032_v57 = vpop.eup %3031 }
 0x248   : > { %v832_v1 = vmul.f32 %v3032_v57, %v3417_v45 }
 0x249   : > { %v799_v49 = vpop.xlane.xlu1 %798 }
 0x24a   : > { %3045 = vrcp.f32 %v799_v49  ;;  %v801_v52 = vpop.xlane.xlu0 %800 }
 0x24b   : > { %v3034_v63 = vpop.eup %3033  ;;  %3047 = vrcp.f32 %v801_v52 }
 0x24c   : > { %v833_v8 = vmul.f32 %v3034_v63, %v3424_v59  ;;  %v3036_v58 = vpop.eup %3035  ;;  %v1194_v59 = vsel %vm558_vm0, %v2967_v35, 0 }
 0x24d   : > { %v803_v9 = vpop.xlane.xlu1 %802  ;;  %v834_v13 = vmul.f32 %v3036_v58, %v3420_v53 }
 0x24e   : > { %3049 = vrcp.f32 %v803_v9  ;;  %v805_v10 = vpop.xlane.xlu0 %804  ;;  %v848_v11 = vpack.c.bf16 %v833_v8, %v832_v1  ;;  %v1188_v1 = vsel %vm558_vm0, %v2969_v40, 0  ;;  %v2970_v8 = vld [vmem:[%s3234_s14 + $0x60] sm:$0xff]  }
 0x24f   : > { %v3038_v12 = vpop.eup %3037  ;;  %3051 = vrcp.f32 %v805_v10 }
 0x250   : > { %2791 = vmatprep.mubr.bf16.mxu1 %v848_v11  ;;  %v835_v14 = vmul.f32 %v3038_v12, %v3428_v5  ;;  %v3040_v61 = vpop.eup %3039  ;;  %v2975_v12 = vld [vmem:[%s3245_s17 + $0x40] sm:$0xff]  }
 0x251   : > { %v807_v16 = vpop.xlane.xlu1 %806  ;;  %v836_v3 = vmul.f32 %v3040_v61, %v3432_v55  ;;  %v2972_v61 = vld [vmem:[%s3234_s14 + $0x50] sm:$0xff]  }
 0x252   : > { %3053 = vrcp.f32 %v807_v16  ;;  %v809_v17 = vpop.xlane.xlu0 %808  ;;  %v849_v45 = vpack.c.bf16 %v835_v14, %v834_v13  ;;  %v2971_v14 = vld [vmem:[%s3234_s14 + $0x58] sm:$0xff]  }
 0x253   : > { %v3042_v6 = vpop.eup %3041  ;;  %3055 = vrcp.f32 %v809_v17  ;;  %v2974_v17 = vld [vmem:[%s3234_s14 + $0x40] sm:$0xff]  }
 0x254   : > { %2792 = vmatmul.mubr.bf16.vlgmr.msra.gmra.mxu1 %v849_v45  ;;  %v837_v21 = vmul.f32 %v3042_v6, %v3439_v15  ;;  %v3044_v22 = vpop.eup %3043  ;;  %v1173_v45 = vsel %vm558_vm0, %v2974_v17, 0  ;;  %v2977_v6 = vld [vmem:[%s3245_s17 + $0x50] sm:$0xff]  }
 0x255   : > { %2808 = vmatpush3.bf16.xpose.msra.mxu1 %v1194_v59  ;;  %v811_v53 = vpop.xlane.xlu1 %810  ;;  %v838_v34 = vmul.f32 %v3044_v22, %v3441_v0  ;;  %v2983_v59 = vld [vmem:[%s3944_s5 + $0x18] sm:$0xff]  }
 0x256   : > { %3057 = vrcp.f32 %v811_v53  ;;  %v813_v5 = vpop.xlane.xlu0 %812  ;;  %v850_v25 = vpack.c.bf16 %v837_v21, %v836_v3  ;;  %2928 = vmatprep.subr.msk.bf16.mxu1 %vm558_vm0, %v2968_v18  ;;  %v2976_v18 = vld [vmem:[%s3245_s17 + $0x48] sm:$0xff]   ;;  %v2984_v3 = vld [vmem:[%s3944_s5 + $0x10] sm:$0xff]   ;;  %v2978_v22 = vld [vmem:[%s3245_s17 + $0x58] sm:$0xff]  }
 0x257   : > { %v3046_v30 = vpop.eup %3045  ;;  %3059 = vrcp.f32 %v813_v5  ;;  %v2985_v21 = vld [vmem:[%s3944_s5 + $0x8] sm:$0xff]   ;;  %v2979_v53 = vld [vmem:[%s3245_s17 + $0x60] sm:$0xff]  }
 0x258   : > { %2795 = vmatprep.mubr.bf16.mxu1 %v850_v25  ;;  %v839_v35 = vmul.f32 %v3046_v30, %v3447_v19  ;;  %v3048_v39 = vpop.eup %3047  ;;  %v2986_v5 = vld [vmem:[%s3944_s5] sm:$0xff]   ;;  %v2980_v25 = vld [vmem:[%s3245_s17 + $0x68] sm:$0xff]   ;;  %v2981_v30 = vld [vmem:[%s3245_s17 + $0x70] sm:$0xff]  }
 0x259   : > { %v815_v55 = vpop.xlane.xlu1 %814  ;;  %v840_v51 = vmul.f32 %v3048_v39, %v3449_v20 }
 0x25a   : > { %3061 = vrcp.f32 %v815_v55  ;;  %v851_v15 = vpack.c.bf16 %v839_v35, %v838_v34  ;;  %v2982_v34 = vld [vmem:[%s3245_s17 + $0x78] sm:$0xff]  }
 0x25b   : > { %v3050_v47 = vpop.eup %3049 }
 0x25c   : > { %2796 = vmatmul.mubr.bf16.gmra.mxu1 %v851_v15  ;;  %v841_v46 = vmul.f32 %v3050_v47, %v3454_v23  ;;  %v3052_v43 = vpop.eup %3051 }
 0x25d   : > { %2810 = vmatpush3.bf16.xpose.msra.mxu1 %v1191_v41  ;;  %v842_v19 = vmul.f32 %v3052_v43, %v3456_v7 }
 0x25e   : > { %v852_v57 = vpack.c.bf16 %v841_v46, %v840_v51  ;;  %2929 = vmatprep.subr.msk.bf16.mxu1 %vm558_vm0, %v2969_v40 }
 0x25f   : > { %v3054_v0 = vpop.eup %3053 }
 0x260   : > { %2799 = vmatprep.mubr.bf16.mxu1 %v852_v57  ;;  %v843_v49 = vmul.f32 %v3054_v0, %v3461_v27  ;;  %v3056_v52 = vpop.eup %3055 }
 0x261   : > { %v844_v23 = vmul.f32 %v3056_v52, %v3463_v28  ;;  %v1185_v28 = vsel %vm558_vm0, %v2970_v8, 0 }
 0x262   : > { %v853_v63 = vpack.c.bf16 %v843_v49, %v842_v19 }
 0x263   : > { %v3058_v20 = vpop.eup %3057 }
 0x264   : > { %2800 = vmatmul.mubr.bf16.gmra.mxu1 %v853_v63  ;;  %v845_v58 = vmul.f32 %v3058_v20, %v3468_v31  ;;  %v3060_v9 = vpop.eup %3059  ;;  %v1182_v31 = vsel %vm558_vm0, %v2971_v14, 0 }
 0x265   : > { %2812 = vmatpush3.bf16.xpose.msra.mxu1 %v1188_v1  ;;  %v846_v27 = vmul.f32 %v3060_v9, %v3470_v33  ;;  %v1179_v33 = vsel %vm558_vm0, %v2972_v61, 0 }
 0x266   : > { %v854_v10 = vpack.c.bf16 %v845_v58, %v844_v23  ;;  %2930 = vmatprep.subr.msk.bf16.mxu1 %vm558_vm0, %v2970_v8 }
 0x267   : > { %v3062_v7 = vpop.eup %3061 }
 0x268   : > { %2803 = vmatprep.mubr.bf16.mxu1 %v854_v10  ;;  %v847_v11 = vmul.f32 %v3062_v7, %v3475_v36  ;;  %v2973_v36 = vld [vmem:[%s3234_s14 + $0x48] sm:$0xff]   ;;  %s3887_s14 = scalar_lea.vmem %s3948_s9, %s2551_s21 }
 0x269   : > { %v1176_v16 = vsel %vm558_vm0, %v2973_v36, 0 }
 0x26a   : > { %v855_v13 = vpack.c.bf16 %v847_v11, %v846_v27 }
 0x26c   : > { %2804 = vmatmul.mubr.bf16.gmra.mxu1 %v855_v13 }
 0x26d   : > { %2814 = vmatpush3.bf16.xpose.msra.mxu1 %v1185_v28  ;;  %2823 = vmatprep.mubr.msk.bf16.mxu1 %vm558_vm0, %v2975_v12 }
 0x26e   : > { %2931 = vmatprep.subr.msk.bf16.mxu1 %vm558_vm0, %v2971_v14 }
 0x275   : > { %2816 = vmatpush3.bf16.xpose.msra.mxu1 %v1182_v31 }
 0x276   : > { %2932 = vmatprep.subr.msk.bf16.mxu1 %vm558_vm0, %v2972_v61 }
 0x27d   : > { %2818 = vmatpush3.bf16.xpose.msra.mxu1 %v1179_v33 }
 0x27e   : > { %2933 = vmatprep.subr.msk.bf16.mxu1 %vm558_vm0, %v2973_v36 }
 0x285   : > { %2820 = vmatpush3.bf16.xpose.msra.mxu1 %v1176_v16 }
 0x286   : > { %2934 = vmatprep.subr.msk.bf16.mxu1 %vm558_vm0, %v2974_v17 }
 0x28d   : > { %2822 = vmatpush3.bf16.xpose.msra.mxu1 %v1173_v45 }
 0x28e   : > { %2895 = vmatprep.subr.bf16.mxu1 %v2983_v59 }
 0x294   : > { %2824 = vmatmul.mubr.msk.bf16.vlgmr.msra.gmra.mxu1 %vm558_vm0, %v2976_v18 }
 0x295   : > { %2827 = vmatprep.mubr.msk.bf16.mxu1 %vm558_vm0, %v2977_v6  ;;  %2896 = vmatpush3.bf16.msra.mxu1 %v2983_v59 }
 0x296   : > { %2897 = vmatprep.subr.bf16.mxu1 %v2984_v3 }
 0x299   : > { %2898 = vmatpush3.bf16.msra.mxu1 %v2984_v3 }
 0x29a   : > { %2899 = vmatprep.subr.bf16.mxu1 %v2985_v21 }
 0x29c   : > { %2828 = vmatmul.mubr.msk.bf16.gmra.mxu1 %vm558_vm0, %v2978_v22 }
 0x29d   : > { %2831 = vmatprep.mubr.msk.bf16.mxu1 %vm558_vm0, %v2979_v53  ;;  %2900 = vmatpush3.bf16.msra.mxu1 %v2985_v21 }
 0x29e   : > { %2901 = vmatprep.subr.bf16.mxu1 %v2986_v5 }
 0x2a1   : > { %2902 = vmatpush3.bf16.msra.mxu1 %v2986_v5  ;;  %v2988_v5 = vld [vmem:[%s3404_s23 + $0x70] sm:$0xff]  }
 0x2a4   : > { %2832 = vmatmul.mubr.msk.bf16.gmra.mxu1 %vm558_vm0, %v2980_v25 }
 0x2a5   : > { %2835 = vmatprep.mubr.msk.bf16.mxu1 %vm558_vm0, %v2981_v30 }
 0x2ac   : > { %2836 = vmatmul.mubr.msk.bf16.gmra.mxu1 %vm558_vm0, %v2982_v34 }
 0x314   : > { %v2793_v35 = vpop.f32.mrf.mxu1 }
 0x316   : > { %v938_v39 = vpop.f32.mrf.mxu1 }
 0x318   : > { %v2794_v55 = vpop.f32.mrf.mxu1 }
 0x319   : > { %v1010_v40 = vpack.c.bf16 %v2794_v55, %v2793_v35 }
 0x31a   : > { %v941_v15 = vpop.f32.mrf.mxu1 }
 0x31b   : > { %v1009_v41 = vpack.c.bf16 %v941_v15, %v938_v39 }
 0x31c   : > { %v2797_v47 = vpop.f32.mrf.mxu1 }
 0x31d   : > { %2903 = vmatprep.mubr.msk.bf16.mxu1 %vm558_vm0, %v1009_v41 }
 0x31e   : > { %v954_v51 = vpop.f32.mrf.mxu1  ;;  %2904 = vmatmul.mubr.msk.bf16.vlgmr.msra.gmra.mxu1 %vm558_vm0, %v1010_v40 }
 0x320   : > { %v2798_v46 = vpop.f32.mrf.mxu1 }
 0x321   : > { %v1012_v0 = vpack.c.bf16 %v2798_v46, %v2797_v47 }
 0x322   : > { %v957_v43 = vpop.f32.mrf.mxu1 }
 0x323   : > { %v1011_v57 = vpack.c.bf16 %v957_v43, %v954_v51 }
 0x324   : > { %v2801_v19 = vpop.f32.mrf.mxu1 }
 0x325   : > { %2907 = vmatprep.mubr.msk.bf16.mxu1 %vm558_vm0, %v1011_v57 }
 0x326   : > { %v970_v49 = vpop.f32.mrf.mxu1  ;;  %2908 = vmatmul.mubr.msk.bf16.gmra.mxu1 %vm558_vm0, %v1012_v0 }
 0x328   : > { %v2802_v52 = vpop.f32.mrf.mxu1 }
 0x329   : > { %v1014_v8 = vpack.c.bf16 %v2802_v52, %v2801_v19 }
 0x32a   : > { %v973_v63 = vpop.f32.mrf.mxu1 }
 0x32b   : > { %v1013_v1 = vpack.c.bf16 %v973_v63, %v970_v49 }
 0x32c   : > { %v2805_v20 = vpop.f32.mrf.mxu1 }
 0x32d   : > { %2911 = vmatprep.mubr.msk.bf16.mxu1 %vm558_vm0, %v1013_v1 }
 0x32e   : > { %v986_v23 = vpop.f32.mrf.mxu1  ;;  %2912 = vmatmul.mubr.msk.bf16.gmra.mxu1 %vm558_vm0, %v1014_v8 }
 0x330   : > { %v2806_v58 = vpop.f32.mrf.mxu1 }
 0x331   : > { %v1016_v7 = vpack.c.bf16 %v2806_v58, %v2805_v20 }
 0x332   : > { %v989_v9 = vpop.f32.mrf.mxu1 }
 0x333   : > { %v1015_v10 = vpack.c.bf16 %v989_v9, %v986_v23 }
 0x335   : > { %2915 = vmatprep.mubr.msk.bf16.mxu1 %vm558_vm0, %v1015_v10 }
 0x336   : > { %2916 = vmatmul.mubr.msk.bf16.gmra.mxu1 %vm558_vm0, %v1016_v7 }
 0x354   : > { %v2825_v27 = vpop.f32.mrf.mxu1 }
 0x355   : > { %v1239_v14 = vadd.f32 %v2825_v27, %v3289_v24 }
 0x356   : > { %v1230_v11 = vpop.f32.mrf.mxu1 }
 0x357   : > { %v1231_v12 = vadd.f32 %v1230_v11, %v3292_v26 }
 0x358   : > { %v2826_v13 = vpop.f32.mrf.mxu1 }
 0x359   : > { %1293 = vmax.xlane.f32.xlu0 %v1231_v12  ;;  %v1242_v36 = vadd.f32 %v2826_v13, %v3298_v29 }
 0x35a   : > { %v1233_v28 = vpop.f32.mrf.mxu1 }
 0x35b   : > { %v1234_v31 = vadd.f32 %v1233_v28, %v3305_v32 }
 0x35c   : > { %v2829_v61 = vpop.f32.mrf.mxu1 }
 0x35d   : > { %1295 = vmax.xlane.f32.xlu1 %v1234_v31  ;;  %1297 = vmax.xlane.f32.xlu0 %v1239_v14  ;;  %v1255_v26 = vadd.f32 %v2829_v61, %v3320_v38 }
 0x35e   : > { %v1246_v33 = vpop.f32.mrf.mxu1 }
 0x35f   : > { %v1247_v16 = vadd.f32 %v1246_v33, %v3316_v37 }
 0x360   : > { %v2830_v17 = vpop.f32.mrf.mxu1 }
 0x361   : > { %1299 = vmax.xlane.f32.xlu1 %v1242_v36  ;;  %1301 = vmax.xlane.f32.xlu0 %v1247_v16  ;;  %v3562_v32 = vadd.f32 %v2830_v17, %v3333_v44 }
 0x362   : > { %v1249_v45 = vpop.f32.mrf.mxu1 }
 0x363   : > { %v1250_v59 = vadd.f32 %v1249_v45, %v3326_v42 }
 0x364   : > { %v2833_v18 = vpop.f32.mrf.mxu1 }
 0x365   : > { %1303 = vmax.xlane.f32.xlu1 %v1250_v59  ;;  %1305 = vmax.xlane.f32.xlu0 %v1255_v26  ;;  %v3570_v38 = vadd.f32 %v2833_v18, %v3347_v50 }
 0x366   : > { %v1262_v24 = vpop.f32.mrf.mxu1 }
 0x367   : > { %v3565_v6 = vadd.f32 %v1262_v24, %v3339_v48 }
 0x368   : > { %v2834_v29 = vpop.f32.mrf.mxu1 }
 0x369   : > { %1307 = vmax.xlane.f32.xlu1 %v3562_v32  ;;  %1309 = vmax.xlane.f32.xlu0 %v3565_v6  ;;  %v3578_v48 = vadd.f32 %v2834_v29, %v3361_v56 }
 0x36a   : > { %v1265_v37 = vpop.f32.mrf.mxu1 }
 0x36b   : > { %v3573_v42 = vadd.f32 %v1265_v37, %v3353_v54 }
 0x36c   : > { %v2837_v3 = vpop.f32.mrf.mxu1 }
 0x36d   : > { %1311 = vmax.xlane.f32.xlu1 %v3573_v42  ;;  %1313 = vmax.xlane.f32.xlu0 %v3570_v38  ;;  %v3586_v54 = vadd.f32 %v2837_v3, %v3375_v62 }
 0x36e   : > { %v1278_v44 = vpop.f32.mrf.mxu1 }
 0x36f   : > { %v3581_v21 = vadd.f32 %v1278_v44, %v3367_v60  ;;  %v2987_v60 = vld [vmem:[%s3404_s23 + $0x78] sm:$0xff]  }
 0x370   : > { %v2838_v22 = vpop.f32.mrf.mxu1  ;;  %2839 = vmatprep.subr.bf16.mxu0 %v2987_v60 }
 0x371   : > { %1315 = vmax.xlane.f32.xlu1 %v3578_v48  ;;  %1317 = vmax.xlane.f32.xlu0 %v3581_v21  ;;  %v3594_v56 = vadd.f32 %v2838_v22, %v3389_v4 }
 0x372   : > { %v1281_v50 = vpop.f32.mrf.mxu1  ;;  %2840 = vmatpush3.bf16.msra.mxu0 %v2987_v60 }
 0x373   : > { %v3589_v53 = vadd.f32 %v1281_v50, %v3381_v2  ;;  %2841 = vmatprep.subr.bf16.mxu0 %v2988_v5 }
 0x375   : > { %1319 = vmax.xlane.f32.xlu1 %v3589_v53  ;;  %1321 = vmax.xlane.f32.xlu0 %v3586_v54 }
 0x376   : > { %2842 = vmatpush3.bf16.msra.mxu0 %v2988_v5  ;;  %v2992_v5 = vld [vmem:[%s3404_s23 + $0x50] sm:$0xff]  }
 0x379   : > { %1323 = vmax.xlane.f32.xlu1 %v3594_v56 }
 0x3e2   : > { %v1294_v62 = vpop.xlane.xlu0 %1293 }
 0x3e3   : > { %v1325_v25 = vsub.f32 %v1231_v12, %v1294_v62 }
 0x3e5   : > { %v1341_v30 = vmul.f32 1.442695, %v1325_v25 }
 0x3e6   : > { %v1296_v2 = vpop.xlane.xlu1 %1295  ;;  %v1298_v34 = vpop.xlane.xlu0 %1297 }
 0x3e7   : > { %3063 = vpow2.f32 %v1341_v30  ;;  %v1326_v35 = vsub.f32 %v1234_v31, %v1296_v2  ;;  %v1327_v39 = vsub.f32 %v1239_v14, %v1298_v34  ;;  %v2993_v30 = vld [vmem:[%s3404_s23 + $0x48] sm:$0xff]  }
 0x3e9   : > { %v1343_v55 = vmul.f32 1.442695, %v1326_v35  ;;  %v1345_v15 = vmul.f32 1.442695, %v1327_v39  ;;  %v2994_v35 = vld [vmem:[%s3404_s23 + $0x40] sm:$0xff]   ;;  %v2995_v39 = vld [vmem:[%s3944_s5 + $0x38] sm:$0xff]  }
 0x3ea   : > { %v1300_v4 = vpop.xlane.xlu1 %1299  ;;  %v1302_v41 = vpop.xlane.xlu0 %1301 }
 0x3eb   : > { %3065 = vpow2.f32 %v1343_v55  ;;  %v1328_v40 = vsub.f32 %v1242_v36, %v1300_v4  ;;  %v1329_v47 = vsub.f32 %v1247_v16, %v1302_v41 }
 0x3ec   : > { %3067 = vpow2.f32 %v1345_v15 }
 0x3ed   : > { %v1347_v51 = vmul.f32 1.442695, %v1328_v40  ;;  %v1349_v46 = vmul.f32 1.442695, %v1329_v47 }
 0x3ee   : > { %v1304_v43 = vpop.xlane.xlu1 %1303  ;;  %v1306_v57 = vpop.xlane.xlu0 %1305 }
 0x3ef   : > { %3069 = vpow2.f32 %v1347_v51  ;;  %v1330_v0 = vsub.f32 %v1250_v59, %v1304_v43  ;;  %v1331_v19 = vsub.f32 %v1255_v26, %v1306_v57 }
 0x3f0   : > { %3071 = vpow2.f32 %v1349_v46 }
 0x3f1   : > { %v1351_v49 = vmul.f32 1.442695, %v1330_v0  ;;  %v1353_v52 = vmul.f32 1.442695, %v1331_v19 }
 0x3f2   : > { %v1308_v63 = vpop.xlane.xlu1 %1307  ;;  %v1310_v1 = vpop.xlane.xlu0 %1309 }
 0x3f3   : > { %3073 = vpow2.f32 %v1351_v49  ;;  %v1332_v8 = vsub.f32 %v3562_v32, %v1308_v63  ;;  %v1333_v20 = vsub.f32 %v3565_v6, %v1310_v1  ;;  %v2989_v6 = vld [vmem:[%s3404_s23 + $0x68] sm:$0xff]  }
 0x3f4   : > { %v3601_v23 = vpop.eup %3063  ;;  %3075 = vpow2.f32 %v1353_v52  ;;  %2843 = vmatprep.subr.bf16.mxu0 %v2989_v6 }
 0x3f5   : > { %v1355_v58 = vmul.f32 1.442695, %v1332_v8  ;;  %v1357_v9 = vmul.f32 1.442695, %v1333_v20  ;;  %1373 = vadd.xlane.f32.xlu0 %v3601_v23  ;;  %2844 = vmatpush3.bf16.msra.mxu0 %v2989_v6 }
 0x3f6   : > { %v1312_v10 = vpop.xlane.xlu1 %1311  ;;  %v1314_v7 = vpop.xlane.xlu0 %1313 }
 0x3f7   : > { %3077 = vpow2.f32 %v1355_v58  ;;  %v1334_v27 = vsub.f32 %v3573_v42, %v1312_v10  ;;  %v1335_v11 = vsub.f32 %v3570_v38, %v1314_v7 }
 0x3f8   : > { %v3606_v12 = vpop.eup %3065  ;;  %3079 = vpow2.f32 %v1357_v9 }
 0x3f9   : > { %v3608_v13 = vpop.eup %3067  ;;  %v1359_v28 = vmul.f32 1.442695, %v1334_v27  ;;  %v1361_v14 = vmul.f32 1.442695, %v1335_v11  ;;  %1375 = vadd.xlane.f32.xlu1 %v3606_v12 }
 0x3fa   : > { %1377 = vadd.xlane.f32.xlu0 %v3608_v13  ;;  %v1316_v31 = vpop.xlane.xlu1 %1315  ;;  %v1318_v61 = vpop.xlane.xlu0 %1317 }
 0x3fb   : > { %3081 = vpow2.f32 %v1359_v28  ;;  %v1336_v33 = vsub.f32 %v3578_v48, %v1316_v31  ;;  %v1337_v36 = vsub.f32 %v3581_v21, %v1318_v61  ;;  %v2990_v21 = vld [vmem:[%s3404_s23 + $0x60] sm:$0xff]  }
 0x3fc   : > { %v3614_v16 = vpop.eup %3069  ;;  %3083 = vpow2.f32 %v1361_v14  ;;  %2845 = vmatprep.subr.bf16.mxu0 %v2990_v21 }
 0x3fd   : > { %v3616_v17 = vpop.eup %3071  ;;  %v1363_v45 = vmul.f32 1.442695, %v1336_v33  ;;  %v1365_v26 = vmul.f32 1.442695, %v1337_v36  ;;  %1379 = vadd.xlane.f32.xlu1 %v3614_v16  ;;  %2846 = vmatpush3.bf16.msra.mxu0 %v2990_v21  ;;  %v2997_v36 = vld [vmem:[%s3944_s5 + $0x28] sm:$0xff]  }
 0x3fe   : > { %1381 = vadd.xlane.f32.xlu0 %v3616_v17  ;;  %v1320_v59 = vpop.xlane.xlu1 %1319  ;;  %v1322_v18 = vpop.xlane.xlu0 %1321 }
 0x3ff   : > { %3085 = vpow2.f32 %v1363_v45  ;;  %v1338_v24 = vsub.f32 %v3589_v53, %v1320_v59  ;;  %v1339_v32 = vsub.f32 %v3586_v54, %v1322_v18  ;;  %v2991_v53 = vld [vmem:[%s3404_s23 + $0x58] sm:$0xff]  }
 0x400   : > { %v3623_v29 = vpop.eup %3073  ;;  %3087 = vpow2.f32 %v1365_v26  ;;  %2847 = vmatprep.subr.bf16.mxu0 %v2991_v53 }
 0x401   : > { %v3625_v37 = vpop.eup %3075  ;;  %v1367_v38 = vmul.f32 1.442695, %v1338_v24  ;;  %v1369_v42 = vmul.f32 1.442695, %v1339_v32  ;;  %1383 = vadd.xlane.f32.xlu1 %v3623_v29  ;;  %2848 = vmatpush3.bf16.msra.mxu0 %v2991_v53 }
 0x402   : > { %1385 = vadd.xlane.f32.xlu0 %v3625_v37  ;;  %v1324_v3 = vpop.xlane.xlu1 %1323  ;;  %2849 = vmatprep.subr.bf16.mxu0 %v2992_v5 }
 0x403   : > { %3089 = vpow2.f32 %v1367_v38  ;;  %v1340_v44 = vsub.f32 %v3594_v56, %v1324_v3 }
 0x404   : > { %v3630_v48 = vpop.eup %3077  ;;  %3091 = vpow2.f32 %v1369_v42 }
 0x405   : > { %v3633_v22 = vpop.eup %3079  ;;  %v1371_v50 = vmul.f32 1.442695, %v1340_v44  ;;  %1387 = vadd.xlane.f32.xlu1 %v3630_v48  ;;  %2850 = vmatpush3.bf16.msra.mxu0 %v2992_v5 }
 0x406   : > { %1389 = vadd.xlane.f32.xlu0 %v3633_v22  ;;  %2851 = vmatprep.subr.bf16.mxu0 %v2993_v30 }
 0x407   : > { %3093 = vpow2.f32 %v1371_v50 }
 0x408   : > { %v3637_v54 = vpop.eup %3081 }
 0x409   : > { %v3640_v56 = vpop.eup %3083  ;;  %1391 = vadd.xlane.f32.xlu1 %v3637_v54  ;;  %2852 = vmatpush3.bf16.msra.mxu0 %v2993_v30 }
 0x40a   : > { %1393 = vadd.xlane.f32.xlu0 %v3640_v56  ;;  %2853 = vmatprep.subr.bf16.mxu0 %v2994_v35 }
 0x40c   : > { %v3644_v60 = vpop.eup %3085 }
 0x40d   : > { %v3647_v62 = vpop.eup %3087  ;;  %1395 = vadd.xlane.f32.xlu1 %v3644_v60  ;;  %2854 = vmatpush3.bf16.msra.mxu0 %v2994_v35 }
 0x40e   : > { %1397 = vadd.xlane.f32.xlu0 %v3647_v62  ;;  %2871 = vmatprep.subr.bf16.mxu0 %v2995_v39 }
 0x410   : > { %v3651_v25 = vpop.eup %3089 }
 0x411   : > { %v3654_v2 = vpop.eup %3091  ;;  %1399 = vadd.xlane.f32.xlu1 %v3651_v25 }
 0x412   : > { %1401 = vadd.xlane.f32.xlu0 %v3654_v2 }
 0x414   : > { %v3658_v34 = vpop.eup %3093 }
 0x415   : > { %1403 = vadd.xlane.f32.xlu1 %v3658_v34 }
 0x47e   : > { %v1374_v55 = vpop.xlane.xlu0 %1373 }
 0x47f   : > { %3095 = vrcp.f32 %v1374_v55 }
 0x482   : > { %v1376_v15 = vpop.xlane.xlu1 %1375 }
 0x483   : > { %3097 = vrcp.f32 %v1376_v15  ;;  %v1378_v4 = vpop.xlane.xlu0 %1377 }
 0x484   : > { %3099 = vrcp.f32 %v1378_v4 }
 0x486   : > { %v1380_v41 = vpop.xlane.xlu1 %1379 }
 0x487   : > { %3101 = vrcp.f32 %v1380_v41  ;;  %v1382_v40 = vpop.xlane.xlu0 %1381 }
 0x488   : > { %3103 = vrcp.f32 %v1382_v40 }
 0x48a   : > { %v1384_v47 = vpop.xlane.xlu1 %1383 }
 0x48b   : > { %3105 = vrcp.f32 %v1384_v47  ;;  %v1386_v51 = vpop.xlane.xlu0 %1385 }
 0x48c   : > { %3107 = vrcp.f32 %v1386_v51  ;;  %v3096_v46 = vpop.eup %3095 }
 0x48d   : > { %v1421_v19 = vmul.f32 %v3096_v46, %v3601_v23  ;;  %v2996_v23 = vld [vmem:[%s3944_s5 + $0x30] sm:$0xff]  }
 0x48e   : > { %v1388_v43 = vpop.xlane.xlu1 %1387 }
 0x48f   : > { %3109 = vrcp.f32 %v1388_v43  ;;  %v1390_v57 = vpop.xlane.xlu0 %1389 }
 0x490   : > { %v3098_v0 = vpop.eup %3097  ;;  %3111 = vrcp.f32 %v1390_v57 }
 0x491   : > { %v1422_v49 = vmul.f32 %v3098_v0, %v3606_v12  ;;  %v3100_v52 = vpop.eup %3099 }
 0x492   : > { %v1392_v63 = vpop.xlane.xlu1 %1391  ;;  %v1423_v58 = vmul.f32 %v3100_v52, %v3608_v13 }
 0x493   : > { %3113 = vrcp.f32 %v1392_v63  ;;  %v1394_v1 = vpop.xlane.xlu0 %1393  ;;  %v1437_v8 = vpack.c.bf16 %v1422_v49, %v1421_v19 }
 0x494   : > { %v3102_v20 = vpop.eup %3101  ;;  %3115 = vrcp.f32 %v1394_v1 }
 0x495   : > { %2855 = vmatprep.mubr.bf16.mxu0 %v1437_v8  ;;  %v1424_v9 = vmul.f32 %v3102_v20, %v3614_v16  ;;  %v3104_v10 = vpop.eup %3103 }
 0x496   : > { %v1396_v7 = vpop.xlane.xlu1 %1395  ;;  %v1425_v28 = vmul.f32 %v3104_v10, %v3616_v17 }
 0x497   : > { %3117 = vrcp.f32 %v1396_v7  ;;  %v1398_v27 = vpop.xlane.xlu0 %1397  ;;  %v1438_v11 = vpack.c.bf16 %v1424_v9, %v1423_v58  ;;  %v2905_v9 = vpop.f32.mrf.mxu1 }
 0x498   : > { %v3106_v12 = vpop.eup %3105  ;;  %3119 = vrcp.f32 %v1398_v27 }
 0x499   : > { %2856 = vmatmul.mubr.bf16.vlgmr.msra.gmra.mxu0 %v1438_v11  ;;  %v1426_v14 = vmul.f32 %v3106_v12, %v3623_v29  ;;  %v3108_v31 = vpop.eup %3107  ;;  %v1833_v10 = vpop.f32.mrf.mxu1 }
 0x49a   : > { %v1400_v13 = vpop.xlane.xlu1 %1399  ;;  %2872 = vmatpush3.bf16.msra.mxu0 %v2995_v39  ;;  %v1427_v45 = vmul.f32 %v3108_v31, %v3625_v37 }
 0x49b   : > { %3121 = vrcp.f32 %v1400_v13  ;;  %v1402_v61 = vpop.xlane.xlu0 %1401  ;;  %v1439_v33 = vpack.c.bf16 %v1426_v14, %v1425_v28  ;;  %2873 = vmatprep.subr.bf16.mxu0 %v2996_v23  ;;  %v2906_v7 = vpop.f32.mrf.mxu1  ;;  %v2641_v14 = vld [vmem:[%s3704_s24 + $0x8] sm:$0xff]   ;;  %v3710_v13 = vld [vmem:[%s3945_s6] ss:$0 sm:$0xff] }
 0x49c   : > { %v3110_v16 = vpop.eup %3109  ;;  %3123 = vrcp.f32 %v1402_v61 }
 0x49d   : > { %2859 = vmatprep.mubr.bf16.mxu0 %v1439_v33  ;;  %v1428_v17 = vmul.f32 %v3110_v16, %v3630_v48  ;;  %v3112_v26 = vpop.eup %3111  ;;  %v1836_v27 = vpop.f32.mrf.mxu1  ;;  %v2575_v33 = vunpack.c.l.bf16 %v2641_v14 }
 0x49e   : > { %v1404_v59 = vpop.xlane.xlu1 %1403  ;;  %2874 = vmatpush3.bf16.msra.mxu0 %v2996_v23  ;;  %v1429_v32 = vmul.f32 %v3112_v26, %v3633_v22 }
 0x49f   : > { %3125 = vrcp.f32 %v1404_v59  ;;  %v1440_v18 = vpack.c.bf16 %v1428_v17, %v1427_v45  ;;  %2875 = vmatprep.subr.bf16.mxu0 %v2997_v36  ;;  %v2909_v11 = vpop.f32.mrf.mxu1 }
 0x4a0   : > { %v3114_v24 = vpop.eup %3113 }
 0x4a1   : > { %2860 = vmatmul.mubr.bf16.gmra.mxu0 %v1440_v18  ;;  %v1430_v6 = vmul.f32 %v3114_v24, %v3637_v54  ;;  %v3116_v29 = vpop.eup %3115  ;;  %v1849_v23 = vpop.f32.mrf.mxu1 }
 0x4a2   : > { %2876 = vmatpush3.bf16.msra.mxu0 %v2997_v36  ;;  %v1431_v37 = vmul.f32 %v3116_v29, %v3640_v56  ;;  %v2998_v56 = vld [vmem:[%s3944_s5 + $0x20] sm:$0xff]   ;;  %v2576_v29 = vunpack.c.h.bf16 %v2641_v14 }
 0x4a3   : > { %v1441_v38 = vpack.c.bf16 %v1430_v6, %v1429_v32  ;;  %2877 = vmatprep.subr.bf16.mxu0 %v2998_v56  ;;  %v2910_v12 = vpop.f32.mrf.mxu1  ;;  %v2570_v36 = vld [vmem:[%s3704_s24] sm:$0xff]  }
 0x4a4   : > { %v3118_v42 = vpop.eup %3117  ;;  %v2571_v18 = vunpack.c.l.bf16 %v2570_v36 }
 0x4a5   : > { %2863 = vmatprep.mubr.bf16.mxu0 %v1441_v38  ;;  %v1432_v3 = vmul.f32 %v3118_v42, %v3644_v60  ;;  %v3120_v44 = vpop.eup %3119  ;;  %v1852_v28 = vpop.f32.mrf.mxu1  ;;  %v2643_v38 = vld [vmem:[%s3704_s24 + $0x18] sm:$0xff]  }
 0x4a6   : > { %v1433_v50 = vmul.f32 %v3120_v44, %v3647_v62  ;;  %2878 = vmatpush3.bf16.msra.mxu0 %v2998_v56 }
 0x4a7   : > { %v1442_v48 = vpack.c.bf16 %v1432_v3, %v1431_v37  ;;  %v2913_v16 = vpop.f32.mrf.mxu1 }
 0x4a8   : > { %v3122_v21 = vpop.eup %3121 }
 0x4a9   : > { %2864 = vmatmul.mubr.bf16.gmra.mxu0 %v1442_v48  ;;  %v1434_v53 = vmul.f32 %v3122_v21, %v3651_v25  ;;  %v3124_v22 = vpop.eup %3123  ;;  %v1865_v42 = vpop.f32.mrf.mxu1  ;;  %v2572_v21 = vunpack.c.h.bf16 %v2570_v36 }
 0x4aa   : > { %v1435_v30 = vmul.f32 %v3124_v22, %v3654_v2 }
 0x4ab   : > { %v1443_v5 = vpack.c.bf16 %v1434_v53, %v1433_v50  ;;  %v2583_v50 = vunpack.c.l.bf16 %v2643_v38 }
 0x4ac   : > { %v3126_v54 = vpop.eup %3125 }
 0x4ad   : > { %2867 = vmatprep.mubr.bf16.mxu0 %v1443_v5  ;;  %v1436_v35 = vmul.f32 %v3126_v54, %v3658_v34 }
 0x4af   : > { %v1444_v39 = vpack.c.bf16 %v1436_v35, %v1435_v30  ;;  %v2642_v30 = vld [vmem:[%s3704_s24 + $0x10] sm:$0xff]   ;;  %v2914_v35 = vpop.f32.mrf.mxu1 }
 0x4b1   : > { %2868 = vmatmul.mubr.bf16.gmra.mxu0 %v1444_v39 }
 0x559   : > { %v2857_v60 = vpop.f32.mrf.mxu0 }
 0x55b   : > { %v1527_v62 = vpop.f32.mrf.mxu0 }
 0x55d   : > { %v2858_v55 = vpop.f32.mrf.mxu0 }
 0x55e   : > { %v1599_v4 = vpack.c.bf16 %v2858_v55, %v2857_v60  ;;  %v2579_v55 = vunpack.c.l.bf16 %v2642_v30 }
 0x55f   : > { %v1530_v25 = vpop.f32.mrf.mxu0 }
 0x560   : > { %v1598_v15 = vpack.c.bf16 %v1530_v25, %v1527_v62  ;;  %v2584_v25 = vunpack.c.h.bf16 %v2643_v38 }
 0x561   : > { %v2861_v41 = vpop.f32.mrf.mxu0 }
 0x562   : > { %2879 = vmatprep.mubr.msk.bf16.mxu0 %vm558_vm0, %v1598_v15 }
 0x563   : > { %v1543_v2 = vpop.f32.mrf.mxu0  ;;  %2880 = vmatmul.mubr.msk.bf16.vlgmr.msra.gmra.mxu0 %vm558_vm0, %v1599_v4 }
 0x565   : > { %v2862_v34 = vpop.f32.mrf.mxu0 }
 0x566   : > { %v1601_v51 = vpack.c.bf16 %v2862_v34, %v2861_v41  ;;  %v2645_v34 = vld [vmem:[%s3704_s24 + $0x28] sm:$0xff]  }
 0x567   : > { %v1546_v40 = vpop.f32.mrf.mxu0 }
 0x568   : > { %v1600_v47 = vpack.c.bf16 %v1546_v40, %v1543_v2  ;;  %v1868_v40 = vpop.f32.mrf.mxu1 }
 0x569   : > { %v2865_v46 = vpop.f32.mrf.mxu0 }
 0x56a   : > { %2883 = vmatprep.mubr.msk.bf16.mxu0 %vm558_vm0, %v1600_v47 }
 0x56b   : > { %v1559_v43 = vpop.f32.mrf.mxu0  ;;  %2884 = vmatmul.mubr.msk.bf16.gmra.mxu0 %vm558_vm0, %v1601_v51 }
 0x56d   : > { %v2866_v57 = vpop.f32.mrf.mxu0 }
 0x56e   : > { %v1603_v49 = vpack.c.bf16 %v2866_v57, %v2865_v46  ;;  %v2580_v57 = vunpack.c.h.bf16 %v2642_v30 }
 0x56f   : > { %v1562_v0 = vpop.f32.mrf.mxu0 }
 0x570   : > { %v1602_v19 = vpack.c.bf16 %v1562_v0, %v1559_v43  ;;  %v2591_v0 = vunpack.c.l.bf16 %v2645_v34 }
 0x571   : > { %v2869_v52 = vpop.f32.mrf.mxu0 }
 0x572   : > { %2887 = vmatprep.mubr.msk.bf16.mxu0 %vm558_vm0, %v1602_v19 }
 0x573   : > { %v1575_v63 = vpop.f32.mrf.mxu0  ;;  %2888 = vmatmul.mubr.msk.bf16.gmra.mxu0 %vm558_vm0, %v1603_v49 }
 0x575   : > { %v2870_v1 = vpop.f32.mrf.mxu0 }
 0x576   : > { %v1605_v58 = vpack.c.bf16 %v2870_v1, %v2869_v52  ;;  %v2644_v1 = vld [vmem:[%s3704_s24 + $0x20] sm:$0xff]  }
 0x577   : > { %v1578_v8 = vpop.f32.mrf.mxu0 }
 0x578   : > { %v1604_v20 = vpack.c.bf16 %v1578_v8, %v1575_v63  ;;  %v2917_v8 = vpop.f32.mrf.mxu1 }
 0x57a   : > { %2891 = vmatprep.mubr.msk.bf16.mxu0 %vm558_vm0, %v1604_v20  ;;  %v1881_v14 = vpop.f32.mrf.mxu1 }
 0x57b   : > { %2892 = vmatmul.mubr.msk.bf16.gmra.mxu0 %vm558_vm0, %v1605_v58 }
 0x623   : > { %v2881_v31 = vpop.f32.mrf.mxu0 }
 0x624   : > { %v1842_v61 = vadd.f32 %v2905_v9, %v2881_v31 }
 0x625   : > { %v1688_v45 = vpop.f32.mrf.mxu0 }
 0x626   : > { %v1905_v17 = vadd.f32 %v3710_v13, %v1842_v61  ;;  %v1834_v26 = vadd.f32 %v1833_v10, %v1688_v45 }
 0x627   : > { %v2882_v59 = vpop.f32.mrf.mxu0 }
 0x628   : > { %v1903_v24 = vadd.f32 %v3710_v13, %v1834_v26  ;;  %v1845_v32 = vadd.f32 %v2906_v7, %v2882_v59  ;;  %v3715_v6 = vadd.f32 %v2575_v33, %v1905_v17  ;;  %v2587_v7 = vunpack.c.l.bf16 %v2644_v1 }
 0x629   : > { %v1691_v37 = vpop.f32.mrf.mxu0  ;;  %v2588_v59 = vunpack.c.h.bf16 %v2644_v1 }
 0x62a   : > { %v1906_v3 = vadd.f32 %v3710_v13, %v1845_v32  ;;  %v1837_v44 = vadd.f32 %v1836_v27, %v1691_v37  ;;  %1973 = vadd.xlane.f32.xlu0 %v3715_v6  ;;  %v3721_v5 = vadd.f32 %v2571_v18, %v1903_v24  ;;  %v2592_v27 = vunpack.c.h.bf16 %v2645_v34  ;;  %v2918_v18 = vpop.f32.mrf.mxu1 }
 0x62b   : > { %v2885_v48 = vpop.f32.mrf.mxu0 }
 0x62c   : > { %v1904_v53 = vadd.f32 %v3710_v13, %v1837_v44  ;;  %v1858_v22 = vadd.f32 %v2909_v11, %v2885_v48  ;;  %v3723_v54 = vadd.f32 %v2576_v29, %v1906_v3  ;;  %v1884_v48 = vpop.f32.mrf.mxu1 }
 0x62d   : > { %v1704_v39 = vpop.f32.mrf.mxu0 }
 0x62e   : > { %v1909_v56 = vadd.f32 %v3710_v13, %v1858_v22  ;;  %v1850_v60 = vadd.f32 %v1849_v23, %v1704_v39  ;;  %1969 = vadd.xlane.f32.xlu0 %v3721_v5  ;;  %1975 = vadd.xlane.f32.xlu1 %v3723_v54  ;;  %v3730_v41 = vadd.f32 %v2572_v21, %v1904_v53 }
 0x62f   : > { %v2886_v62 = vpop.f32.mrf.mxu0 }
 0x630   : > { %v1907_v15 = vadd.f32 %v3710_v13, %v1850_v60  ;;  %v1861_v4 = vadd.f32 %v2910_v12, %v2886_v62  ;;  %v3732_v2 = vadd.f32 %v2583_v50, %v1909_v56 }
 0x631   : > { %v1707_v47 = vpop.f32.mrf.mxu0 }
 0x632   : > { %v1910_v51 = vadd.f32 %v3710_v13, %v1861_v4  ;;  %v1853_v46 = vadd.f32 %v1852_v28, %v1707_v47  ;;  %1971 = vadd.xlane.f32.xlu1 %v3730_v41  ;;  %1981 = vadd.xlane.f32.xlu0 %v3732_v2  ;;  %v3739_v52 = vadd.f32 %v2579_v55, %v1907_v15 }
 0x633   : > { %v2889_v43 = vpop.f32.mrf.mxu0 }
 0x634   : > { %v1908_v19 = vadd.f32 %v3710_v13, %v1853_v46  ;;  %v1874_v49 = vadd.f32 %v2913_v16, %v2889_v43  ;;  %v3741_v63 = vadd.f32 %v2584_v25, %v1910_v51  ;;  %v2646_v16 = vld [vmem:[%s3704_s24 + $0x30] sm:$0xff]  }
 0x635   : > { %v1720_v20 = vpop.f32.mrf.mxu0  ;;  %v2595_v38 = vunpack.c.l.bf16 %v2646_v16  ;;  %v2596_v50 = vunpack.c.h.bf16 %v2646_v16 }
 0x636   : > { %v1913_v58 = vadd.f32 %v3710_v13, %v1874_v49  ;;  %v1866_v9 = vadd.f32 %v1865_v42, %v1720_v20  ;;  %1977 = vadd.xlane.f32.xlu0 %v3739_v52  ;;  %1983 = vadd.xlane.f32.xlu1 %v3741_v63  ;;  %v3748_v12 = vadd.f32 %v2580_v57, %v1908_v19  ;;  %v2647_v42 = vld [vmem:[%s3704_s24 + $0x38] sm:$0xff]  }
 0x637   : > { %v2890_v10 = vpop.f32.mrf.mxu0  ;;  %v2599_v53 = vunpack.c.l.bf16 %v2647_v42  ;;  %v2600_v25 = vunpack.c.h.bf16 %v2647_v42 }
 0x638   : > { %v1911_v11 = vadd.f32 %v3710_v13, %v1866_v9  ;;  %v1877_v23 = vadd.f32 %v2914_v35, %v2890_v10  ;;  %v3750_v28 = vadd.f32 %v2591_v0, %v1913_v58 }
 0x639   : > { %v1723_v31 = vpop.f32.mrf.mxu0 }
 0x63a   : > { %v1914_v61 = vadd.f32 %v3710_v13, %v1877_v23  ;;  %v1869_v33 = vadd.f32 %v1868_v40, %v1723_v31  ;;  %1979 = vadd.xlane.f32.xlu1 %v3748_v12  ;;  %1989 = vadd.xlane.f32.xlu0 %v3750_v28  ;;  %v3757_v17 = vadd.f32 %v2587_v7, %v1911_v11 }
 0x63b   : > { %v2893_v36 = vpop.f32.mrf.mxu0 }
 0x63c   : > { %v1912_v45 = vadd.f32 %v3710_v13, %v1869_v33  ;;  %v3759_v26 = vadd.f32 %v2592_v27, %v1914_v61  ;;  %v1890_v32 = vadd.f32 %v2917_v8, %v2893_v36 }
 0x63d   : > { %v1736_v24 = vpop.f32.mrf.mxu0 }
 0x63e   : > { %v1882_v29 = vadd.f32 %v1881_v14, %v1736_v24  ;;  %1985 = vadd.xlane.f32.xlu0 %v3757_v17  ;;  %1991 = vadd.xlane.f32.xlu1 %v3759_v26  ;;  %v3765_v44 = vadd.f32 %v2588_v59, %v1912_v45  ;;  %v1917_v22 = vadd.f32 %v3710_v13, %v1890_v32 }
 0x63f   : > { %v2894_v37 = vpop.f32.mrf.mxu0 }
 0x640   : > { %v1915_v3 = vadd.f32 %v3710_v13, %v1882_v29  ;;  %v1893_v30 = vadd.f32 %v2918_v18, %v2894_v37  ;;  %v3776_v55 = vadd.f32 %v2599_v53, %v1917_v22 }
 0x641   : > { %v1739_v21 = vpop.f32.mrf.mxu0 }
 0x642   : > { %v1885_v35 = vadd.f32 %v1884_v48, %v1739_v21  ;;  %1987 = vadd.xlane.f32.xlu1 %v3765_v44  ;;  %v3769_v39 = vadd.f32 %v2595_v38, %v1915_v3  ;;  %v1918_v60 = vadd.f32 %v3710_v13, %v1893_v30 }
 0x644   : > { %v1916_v56 = vadd.f32 %v3710_v13, %v1885_v35  ;;  %1993 = vadd.xlane.f32.xlu0 %v3769_v39  ;;  %v3780_v15 = vadd.f32 %v2600_v25, %v1918_v60 }
 0x646   : > { %v3774_v62 = vadd.f32 %v2596_v50, %v1916_v56 }
 0x648   : > { %1995 = vadd.xlane.f32.xlu1 %v3774_v62  ;;  %1997 = vadd.xlane.f32.xlu0 %v3776_v55 }
 0x64c   : > { %1999 = vadd.xlane.f32.xlu1 %v3780_v15 }
 0x6b3   : > { %v1974_v4 = vpop.xlane.xlu0 %1973 }
 0x6b4   : > { %v2004_v34 = vmul.f32 0.0078125, %v1974_v4 }
 0x6b6   : > { %v3784_v40 = vsub.f32 %v3715_v6, %v2004_v34 }
 0x6b7   : > { %v1970_v47 = vpop.xlane.xlu0 %1969  ;;  %v1976_v13 = vpop.xlane.xlu1 %1975 }
 0x6b8   : > { %v2002_v51 = vmul.f32 0.0078125, %v1970_v47  ;;  %v2005_v46 = vmul.f32 0.0078125, %v1976_v13  ;;  %v2036_v43 = vmul.f32 %v3784_v40, %v3784_v40 }
 0x6ba   : > { %v3789_v57 = vsub.f32 %v3721_v5, %v2002_v51  ;;  %v3792_v0 = vsub.f32 %v3723_v54, %v2005_v46  ;;  %2054 = vadd.xlane.f32.xlu0 %v2036_v43 }
 0x6bb   : > { %v1972_v19 = vpop.xlane.xlu1 %1971  ;;  %v1982_v49 = vpop.xlane.xlu0 %1981 }
 0x6bc   : > { %v2003_v1 = vmul.f32 0.0078125, %v1972_v19  ;;  %v2008_v8 = vmul.f32 0.0078125, %v1982_v49  ;;  %v2037_v6 = vmul.f32 %v3792_v0, %v3792_v0  ;;  %v2034_v20 = vmul.f32 %v3789_v57, %v3789_v57 }
 0x6be   : > { %v3799_v58 = vsub.f32 %v3730_v41, %v2003_v1  ;;  %v3802_v5 = vsub.f32 %v3732_v2, %v2008_v8  ;;  %2056 = vadd.xlane.f32.xlu1 %v2037_v6  ;;  %2050 = vadd.xlane.f32.xlu0 %v2034_v20 }
 0x6bf   : > { %v1978_v54 = vpop.xlane.xlu0 %1977  ;;  %v1984_v9 = vpop.xlane.xlu1 %1983 }
 0x6c0   : > { %v2006_v10 = vmul.f32 0.0078125, %v1978_v54  ;;  %v2009_v7 = vmul.f32 0.0078125, %v1984_v9  ;;  %v2035_v27 = vmul.f32 %v3799_v58, %v3799_v58  ;;  %v2040_v11 = vmul.f32 %v3802_v5, %v3802_v5 }
 0x6c2   : > { %v3809_v23 = vsub.f32 %v3739_v52, %v2006_v10  ;;  %v3812_v41 = vsub.f32 %v3741_v63, %v2009_v7  ;;  %2052 = vadd.xlane.f32.xlu1 %v2035_v27  ;;  %2062 = vadd.xlane.f32.xlu0 %v2040_v11 }
 0x6c3   : > { %v1980_v2 = vpop.xlane.xlu1 %1979  ;;  %v1990_v14 = vpop.xlane.xlu0 %1989 }
 0x6c4   : > { %v2007_v31 = vmul.f32 0.0078125, %v1980_v2  ;;  %v2012_v61 = vmul.f32 0.0078125, %v1990_v14  ;;  %v2041_v33 = vmul.f32 %v3812_v41, %v3812_v41  ;;  %v2038_v36 = vmul.f32 %v3809_v23, %v3809_v23 }
 0x6c6   : > { %v3819_v16 = vsub.f32 %v3748_v12, %v2007_v31  ;;  %v3822_v52 = vsub.f32 %v3750_v28, %v2012_v61  ;;  %2064 = vadd.xlane.f32.xlu1 %v2041_v33  ;;  %2058 = vadd.xlane.f32.xlu0 %v2038_v36 }
 0x6c7   : > { %v1986_v63 = vpop.xlane.xlu0 %1985  ;;  %v1992_v45 = vpop.xlane.xlu1 %1991 }
 0x6c8   : > { %v2010_v59 = vmul.f32 0.0078125, %v1986_v63  ;;  %v2013_v18 = vmul.f32 0.0078125, %v1992_v45  ;;  %v2039_v24 = vmul.f32 %v3819_v16, %v3819_v16  ;;  %v2044_v32 = vmul.f32 %v3822_v52, %v3822_v52  ;;  %v3866_v45 = vld [vmem:[%s3946_s7] ss:$0 sm:$0xff] }
 0x6ca   : > { %v3829_v29 = vsub.f32 %v3757_v17, %v2010_v59  ;;  %v3832_v12 = vsub.f32 %v3759_v26, %v2013_v18  ;;  %2060 = vadd.xlane.f32.xlu1 %v2039_v24  ;;  %2070 = vadd.xlane.f32.xlu0 %v2044_v32 }
 0x6cb   : > { %v1988_v28 = vpop.xlane.xlu1 %1987 }
 0x6cc   : > { %v2011_v38 = vmul.f32 0.0078125, %v1988_v28  ;;  %v2045_v42 = vmul.f32 %v3832_v12, %v3832_v12  ;;  %v2042_v37 = vmul.f32 %v3829_v29, %v3829_v29 }
 0x6cd   : > { %v1994_v3 = vpop.xlane.xlu0 %1993 }
 0x6ce   : > { %v3839_v48 = vsub.f32 %v3765_v44, %v2011_v38  ;;  %v2014_v21 = vmul.f32 0.0078125, %v1994_v3  ;;  %2072 = vadd.xlane.f32.xlu1 %v2045_v42  ;;  %2066 = vadd.xlane.f32.xlu0 %v2042_v37 }
 0x6d0   : > { %v3842_v17 = vsub.f32 %v3769_v39, %v2014_v21  ;;  %v2043_v26 = vmul.f32 %v3839_v48, %v3839_v48 }
 0x6d1   : > { %v1996_v50 = vpop.xlane.xlu1 %1995  ;;  %v1998_v53 = vpop.xlane.xlu0 %1997 }
 0x6d2   : > { %v2015_v22 = vmul.f32 0.0078125, %v1996_v50  ;;  %v2016_v30 = vmul.f32 0.0078125, %v1998_v53  ;;  %2068 = vadd.xlane.f32.xlu1 %v2043_v26  ;;  %v2046_v35 = vmul.f32 %v3842_v17, %v3842_v17  ;;  %v3873_v26 = vld [vmem:[%s3947_s8] ss:$0 sm:$0xff] }
 0x6d4   : > { %v3849_v44 = vsub.f32 %v3774_v62, %v2015_v22  ;;  %v3852_v56 = vsub.f32 %v3776_v55, %v2016_v30  ;;  %2074 = vadd.xlane.f32.xlu0 %v2046_v35 }
 0x6d5   : > { %v2000_v39 = vpop.xlane.xlu1 %1999 }
 0x6d6   : > { %v2017_v60 = vmul.f32 0.0078125, %v2000_v39  ;;  %v2047_v25 = vmul.f32 %v3849_v44, %v3849_v44  ;;  %v2048_v4 = vmul.f32 %v3852_v56, %v3852_v56 }
 0x6d8   : > { %v3859_v34 = vsub.f32 %v3780_v15, %v2017_v60  ;;  %2076 = vadd.xlane.f32.xlu1 %v2047_v25  ;;  %2078 = vadd.xlane.f32.xlu0 %v2048_v4 }
 0x6da   : > { %v2049_v62 = vmul.f32 %v3859_v34, %v3859_v34 }
 0x6dc   : > { %2080 = vadd.xlane.f32.xlu1 %v2049_v62 }
 0x743   : > { %v2055_v55 = vpop.xlane.xlu0 %2054 }
 0x744   : > { %v2084_v47 = vmul.f32 0.0078125, %v2055_v55 }
 0x746   : > { %v2100_v13 = vadd.f32 1e-12, %v2084_v47 }
 0x747   : > { %v2057_v51 = vpop.xlane.xlu1 %2056  ;;  %v2051_v46 = vpop.xlane.xlu0 %2050 }
 0x748   : > { %3127 = vrsqrt.f32 %v2100_v13  ;;  %v2085_v43 = vmul.f32 0.0078125, %v2057_v51  ;;  %v2082_v19 = vmul.f32 0.0078125, %v2051_v46 }
 0x74a   : > { %v2101_v49 = vadd.f32 1e-12, %v2085_v43  ;;  %v2098_v1 = vadd.f32 1e-12, %v2082_v19 }
 0x74b   : > { %v2053_v8 = vpop.xlane.xlu1 %2052  ;;  %v2063_v6 = vpop.xlane.xlu0 %2062 }
 0x74c   : > { %3129 = vrsqrt.f32 %v2101_v49  ;;  %v2083_v15 = vmul.f32 0.0078125, %v2053_v8  ;;  %v2088_v20 = vmul.f32 0.0078125, %v2063_v6 }
 0x74d   : > { %3131 = vrsqrt.f32 %v2098_v1 }
 0x74e   : > { %v2099_v54 = vadd.f32 1e-12, %v2083_v15  ;;  %v2104_v9 = vadd.f32 1e-12, %v2088_v20 }
 0x74f   : > { %v2065_v10 = vpop.xlane.xlu1 %2064  ;;  %v2059_v7 = vpop.xlane.xlu0 %2058 }
 0x750   : > { %3133 = vrsqrt.f32 %v2099_v54  ;;  %v2089_v27 = vmul.f32 0.0078125, %v2065_v10  ;;  %v2086_v11 = vmul.f32 0.0078125, %v2059_v7 }
 0x751   : > { %3135 = vrsqrt.f32 %v2104_v9 }
 0x752   : > { %v2105_v2 = vadd.f32 1e-12, %v2089_v27  ;;  %v2102_v14 = vadd.f32 1e-12, %v2086_v11 }
 0x753   : > { %v2061_v31 = vpop.xlane.xlu1 %2060  ;;  %v2071_v61 = vpop.xlane.xlu0 %2070 }
 0x754   : > { %3137 = vrsqrt.f32 %v2105_v2  ;;  %v2087_v33 = vmul.f32 0.0078125, %v2061_v31  ;;  %v2092_v36 = vmul.f32 0.0078125, %v2071_v61 }
 0x755   : > { %v3128_v63 = vpop.eup %3127  ;;  %3139 = vrsqrt.f32 %v2102_v14 }
 0x756   : > { %v2132_v59 = vmul.f32 %v3128_v63, %v3784_v40  ;;  %v2103_v18 = vadd.f32 1e-12, %v2087_v33  ;;  %v2108_v24 = vadd.f32 1e-12, %v2092_v36 }
 0x757   : > { %v2073_v32 = vpop.xlane.xlu1 %2072  ;;  %v2067_v28 = vpop.xlane.xlu0 %2066 }
 0x758   : > { %3141 = vrsqrt.f32 %v2103_v18  ;;  %v2093_v38 = vmul.f32 0.0078125, %v2073_v32  ;;  %v2090_v42 = vmul.f32 0.0078125, %v2067_v28  ;;  %v2154_v3 = vmul.f32 %v3866_v45, %v2132_v59 }
 0x759   : > { %v3130_v37 = vpop.eup %3129  ;;  %3143 = vrsqrt.f32 %v2108_v24 }
 0x75a   : > { %v3132_v21 = vpop.eup %3131  ;;  %v2133_v50 = vmul.f32 %v3130_v37, %v3792_v0  ;;  %v2109_v40 = vadd.f32 1e-12, %v2093_v38  ;;  %v2106_v53 = vadd.f32 1e-12, %v2090_v42  ;;  %v2176_v25 = vadd.f32 %v3873_v26, %v2154_v3 }
 0x75b   : > { %v2130_v22 = vmul.f32 %v3132_v21, %v3789_v57  ;;  %v2069_v30 = vpop.xlane.xlu1 %2068 }
 0x75c   : > { %v2155_v35 = vmul.f32 %v3866_v45, %v2133_v50  ;;  %3145 = vrsqrt.f32 %v2109_v40  ;;  %v2091_v39 = vmul.f32 0.0078125, %v2069_v30 }
 0x75d   : > { %v3134_v60 = vpop.eup %3133  ;;  %v2152_v4 = vmul.f32 %v3866_v45, %v2130_v22  ;;  %3147 = vrsqrt.f32 %v2106_v53  ;;  %v2075_v62 = vpop.xlane.xlu0 %2074 }
 0x75e   : > { %v3136_v55 = vpop.eup %3135  ;;  %v2177_v0 = vadd.f32 %v3873_v26, %v2155_v35  ;;  %v2131_v47 = vmul.f32 %v3134_v60, %v3799_v58  ;;  %v2107_v13 = vadd.f32 1e-12, %v2091_v39  ;;  %v2094_v51 = vmul.f32 0.0078125, %v2075_v62 }
 0x75f   : > { %v2136_v57 = vmul.f32 %v3136_v55, %v3802_v5  ;;  %v2174_v1 = vadd.f32 %v3873_v26, %v2152_v4 }
 0x760   : > { %v2609_v46 = vpack.c.bf16 %v2177_v0, %v2176_v25  ;;  %v2153_v43 = vmul.f32 %v3866_v45, %v2131_v47  ;;  %3149 = vrsqrt.f32 %v2107_v13  ;;  %v2110_v19 = vadd.f32 1e-12, %v2094_v51 }
 0x761   : > { %v3138_v49 = vpop.eup %3137  ;;  %v2158_v58 = vmul.f32 %v3866_v45, %v2136_v57  ;;  %v2077_v8 = vpop.xlane.xlu1 %2076 }
 0x762   : > { %v2079_v6 = vpop.xlane.xlu0 %2078  ;;  %v3140_v15 = vpop.eup %3139  ;;  %2648 = vst [vmem:[%s3887_s14 + $0x8] sm:$0xff] %v2609_v46   ;;  %v2175_v20 = vadd.f32 %v3873_v26, %v2153_v43  ;;  %v2137_v54 = vmul.f32 %v3138_v49, %v3812_v41  ;;  %3151 = vrsqrt.f32 %v2110_v19  ;;  %v2095_v5 = vmul.f32 0.0078125, %v2077_v8 }
 0x763   : > { %v2134_v9 = vmul.f32 %v3140_v15, %v3809_v23  ;;  %v2096_v10 = vmul.f32 0.0078125, %v2079_v6  ;;  %v2180_v14 = vadd.f32 %v3873_v26, %v2158_v58 }
 0x764   : > { %v2604_v7 = vpack.c.bf16 %v2175_v20, %v2174_v1  ;;  %v2159_v27 = vmul.f32 %v3866_v45, %v2137_v54  ;;  %v2111_v11 = vadd.f32 1e-12, %v2095_v5 }
 0x765   : > { %v3142_v2 = vpop.eup %3141  ;;  %v2156_v31 = vmul.f32 %v3866_v45, %v2134_v9  ;;  %v2112_v61 = vadd.f32 1e-12, %v2096_v10  ;;  %v2081_v33 = vpop.xlane.xlu1 %2080 }
 0x766   : > { %v3144_v36 = vpop.eup %3143  ;;  %2605 = vst [vmem:[%s3887_s14] sm:$0xff] %v2604_v7   ;;  %v2181_v41 = vadd.f32 %v3873_v26, %v2159_v27  ;;  %v2135_v63 = vmul.f32 %v3142_v2, %v3819_v16  ;;  %3153 = vrsqrt.f32 %v2111_v11  ;;  %v2097_v23 = vmul.f32 0.0078125, %v2081_v33 }
 0x767   : > { %v2140_v59 = vmul.f32 %v3144_v36, %v3822_v52  ;;  %3155 = vrsqrt.f32 %v2112_v61  ;;  %v2178_v38 = vadd.f32 %v3873_v26, %v2156_v31 }
 0x768   : > { %v2619_v18 = vpack.c.bf16 %v2181_v41, %v2180_v14  ;;  %v2157_v24 = vmul.f32 %v3866_v45, %v2135_v63  ;;  %v2113_v32 = vadd.f32 1e-12, %v2097_v23 }
 0x769   : > { %v3146_v28 = vpop.eup %3145  ;;  %v2162_v3 = vmul.f32 %v3866_v45, %v2140_v59 }
 0x76a   : > { %v3148_v42 = vpop.eup %3147  ;;  %2650 = vst [vmem:[%s3887_s14 + $0x18] sm:$0xff] %v2619_v18   ;;  %v2179_v37 = vadd.f32 %v3873_v26, %v2157_v24  ;;  %v2141_v16 = vmul.f32 %v3146_v28, %v3832_v12  ;;  %3157 = vrsqrt.f32 %v2113_v32 }
 0x76b   : > { %v2138_v52 = vmul.f32 %v3148_v42, %v3829_v29  ;;  %v2184_v53 = vadd.f32 %v3873_v26, %v2162_v3 }
 0x76c   : > { %v2614_v21 = vpack.c.bf16 %v2179_v37, %v2178_v38  ;;  %v2163_v50 = vmul.f32 %v3866_v45, %v2141_v16 }
 0x76d   : > { %v3150_v40 = vpop.eup %3149  ;;  %v2160_v30 = vmul.f32 %v3866_v45, %v2138_v52 }
 0x76e   : > { %2649 = vst [vmem:[%s3887_s14 + $0x10] sm:$0xff] %v2614_v21   ;;  %v2185_v22 = vadd.f32 %v3873_v26, %v2163_v50  ;;  %v2139_v35 = vmul.f32 %v3150_v40, %v3839_v48 }
 0x76f   : > { %v3152_v39 = vpop.eup %3151  ;;  %v2182_v25 = vadd.f32 %v3873_v26, %v2160_v30 }
 0x770   : > { %v2629_v60 = vpack.c.bf16 %v2185_v22, %v2184_v53  ;;  %v2161_v12 = vmul.f32 %v3866_v45, %v2139_v35  ;;  %v2142_v29 = vmul.f32 %v3152_v39, %v3842_v17 }
 0x772   : > { %2652 = vst [vmem:[%s3887_s14 + $0x28] sm:$0xff] %v2629_v60   ;;  %v2183_v4 = vadd.f32 %v3873_v26, %v2161_v12  ;;  %v2164_v47 = vmul.f32 %v3866_v45, %v2142_v29 }
 0x773   : > { %v3154_v62 = vpop.eup %3153 }
 0x774   : > { %v3156_v55 = vpop.eup %3155  ;;  %v2624_v0 = vpack.c.bf16 %v2183_v4, %v2182_v25  ;;  %v2143_v48 = vmul.f32 %v3154_v62, %v3849_v44  ;;  %v2186_v57 = vadd.f32 %v3873_v26, %v2164_v47 }
 0x775   : > { %v2144_v13 = vmul.f32 %v3156_v55, %v3852_v56 }
 0x776   : > { %2651 = vst [vmem:[%s3887_s14 + $0x20] sm:$0xff] %v2624_v0   ;;  %v2165_v51 = vmul.f32 %v3866_v45, %v2143_v48 }
 0x777   : > { %v3158_v17 = vpop.eup %3157  ;;  %v2166_v43 = vmul.f32 %v3866_v45, %v2144_v13 }
 0x778   : > { %v2187_v46 = vadd.f32 %v3873_v26, %v2165_v51  ;;  %v2145_v19 = vmul.f32 %v3158_v17, %v3859_v34 }
 0x779   : > { %v2188_v44 = vadd.f32 %v3873_v26, %v2166_v43 }
 0x77a   : > { %v2634_v49 = vpack.c.bf16 %v2187_v46, %v2186_v57  ;;  %v2167_v1 = vmul.f32 %v3866_v45, %v2145_v19 }
 0x77c   : > { %2653 = vst [vmem:[%s3887_s14 + $0x30] sm:$0xff] %v2634_v49   ;;  %v2189_v56 = vadd.f32 %v3873_v26, %v2167_v1 }
 0x77e   : > { %v2639_v58 = vpack.c.bf16 %v2189_v56, %v2188_v44 }
 0x780   : > { %2654 = vst [vmem:[%s3887_s14 + $0x38] sm:$0xff] %v2639_v58  }
 0x781 PF: > { %s19_s30 = sadd.s32 1, %s3165_s30  }
 0x782   : > { %p16_p4 = scmp.ge.s32.totalorder %s19_s30, 4  }
 0x784   :  { %18 = sbr.rel (!%p16_p4) target bundleno = 1 (0x1), region = 101 }

// kernel: xlnet_finetune_forward.12
= control target key start
LH: loop header
LB: loop body
LE: loop exit
PB: predicated region body
PF: predicated region fallthrough
CT: control target
= control target key end

     0   :  { %s2858_s24 = smov 0   ;;  %s4083_s0 = inlined_call_operand.vmem [shape: bf16[256,128], index: 0, kind: input, shape index: {}]   ;;  %s4084_s1 = inlined_call_operand.vmem [shape: bf16[128,512], index: 1, kind: input, shape index: {}]   ;;  %s4085_s2 = inlined_call_operand.vmem [shape: f32[1,512], index: 2, kind: input, shape index: {}]   ;;  %s4086_s3 = inlined_call_operand.vmem [shape: bf16[512,128], index: 3, kind: input, shape index: {}]   ;;  %s4087_s4 = inlined_call_operand.vmem [shape: f32[1,128], index: 4, kind: input, shape index: {}]   ;;  %s4088_s5 = inlined_call_operand.vmem [shape: f32[1,128], index: 5, kind: input, shape index: {}]   ;;  %s4089_s6 = inlined_call_operand.vmem [shape: f32[1,128], index: 6, kind: input, shape index: {}]   ;;  %s4090_s7 = inlined_call_operand.vmem [shape: bf16[256,128], index: 7, kind: output, shape index: {}]  }
   0x1 LB: > { %s2243_s25 = sadd.s32 4294967295, %s2815_s24   ;;  %p2247_p0 = scmp.ge.s32.totalorder %s2815_s24, 1  ;;  %s2815_s24 = sphi %s2858_s24, %s17_s24  }
   0x2   : > { %p238_p1 = scmp.lt.s32.totalorder %s2815_s24, 3 }
   0x4   : > { %p239_p2 = pnand %p2247_p0, %p238_p1 }
   0x6   : > { %242 = sbr.rel (%p239_p2) target bundleno = 932 (0x3a4), region = 48 }
   0xb   : > { %v2545_v0 = vld [vmem:[%s4084_s1 + $0xe4] ss:$16 sps:$4 sm:$0xff]   ;;  %v2547_v1 = vld [vmem:[%s4084_s1 + $0xec] ss:$16 sps:$4 sm:$0xff]   ;;  %v2817_v2 = vmov 0   ;;  %s2248_s10 = sshll.u32 %s2243_s25, 4 }
   0xc   : > { %593 = vmatprep.mubr.bf16.mxu0 %v2817_v2  ;;  %706 = vmatprep.mubr.bf16.mxu1 %v2817_v2  ;;  %v2549_v3 = vld [vmem:[%s4084_s1 + $0xe0] ss:$16 sps:$4 sm:$0xff]   ;;  %v2550_v4 = vld [vmem:[%s4084_s1 + $0xe8] ss:$16 sps:$4 sm:$0xff]   ;;  %v2551_v5 = vld [vmem:[%s4084_s1 + $0xc4] ss:$16 sps:$4 sm:$0xff]  }
   0xd   : > { %561 = vmatprep.subr.bf16.mxu0 %v2545_v0  ;;  %674 = vmatprep.subr.bf16.mxu1 %v2547_v1  ;;  %v2553_v6 = vld [vmem:[%s4084_s1 + $0xcc] ss:$16 sps:$4 sm:$0xff]   ;;  %v2555_v7 = vld [vmem:[%s4084_s1 + $0xc0] ss:$16 sps:$4 sm:$0xff]   ;;  %v2556_v8 = vld [vmem:[%s4084_s1 + $0xc8] ss:$16 sps:$4 sm:$0xff]  }
   0xe   : > { %562 = vmatpush1.bf16.msra.mxu0 %v2549_v3  ;;  %675 = vmatpush1.bf16.msra.mxu1 %v2550_v4  ;;  %v2557_v9 = vld [vmem:[%s4084_s1 + $0xa4] ss:$16 sps:$4 sm:$0xff]   ;;  %v2559_v10 = vld [vmem:[%s4084_s1 + $0xac] ss:$16 sps:$4 sm:$0xff]   ;;  %v2561_v11 = vld [vmem:[%s4084_s1 + $0xa0] ss:$16 sps:$4 sm:$0xff]  }
   0xf   : > { %563 = vmatprep.subr.bf16.mxu0 %v2551_v5  ;;  %676 = vmatprep.subr.bf16.mxu1 %v2553_v6  ;;  %v2562_v12 = vld [vmem:[%s4084_s1 + $0xa8] ss:$16 sps:$4 sm:$0xff]   ;;  %v2563_v13 = vld [vmem:[%s4084_s1 + $0x84] ss:$16 sps:$4 sm:$0xff]   ;;  %v2565_v14 = vld [vmem:[%s4084_s1 + $0x8c] ss:$16 sps:$4 sm:$0xff]  }
  0x10   : > { %v2567_v15 = vld [vmem:[%s4084_s1 + $0x80] ss:$16 sps:$4 sm:$0xff]   ;;  %v2568_v16 = vld [vmem:[%s4084_s1 + $0x88] ss:$16 sps:$4 sm:$0xff]   ;;  %v2569_v17 = vld [vmem:[%s4084_s1 + $0x64] ss:$16 sps:$4 sm:$0xff]  }
  0x11   : > { %v2571_v18 = vld [vmem:[%s4084_s1 + $0x6c] ss:$16 sps:$4 sm:$0xff]   ;;  %p271_p3 = scmp.lt.s32.totalorder %s2248_s10, 31  ;;  %v2573_v19 = vld [vmem:[%s4084_s1 + $0x60] ss:$16 sps:$4 sm:$0xff]  }
  0x12   : > { %564 = vmatpush1.bf16.msra.mxu0 %v2555_v7  ;;  %677 = vmatpush1.bf16.msra.mxu1 %v2556_v8  ;;  %v2574_v20 = vld [vmem:[%s4084_s1 + $0x68] ss:$16 sps:$4 sm:$0xff]   ;;  %v2575_v21 = vld [vmem:[%s4084_s1 + $0x44] ss:$16 sps:$4 sm:$0xff]   ;;  %v2577_v22 = vld [vmem:[%s4084_s1 + $0x4c] ss:$16 sps:$4 sm:$0xff]  }
  0x13   : > { %565 = vmatprep.subr.bf16.mxu0 %v2557_v9  ;;  %678 = vmatprep.subr.bf16.mxu1 %v2559_v10  ;;  %s4275_s10 = smov (!%p271_p3, %s2248_s10), 31  ;;  %v2579_v23 = vld [vmem:[%s4084_s1 + $0x40] ss:$16 sps:$4 sm:$0xff]   ;;  %v2580_v24 = vld [vmem:[%s4084_s1 + $0x48] ss:$16 sps:$4 sm:$0xff]   ;;  %v333_v9 = vlaneseq }
  0x14   : > { %v2581_v25 = vld [vmem:[%s4084_s1 + $0x24] ss:$16 sps:$4 sm:$0xff]   ;;  %v2583_v26 = vld [vmem:[%s4084_s1 + $0x2c] ss:$16 sps:$4 sm:$0xff]   ;;  %s2249_s14 = sshll.u32 %s4275_s10, 2 }
  0x15   : > { %v2585_v27 = vld [vmem:[%s4084_s1 + $0x20] ss:$16 sps:$4 sm:$0xff]   ;;  %v2586_v28 = vld [vmem:[%s4084_s1 + $0x28] ss:$16 sps:$4 sm:$0xff]   ;;  %v2587_v29 = vld [vmem:[%s4084_s1 + $0x4] ss:$16 sps:$4 sm:$0xff]   ;;  %s2965_s22 = scalar_lea.vmem %s4083_s0, %s2249_s14  ;;  %s4028_s28 = scalar_lea.vmem %s4090_s7, %s2249_s14 }
  0x16   : > { %566 = vmatpush1.bf16.msra.mxu0 %v2561_v11  ;;  %679 = vmatpush1.bf16.msra.mxu1 %v2562_v12  ;;  %v2589_v30 = vld [vmem:[%s4084_s1 + $0xc] ss:$16 sps:$4 sm:$0xff]   ;;  %v2591_v31 = vld [vmem:[%s4084_s1] ss:$16 sps:$4 sm:$0xff]   ;;  %v2592_v32 = vld [vmem:[%s4084_s1 + $0x8] ss:$16 sps:$4 sm:$0xff]  }
  0x17   : > { %567 = vmatprep.subr.bf16.mxu0 %v2563_v13  ;;  %680 = vmatprep.subr.bf16.mxu1 %v2565_v14  ;;  %v283_v33 = vld [vmem:[%s2965_s22] sm:$0xff]   ;;  %v2601_v34 = vld [vmem:[%s4086_s3 + $0x78] sm:$0xff]   ;;  %v2605_v38 = vld [vmem:[%s4086_s3 + $0x70] sm:$0xff]   ;;  %v334_v10 = vshrl.u32 %v333_v9, 7 }
  0x18   : > { %v2603_v35 = vld [vmem:[%s4086_s3 + $0xf8] sm:$0xff]   ;;  %v285_v39 = vld [vmem:[%s2965_s22 + $0x8] sm:$0xff]   ;;  %v2607_v40 = vld [vmem:[%s4086_s3 + $0xf0] sm:$0xff]  }
  0x19   : > { %v2602_v36 = vld [vmem:[%s4086_s3 + $0x38] sm:$0xff]   ;;  %v2606_v41 = vld [vmem:[%s4086_s3 + $0x30] sm:$0xff]   ;;  %v2609_v43 = vld [vmem:[%s4086_s3 + $0x68] sm:$0xff]   ;;  %v335_v11 = vsub.s32 0, %v334_v10  ;;  %v343_v12 = vsub.s32 2, %v334_v10  ;;  %v339_v14 = vsub.s32 1, %v334_v10 }
  0x1a   : > { %568 = vmatpush1.bf16.msra.mxu0 %v2567_v15  ;;  %681 = vmatpush1.bf16.msra.mxu1 %v2568_v16  ;;  %v2604_v37 = vld [vmem:[%s4086_s3 + $0xb8] sm:$0xff]   ;;  %v2608_v42 = vld [vmem:[%s4086_s3 + $0xb0] sm:$0xff]   ;;  %v2611_v44 = vld [vmem:[%s4086_s3 + $0xe8] sm:$0xff]   ;;  %v347_v15 = vsub.s32 3, %v334_v10 }
  0x1b   : > { %569 = vmatprep.subr.bf16.mxu0 %v2569_v17  ;;  %682 = vmatprep.subr.bf16.mxu1 %v2571_v18  ;;  %v2610_v45 = vld [vmem:[%s4086_s3 + $0x28] sm:$0xff]   ;;  %v2613_v47 = vld [vmem:[%s4086_s3 + $0x60] sm:$0xff]   ;;  %v287_v48 = vld [vmem:[%s2965_s22 + $0x10] sm:$0xff]  }
  0x1c   : > { %v2612_v46 = vld [vmem:[%s4086_s3 + $0xa8] sm:$0xff]   ;;  %v289_v49 = vld [vmem:[%s2965_s22 + $0x18] sm:$0xff]   ;;  %v291_v50 = vld [vmem:[%s2965_s22 + $0x20] sm:$0xff]  }
  0x1d   : > { %v293_v51 = vld [vmem:[%s2965_s22 + $0x28] sm:$0xff]   ;;  %v295_v52 = vld [vmem:[%s2965_s22 + $0x30] sm:$0xff]   ;;  %v297_v53 = vld [vmem:[%s2965_s22 + $0x38] sm:$0xff]  }
  0x1e   : > { %570 = vmatpush1.bf16.msra.mxu0 %v2573_v19  ;;  %683 = vmatpush1.bf16.msra.mxu1 %v2574_v20  ;;  %v2614_v54 = vld [vmem:[%s4086_s3 + $0x20] sm:$0xff]   ;;  %v2617_v57 = vld [vmem:[%s4086_s3 + $0x58] sm:$0xff]   ;;  %v2621_v61 = vld [vmem:[%s4086_s3 + $0x50] sm:$0xff]  }
  0x1f   : > { %571 = vmatprep.subr.bf16.mxu0 %v2575_v21  ;;  %684 = vmatprep.subr.bf16.mxu1 %v2577_v22  ;;  %v2615_v55 = vld [vmem:[%s4086_s3 + $0xe0] sm:$0xff]   ;;  %v2618_v58 = vld [vmem:[%s4086_s3 + $0x18] sm:$0xff]   ;;  %v2622_v62 = vld [vmem:[%s4086_s3 + $0x10] sm:$0xff]  }
  0x20   : > { %v2616_v56 = vld [vmem:[%s4086_s3 + $0xa0] sm:$0xff]   ;;  %v2619_v59 = vld [vmem:[%s4086_s3 + $0xd8] sm:$0xff]   ;;  %v2623_v63 = vld [vmem:[%s4086_s3 + $0xd0] sm:$0xff]  }
  0x21   : > { %v2620_v60 = vld [vmem:[%s4086_s3 + $0x98] sm:$0xff]   ;;  %v2624_v0 = vld [vmem:[%s4086_s3 + $0x90] sm:$0xff]   ;;  %v2625_v1 = vld [vmem:[%s4086_s3 + $0x48] sm:$0xff]  }
  0x22   : > { %572 = vmatpush1.bf16.msra.mxu0 %v2579_v23  ;;  %685 = vmatpush1.bf16.msra.mxu1 %v2580_v24  ;;  %v2627_v3 = vld [vmem:[%s4086_s3 + $0xc8] sm:$0xff]   ;;  %v2629_v5 = vld [vmem:[%s4086_s3 + $0x40] sm:$0xff]  }
  0x23   : > { %573 = vmatprep.subr.bf16.mxu0 %v2581_v25  ;;  %686 = vmatprep.subr.bf16.mxu1 %v2583_v26  ;;  %v2628_v4 = vld [vmem:[%s4086_s3 + $0x88] sm:$0xff]   ;;  %v2631_v6 = vld [vmem:[%s4086_s3 + $0xc0] sm:$0xff]  }
  0x24   : > { %v2630_v7 = vld [vmem:[%s4086_s3] sm:$0xff]  }
  0x25   : > { %v2632_v8 = vld [vmem:[%s4086_s3 + $0x80] sm:$0xff]  }
  0x26   : > { %574 = vmatpush1.bf16.msra.mxu0 %v2585_v27  ;;  %687 = vmatpush1.bf16.msra.mxu1 %v2586_v28  ;;  %v331_v13 = vld [vmem:[%s4085_s2] sm:$0xf] }
  0x27   : > { %575 = vmatprep.subr.bf16.mxu0 %v2587_v29  ;;  %688 = vmatprep.subr.bf16.mxu1 %v2589_v30  ;;  %v3097_v16 = vrot.slane %v331_v13, %v335_v11  ;;  %v3099_v17 = vrot.slane %v331_v13, %v343_v12  ;;  %v3101_v20 = vrot.slane %v331_v13, %v339_v14 }
  0x28   : > { %v3103_v21 = vrot.slane %v331_v13, %v347_v15 }
  0x2a   : > { %576 = vmatpush1.bf16.msra.mxu0 %v2591_v31  ;;  %689 = vmatpush1.bf16.msra.mxu1 %v2592_v32 }
  0x2b   : > { %2408 = vmatprep.subr.bf16.mxu0 %v2601_v34  ;;  %2472 = vmatprep.subr.bf16.mxu1 %v2603_v35 }
  0x2d   : > { %594 = vmatmul.mubr.bf16.vlgmr.msra.gmra.mxu0 %v283_v33  ;;  %707 = vmatmul.mubr.bf16.vlgmr.msra.gmra.mxu1 %v283_v33 }
  0x2e   : > { %603 = vmatprep.mubr.bf16.mxu0 %v2817_v2  ;;  %716 = vmatprep.mubr.bf16.mxu1 %v2817_v2 }
  0x2f   : > { %2409 = vmatpush3.bf16.msra.mxu0 %v2602_v36  ;;  %2473 = vmatpush3.bf16.msra.mxu1 %v2604_v37 }
  0x30   : > { %2410 = vmatprep.subr.bf16.mxu0 %v2605_v38  ;;  %2474 = vmatprep.subr.bf16.mxu1 %v2607_v40 }
  0x33   : > { %2411 = vmatpush3.bf16.msra.mxu0 %v2606_v41  ;;  %2475 = vmatpush3.bf16.msra.mxu1 %v2608_v42 }
  0x34   : > { %2412 = vmatprep.subr.bf16.mxu0 %v2609_v43  ;;  %2476 = vmatprep.subr.bf16.mxu1 %v2611_v44 }
  0x35   : > { %604 = vmatmul.mubr.bf16.gmra.mxu0 %v285_v39  ;;  %717 = vmatmul.mubr.bf16.gmra.mxu1 %v285_v39 }
  0x36   : > { %613 = vmatprep.mubr.bf16.mxu0 %v2817_v2  ;;  %726 = vmatprep.mubr.bf16.mxu1 %v2817_v2 }
  0x37   : > { %2413 = vmatpush3.bf16.msra.mxu0 %v2610_v45  ;;  %2477 = vmatpush3.bf16.msra.mxu1 %v2612_v46 }
  0x38   : > { %2414 = vmatprep.subr.bf16.mxu0 %v2613_v47  ;;  %2478 = vmatprep.subr.bf16.mxu1 %v2615_v55 }
  0x3b   : > { %2415 = vmatpush3.bf16.msra.mxu0 %v2614_v54  ;;  %2479 = vmatpush3.bf16.msra.mxu1 %v2616_v56 }
  0x3c   : > { %2416 = vmatprep.subr.bf16.mxu0 %v2617_v57  ;;  %2480 = vmatprep.subr.bf16.mxu1 %v2619_v59 }
  0x3d   : > { %614 = vmatmul.mubr.bf16.gmra.mxu0 %v287_v48  ;;  %727 = vmatmul.mubr.bf16.gmra.mxu1 %v287_v48 }
  0x3e   : > { %623 = vmatprep.mubr.bf16.mxu0 %v2817_v2  ;;  %736 = vmatprep.mubr.bf16.mxu1 %v2817_v2 }
  0x3f   : > { %2417 = vmatpush3.bf16.msra.mxu0 %v2618_v58  ;;  %2481 = vmatpush3.bf16.msra.mxu1 %v2620_v60 }
  0x40   : > { %2418 = vmatprep.subr.bf16.mxu0 %v2621_v61  ;;  %2482 = vmatprep.subr.bf16.mxu1 %v2623_v63 }
  0x43   : > { %2419 = vmatpush3.bf16.msra.mxu0 %v2622_v62  ;;  %2483 = vmatpush3.bf16.msra.mxu1 %v2624_v0 }
  0x44   : > { %2420 = vmatprep.subr.bf16.mxu0 %v2625_v1  ;;  %2484 = vmatprep.subr.bf16.mxu1 %v2627_v3 }
  0x45   : > { %624 = vmatmul.mubr.bf16.gmra.mxu0 %v289_v49  ;;  %737 = vmatmul.mubr.bf16.gmra.mxu1 %v289_v49 }
  0x46   : > { %633 = vmatprep.mubr.bf16.mxu0 %v2817_v2  ;;  %746 = vmatprep.mubr.bf16.mxu1 %v2817_v2 }
  0x47   : > { %2485 = vmatpush3.bf16.msra.mxu1 %v2628_v4 }
  0x48   : > { %2486 = vmatprep.subr.bf16.mxu1 %v2631_v6 }
  0x4b   : > { %2487 = vmatpush3.bf16.msra.mxu1 %v2632_v8 }
  0x4d   : > { %634 = vmatmul.mubr.bf16.gmra.mxu0 %v291_v50  ;;  %747 = vmatmul.mubr.bf16.gmra.mxu1 %v291_v50 }
  0x4e   : > { %643 = vmatprep.mubr.bf16.mxu0 %v2817_v2  ;;  %756 = vmatprep.mubr.bf16.mxu1 %v2817_v2 }
  0x55   : > { %644 = vmatmul.mubr.bf16.gmra.mxu0 %v293_v51  ;;  %757 = vmatmul.mubr.bf16.gmra.mxu1 %v293_v51 }
  0x56   : > { %653 = vmatprep.mubr.bf16.mxu0 %v2817_v2  ;;  %766 = vmatprep.mubr.bf16.mxu1 %v2817_v2 }
  0x5d   : > { %654 = vmatmul.mubr.bf16.gmra.mxu0 %v295_v52  ;;  %767 = vmatmul.mubr.bf16.gmra.mxu1 %v295_v52 }
  0x5e   : > { %663 = vmatprep.mubr.bf16.mxu0 %v2817_v2  ;;  %776 = vmatprep.mubr.bf16.mxu1 %v2817_v2  ;;  %v2626_v2 = vld [vmem:[%s4086_s3 + $0x8] sm:$0xff]  }
  0x5f   : > { %2421 = vmatpush3.bf16.msra.mxu0 %v2626_v2 }
  0x60   : > { %2422 = vmatprep.subr.bf16.mxu0 %v2629_v5 }
  0x63   : > { %2423 = vmatpush3.bf16.msra.mxu0 %v2630_v7 }
  0x65   : > { %664 = vmatmul.mubr.bf16.gmra.mxu0 %v297_v53  ;;  %777 = vmatmul.mubr.bf16.gmra.mxu1 %v297_v53 }
  0xed   : > { %v595_v18 = vpop.f32.mrf.mxu0  ;;  %v708_v19 = vpop.f32.mrf.mxu1 }
  0xee   : > { %v596_v22 = vadd.f32 %v595_v18, %v3097_v16  ;;  %v709_v23 = vadd.f32 %v708_v19, %v3099_v17 }
  0xef   : > { %v597_v24 = vpop.f32.mrf.mxu0  ;;  %v710_v25 = vpop.f32.mrf.mxu1 }
  0xf0   : > { %v851_v26 = vmul.f32 0.044715, %v596_v22  ;;  %v853_v27 = vmul.f32 0.044715, %v709_v23  ;;  %v3108_v28 = vadd.f32 %v597_v24, %v3101_v20  ;;  %v3111_v29 = vadd.f32 %v710_v25, %v3103_v21 }
  0xf1   : > { %v599_v30 = vpop.f32.mrf.mxu0  ;;  %v712_v31 = vpop.f32.mrf.mxu1  ;;  %v3123_v53 = vmul.f32 0.5, %v596_v22  ;;  %v3125_v56 = vmul.f32 0.5, %v709_v23 }
  0xf2   : > { %v915_v32 = vmul.f32 %v851_v26, %v596_v22  ;;  %v917_v33 = vmul.f32 %v853_v27, %v709_v23  ;;  %v600_v34 = vadd.f32 %v599_v30, %v3097_v16  ;;  %v713_v35 = vadd.f32 %v712_v31, %v3099_v17 }
  0xf3   : > { %v601_v36 = vpop.f32.mrf.mxu0  ;;  %v714_v37 = vpop.f32.mrf.mxu1  ;;  %v852_v41 = vmul.f32 0.044715, %v3108_v28  ;;  %v854_v46 = vmul.f32 0.044715, %v3111_v29  ;;  %v3134_v1 = vmul.f32 0.5, %v3108_v28  ;;  %v3144_v7 = vmul.f32 0.5, %v3111_v29 }
  0xf4   : > { %v979_v38 = vmul.f32 %v915_v32, %v596_v22  ;;  %v981_v39 = vmul.f32 %v917_v33, %v709_v23  ;;  %v855_v40 = vmul.f32 0.044715, %v600_v34  ;;  %v857_v42 = vmul.f32 0.044715, %v713_v35 }
  0xf5   : > { %v605_v43 = vpop.f32.mrf.mxu0  ;;  %v718_v44 = vpop.f32.mrf.mxu1  ;;  %v3118_v48 = vadd.f32 %v601_v36, %v3101_v20  ;;  %v3121_v50 = vadd.f32 %v714_v37, %v3103_v21  ;;  %v916_v57 = vmul.f32 %v852_v41, %v3108_v28  ;;  %v918_v63 = vmul.f32 %v854_v46, %v3111_v29  ;;  %4146 = vst [vmem:[#allocation3_spill] sm:$0xff] %v3134_v1 }
  0xf6   : > { %v1043_v45 = vadd.f32 %v979_v38, %v596_v22  ;;  %v919_v47 = vmul.f32 %v855_v40, %v600_v34  ;;  %v921_v49 = vmul.f32 %v857_v42, %v713_v35  ;;  %v1045_v54 = vadd.f32 %v981_v39, %v709_v23  ;;  %4148 = vst [vmem:[#allocation5_spill] sm:$0xff] %v3144_v7 }
  0xf7   : > { %v607_v51 = vpop.f32.mrf.mxu0  ;;  %v720_v52 = vpop.f32.mrf.mxu1  ;;  %v856_v59 = vmul.f32 0.044715, %v3118_v48  ;;  %v3131_v0 = vadd.f32 %v605_v43, %v3097_v16  ;;  %v858_v2 = vmul.f32 0.044715, %v3121_v50  ;;  %v3138_v3 = vadd.f32 %v718_v44, %v3099_v17 }
  0xf8   : > { %v983_v55 = vmul.f32 %v919_v47, %v600_v34  ;;  %v985_v58 = vmul.f32 %v921_v49, %v713_v35  ;;  %v1107_v62 = vmul.f32 0.7978846, %v1043_v45  ;;  %v3141_v4 = vadd.f32 %v607_v51, %v3101_v20 }
  0xf9   : > { %v609_v60 = vpop.f32.mrf.mxu0  ;;  %v722_v61 = vpop.f32.mrf.mxu1  ;;  %4145 = vst [vmem:[#allocation2_spill] sm:$0xff] %v3131_v0  ;;  %4147 = vst [vmem:[#allocation4_spill] sm:$0xff] %v3138_v3  ;;  %v1109_v8 = vmul.f32 0.7978846, %v1045_v54  ;;  %v3146_v9 = vmul.f32 0.5, %v600_v34  ;;  %v3148_v11 = vmul.f32 0.5, %v713_v35  ;;  %v3151_v12 = vmul.f32 %v916_v57, %v3108_v28 }
  0xfa   : > { %v1047_v10 = vadd.f32 %v983_v55, %v600_v34  ;;  %v1049_v13 = vadd.f32 %v985_v58, %v713_v35  ;;  %v920_v14 = vmul.f32 %v856_v59, %v3118_v48  ;;  %v3155_v15 = vadd.f32 %v720_v52, %v3103_v21 }
  0xfb   : > { %v611_v5 = vpop.f32.mrf.mxu0  ;;  %v724_v6 = vpop.f32.mrf.mxu1  ;;  %2641 = vtanh.f32 %v1107_v62  ;;  %v3158_v22 = vmul.f32 %v918_v63, %v3111_v29  ;;  %v859_v23 = vmul.f32 0.044715, %v3131_v0  ;;  %v3162_v24 = vadd.f32 %v609_v60, %v3097_v16 }
  0xfc   : > { %4149 = vst [vmem:[#allocation6_spill] sm:$0xff] %v3155_v15  ;;  %v922_v25 = vmul.f32 %v858_v2, %v3121_v50  ;;  %v861_v26 = vmul.f32 0.044715, %v3138_v3  ;;  %v860_v27 = vmul.f32 0.044715, %v3141_v4  ;;  %v3168_v30 = vadd.f32 %v722_v61, %v3099_v17 }
  0xfd   : > { %v615_v18 = vpop.f32.mrf.mxu0  ;;  %v728_v19 = vpop.f32.mrf.mxu1  ;;  %4150 = vst [vmem:[#allocation7_spill] sm:$0xff] %v3162_v24  ;;  %2643 = vtanh.f32 %v1109_v8  ;;  %v1111_v33 = vmul.f32 0.7978846, %v1047_v10  ;;  %v862_v34 = vmul.f32 0.044715, %v3155_v15  ;;  %v3172_v35 = vadd.f32 %v611_v5, %v3101_v20 }
  0xfe   : > { %4151 = vst [vmem:[#allocation8_spill] sm:$0xff] %v3168_v30  ;;  %v1113_v36 = vmul.f32 0.7978846, %v1049_v13  ;;  %v3175_v37 = vmul.f32 %v920_v14, %v3118_v48  ;;  %v3178_v38 = vadd.f32 %v724_v6, %v3103_v21  ;;  %v3181_v39 = vadd.f32 %v615_v18, %v3097_v16 }
  0xff   : > { %v617_v31 = vpop.f32.mrf.mxu0  ;;  %v730_v32 = vpop.f32.mrf.mxu1  ;;  %v923_v42 = vmul.f32 %v859_v23, %v3131_v0  ;;  %v863_v43 = vmul.f32 0.044715, %v3162_v24  ;;  %v3186_v44 = vadd.f32 %v728_v19, %v3099_v17  ;;  %v3192_v46 = vmul.f32 %v922_v25, %v3121_v50 }
 0x100   : > { %4152 = vst [vmem:[#allocation9_spill] sm:$0xff] %v3178_v38  ;;  %4153 = vst [vmem:[#allocation10_spill] sm:$0xff] %v3181_v39  ;;  %v3189_v45 = vadd.f32 %v617_v31, %v3101_v20  ;;  %v925_v47 = vmul.f32 %v861_v26, %v3138_v3  ;;  %v924_v49 = vmul.f32 %v860_v27, %v3141_v4  ;;  %v865_v51 = vmul.f32 0.044715, %v3168_v30 }
 0x101   : > { %v619_v40 = vpop.f32.mrf.mxu0  ;;  %v732_v41 = vpop.f32.mrf.mxu1  ;;  %4154 = vst [vmem:[#allocation11_spill] sm:$0xff] %v3186_v44  ;;  %2645 = vtanh.f32 %v1111_v33  ;;  %v926_v55 = vmul.f32 %v862_v34, %v3155_v15  ;;  %v864_v57 = vmul.f32 0.044715, %v3172_v35  ;;  %v866_v58 = vmul.f32 0.044715, %v3178_v38 }
 0x102   : > { %4155 = vst [vmem:[#allocation12_spill] sm:$0xff] %v3189_v45  ;;  %2647 = vtanh.f32 %v1113_v36  ;;  %v867_v59 = vmul.f32 0.044715, %v3181_v39  ;;  %v869_v60 = vmul.f32 0.044715, %v3186_v44  ;;  %v3204_v2 = vmul.f32 %v923_v42, %v3131_v0 }
 0x103   : > { %v621_v52 = vpop.f32.mrf.mxu0  ;;  %v734_v54 = vpop.f32.mrf.mxu1  ;;  %v868_v61 = vmul.f32 0.044715, %v3189_v45  ;;  %v927_v5 = vmul.f32 %v863_v43, %v3162_v24  ;;  %v3208_v6 = vadd.f32 %v730_v32, %v3103_v21  ;;  %v3211_v8 = vadd.f32 %v619_v40, %v3097_v16 }
 0x104   : > { %4156 = vst [vmem:[#allocation13_spill] sm:$0xff] %v3204_v2  ;;  %v3214_v10 = vmul.f32 %v925_v47, %v3138_v3  ;;  %v3217_v13 = vmul.f32 %v924_v49, %v3141_v4  ;;  %v929_v14 = vmul.f32 %v865_v51, %v3168_v30  ;;  %v3221_v18 = vadd.f32 %v732_v41, %v3099_v17 }
 0x105   : > { %v625_v62 = vpop.f32.mrf.mxu0  ;;  %v738_v63 = vpop.f32.mrf.mxu1  ;;  %4157 = vst [vmem:[#allocation14_spill] sm:$0xff] %v3208_v6  ;;  %v3224_v25 = vmul.f32 %v926_v55, %v3155_v15  ;;  %v928_v26 = vmul.f32 %v864_v57, %v3172_v35  ;;  %v930_v27 = vmul.f32 %v866_v58, %v3178_v38  ;;  %v3229_v31 = vadd.f32 %v621_v52, %v3101_v20 }
 0x106   : > { %4158 = vst [vmem:[#allocation15_spill] sm:$0xff] %v3214_v10  ;;  %v931_v32 = vmul.f32 %v867_v59, %v3181_v39  ;;  %v933_v33 = vmul.f32 %v869_v60, %v3186_v44  ;;  %v932_v34 = vmul.f32 %v868_v61, %v3189_v45  ;;  %v3235_v36 = vadd.f32 %v734_v54, %v3103_v21 }
 0x107   : > { %v627_v19 = vpop.f32.mrf.mxu0  ;;  %v740_v23 = vpop.f32.mrf.mxu1  ;;  %4159 = vst [vmem:[#allocation16_spill] sm:$0xff] %v3224_v25  ;;  %v3238_v42 = vmul.f32 %v927_v5, %v3162_v24  ;;  %v870_v43 = vmul.f32 0.044715, %v3208_v6  ;;  %v871_v47 = vmul.f32 0.044715, %v3211_v8  ;;  %v3243_v49 = vadd.f32 %v625_v62, %v3097_v16 }
 0x108   : > { %v3245_v51 = vpop.eup %2641  ;;  %v3248_v52 = vmul.f32 %v929_v14, %v3168_v30  ;;  %v873_v54 = vmul.f32 0.044715, %v3221_v18  ;;  %v872_v55 = vmul.f32 0.044715, %v3229_v31  ;;  %v3253_v57 = vadd.f32 %v738_v63, %v3099_v17 }
 0x109   : > { %v629_v40 = vpop.f32.mrf.mxu0  ;;  %v742_v41 = vpop.f32.mrf.mxu1  ;;  %4160 = vst [vmem:[#allocation17_spill] sm:$0xff] %v3238_v42  ;;  %v3256_v60 = vmul.f32 %v928_v26, %v3172_v35  ;;  %v3259_v61 = vmul.f32 %v930_v27, %v3178_v38  ;;  %v874_v62 = vmul.f32 0.044715, %v3235_v36  ;;  %v3263_v5 = vadd.f32 %v627_v19, %v3101_v20 }
 0x10a   : > { %4161 = vst [vmem:[#allocation18_spill] sm:$0xff] %v3248_v52  ;;  %v3265_v14 = vpop.eup %2643  ;;  %v3268_v52 = vmul.f32 %v931_v32, %v3181_v39  ;;  %v3271_v63 = vmul.f32 %v933_v33, %v3186_v44  ;;  %v3274_v30 = vmul.f32 %v932_v34, %v3189_v45  ;;  %v3277_v26 = vadd.f32 %v740_v23, %v3103_v21 }
 0x10b   : > { %v631_v58 = vpop.f32.mrf.mxu0  ;;  %v744_v59 = vpop.f32.mrf.mxu1  ;;  %4162 = vst [vmem:[#allocation19_spill] sm:$0xff] %v3256_v60  ;;  %4163 = vst [vmem:[#allocation20_spill] sm:$0xff] %v3259_v61  ;;  %v934_v3 = vmul.f32 %v870_v43, %v3208_v6  ;;  %v935_v19 = vmul.f32 %v871_v47, %v3211_v8  ;;  %v875_v42 = vmul.f32 0.044715, %v3243_v49  ;;  %v3283_v32 = vadd.f32 %v629_v40, %v3097_v16 }
 0x10c   : > { %4164 = vst [vmem:[#allocation21_spill] sm:$0xff] %v3268_v52  ;;  %4165 = vst [vmem:[#allocation22_spill] sm:$0xff] %v3271_v63  ;;  %v937_v33 = vmul.f32 %v873_v54, %v3221_v18  ;;  %v936_v63 = vmul.f32 %v872_v55, %v3229_v31  ;;  %v877_v34 = vmul.f32 0.044715, %v3253_v57  ;;  %v3289_v23 = vadd.f32 %v742_v41, %v3099_v17 }
 0x10d   : > { %4166 = vst [vmem:[#allocation23_spill] sm:$0xff] %v3274_v30  ;;  %v635_v27 = vpop.f32.mrf.mxu0  ;;  %v748_v10 = vpop.f32.mrf.mxu1  ;;  %v938_v43 = vmul.f32 %v874_v62, %v3235_v36  ;;  %v876_v47 = vmul.f32 0.044715, %v3263_v5  ;;  %v878_v39 = vmul.f32 0.044715, %v3277_v26  ;;  %v3295_v40 = vadd.f32 %v631_v58, %v3101_v20 }
 0x10e   : > { %4167 = vst [vmem:[#allocation24_spill] sm:$0xff] %v3289_v23  ;;  %v3297_v30 = vpop.eup %2645  ;;  %v879_v54 = vmul.f32 0.044715, %v3283_v32  ;;  %v881_v55 = vmul.f32 0.044715, %v3289_v23  ;;  %v3302_v41 = vadd.f32 %v744_v59, %v3103_v21  ;;  %v3305_v45 = vadd.f32 %v635_v27, %v3097_v16 }
 0x10f   : > { %v637_v44 = vpop.f32.mrf.mxu0  ;;  %v750_v52 = vpop.f32.mrf.mxu1  ;;  %v939_v2 = vmul.f32 %v875_v42, %v3243_v49  ;;  %v880_v58 = vmul.f32 0.044715, %v3295_v40  ;;  %v3312_v0 = vadd.f32 %v748_v10, %v3099_v17  ;;  %v3318_v1 = vmul.f32 %v934_v3, %v3208_v6 }
 0x110   : > { %4168 = vst [vmem:[#allocation25_spill] sm:$0xff] %v3305_v45  ;;  %v3307_v24 = vpop.eup %2647  ;;  %v3315_v7 = vadd.f32 %v637_v44, %v3101_v20  ;;  %v941_v59 = vmul.f32 %v877_v34, %v3253_v57  ;;  %v882_v27 = vmul.f32 0.044715, %v3302_v41  ;;  %v883_v61 = vmul.f32 0.044715, %v3305_v45 }
 0x111   : > { %v639_v62 = vpop.f32.mrf.mxu0  ;;  %4169 = vst [vmem:[#allocation26_spill] sm:$0xff] %v3312_v0  ;;  %4171 = vst [vmem:[#allocation28_spill] sm:$0xff] %v3318_v1  ;;  %v752_v38 = vpop.f32.mrf.mxu1  ;;  %v940_v42 = vmul.f32 %v876_v47, %v3263_v5  ;;  %v942_v25 = vmul.f32 %v878_v39, %v3277_v26  ;;  %v885_v10 = vmul.f32 0.044715, %v3312_v0  ;;  %v3328_v44 = vmul.f32 %v935_v19, %v3211_v8 }
 0x112   : > { %4170 = vst [vmem:[#allocation27_spill] sm:$0xff] %v3315_v7  ;;  %v884_v15 = vmul.f32 0.044715, %v3315_v7  ;;  %v3331_v3 = vmul.f32 %v937_v33, %v3221_v18  ;;  %v943_v34 = vmul.f32 %v879_v54, %v3283_v32  ;;  %v945_v1 = vmul.f32 %v881_v55, %v3289_v23 }
 0x113   : > { %4172 = vst [vmem:[#allocation29_spill] sm:$0xff] %v3328_v44  ;;  %v641_v6 = vpop.f32.mrf.mxu0  ;;  %v3336_v60 = vmul.f32 %v936_v63, %v3229_v31  ;;  %v3339_v39 = vmul.f32 %v938_v43, %v3235_v36  ;;  %v3342_v47 = vmul.f32 %v939_v2, %v3243_v49  ;;  %v944_v19 = vmul.f32 %v880_v58, %v3295_v40  ;;  %v754_v63 = vpop.f32.mrf.mxu1 }
 0x114   : > { %4173 = vst [vmem:[#allocation30_spill] sm:$0xff] %v3331_v3  ;;  %v3346_v44 = vmul.f32 %v941_v59, %v3253_v57  ;;  %v946_v33 = vmul.f32 %v882_v27, %v3302_v41  ;;  %v947_v54 = vmul.f32 %v883_v61, %v3305_v45  ;;  %v3351_v55 = vadd.f32 %v750_v52, %v3103_v21 }
 0x115   : > { %v3354_v3 = vmul.f32 %v940_v42, %v3263_v5  ;;  %v3357_v43 = vmul.f32 %v942_v25, %v3277_v26  ;;  %v949_v2 = vmul.f32 %v885_v10, %v3312_v0  ;;  %v948_v58 = vmul.f32 %v884_v15, %v3315_v7  ;;  %v645_v42 = vpop.f32.mrf.mxu0 }
 0x116   : > { %4174 = vst [vmem:[#allocation31_spill] sm:$0xff] %v3346_v44  ;;  %4175 = vst [vmem:[#allocation32_spill] sm:$0xff] %v3351_v55  ;;  %v3362_v59 = vmul.f32 %v943_v34, %v3283_v32  ;;  %v3365_v27 = vmul.f32 %v945_v1, %v3289_v23  ;;  %v3368_v52 = vadd.f32 %v639_v62, %v3097_v16 }
 0x117   : > { %v3371_v61 = vadd.f32 %v752_v38, %v3099_v17  ;;  %v3374_v25 = vmul.f32 %v944_v19, %v3295_v40  ;;  %v3377_v10 = vadd.f32 %v641_v6, %v3101_v20  ;;  %v1044_v15 = vadd.f32 %v3151_v12, %v3108_v28 }
 0x118   : > { %4176 = vst [vmem:[#allocation33_spill] sm:$0xff] %v3365_v27  ;;  %4177 = vst [vmem:[#allocation34_spill] sm:$0xff] %v3368_v52  ;;  %v1048_v1 = vadd.f32 %v3175_v37, %v3118_v48  ;;  %v3384_v34 = vmul.f32 %v946_v33, %v3302_v41  ;;  %v3387_v62 = vmul.f32 %v947_v54, %v3305_v45  ;;  %v886_v38 = vmul.f32 0.044715, %v3351_v55  ;;  %v758_v27 = vpop.f32.mrf.mxu1 }
 0x119   : > { %4178 = vst [vmem:[#allocation35_spill] sm:$0xff] %v3371_v61  ;;  %v3391_v19 = vadd.f32 %v754_v63, %v3103_v21  ;;  %v3394_v6 = vmul.f32 %v949_v2, %v3312_v0  ;;  %v3397_v28 = vmul.f32 %v948_v58, %v3315_v7  ;;  %v1108_v12 = vmul.f32 0.7978846, %v1044_v15 }
 0x11a   : > { %4179 = vst [vmem:[#allocation36_spill] sm:$0xff] %v3387_v62  ;;  %v1112_v37 = vmul.f32 0.7978846, %v1048_v1  ;;  %v887_v33 = vmul.f32 0.044715, %v3368_v52  ;;  %v1046_v54 = vadd.f32 %v3158_v22, %v3111_v29  ;;  %v1050_v63 = vadd.f32 %v3192_v46, %v3121_v50  ;;  %v647_v62 = vpop.f32.mrf.mxu0  ;;  %v760_v0 = vpop.f32.mrf.mxu1 }
 0x11b   : > { %4180 = vst [vmem:[#allocation37_spill] sm:$0xff] %v3391_v19  ;;  %4181 = vst [vmem:[#allocation38_spill] sm:$0xff] %v3394_v6  ;;  %v889_v23 = vmul.f32 0.044715, %v3371_v61  ;;  %v888_v45 = vmul.f32 0.044715, %v3377_v10  ;;  %2649 = vtanh.f32 %v1108_v12  ;;  %v3407_v2 = vadd.f32 %v645_v42, %v3097_v16 }
 0x11c   : > { %4182 = vst [vmem:[#allocation39_spill] sm:$0xff] %v3397_v28  ;;  %v3410_v58 = vadd.f32 %v758_v27, %v3099_v17  ;;  %v890_v15 = vmul.f32 0.044715, %v3391_v19  ;;  %2651 = vtanh.f32 %v1112_v37  ;;  %v1110_v1 = vmul.f32 0.7978846, %v1046_v54  ;;  %v649_v37 = vpop.f32.mrf.mxu0 }
 0x11d   : > { %4183 = vst [vmem:[#allocation40_spill] sm:$0xff] %v3407_v2  ;;  %v1114_v6 = vmul.f32 0.7978846, %v1050_v63  ;;  %v950_v29 = vmul.f32 %v886_v38, %v3351_v55  ;;  %v3415_v22 = vmul.f32 0.5, %v3118_v48  ;;  %v891_v46 = vmul.f32 0.044715, %v3407_v2 }
 0x11e   : > { %4184 = vst [vmem:[#allocation41_spill] sm:$0xff] %v3410_v58  ;;  %v893_v12 = vmul.f32 0.044715, %v3410_v58  ;;  %v951_v42 = vmul.f32 %v887_v33, %v3368_v52  ;;  %2653 = vtanh.f32 %v1110_v1  ;;  %v1239_v27 = vadd.f32 1.0, %v3297_v30  ;;  %v762_v30 = vpop.f32.mrf.mxu1 }
 0x11f   : > { %v3422_v28 = vadd.f32 %v647_v62, %v3101_v20  ;;  %v953_v54 = vmul.f32 %v889_v23, %v3371_v61  ;;  %v952_v38 = vmul.f32 %v888_v45, %v3377_v10  ;;  %2655 = vtanh.f32 %v1114_v6 }
 0x120   : > { %v1241_v48 = vadd.f32 1.0, %v3307_v24  ;;  %v954_v63 = vmul.f32 %v890_v15, %v3391_v19  ;;  %v1235_v7 = vadd.f32 1.0, %v3245_v51  ;;  %v1237_v33 = vadd.f32 1.0, %v3265_v14 }
 0x121   : > { %4185 = vst [vmem:[#allocation42_spill] sm:$0xff] %v3422_v28  ;;  %v892_v1 = vmul.f32 0.044715, %v3422_v28  ;;  %v955_v62 = vmul.f32 %v891_v46, %v3407_v2  ;;  %v957_v44 = vmul.f32 %v893_v12, %v3410_v58  ;;  %v3434_v23 = vadd.f32 %v760_v0, %v3103_v21 }
 0x122   : > { %v3437_v45 = vadd.f32 %v649_v37, %v3097_v16  ;;  %v3440_v24 = vmul.f32 %v950_v29, %v3351_v55  ;;  %v3443_v51 = vmul.f32 %v951_v42, %v3368_v52  ;;  %v794_v14 = vmul.f32 0.5, %v3121_v50  ;;  %v651_v29 = vpop.f32.mrf.mxu0  ;;  %v764_v37 = vpop.f32.mrf.mxu1  ;;  %v4202_v52 = vld [vmem:[#allocation3_spill] sm:$0xff] }
 0x123   : > { %v3447_v6 = vmul.f32 %v1239_v27, %v3146_v9  ;;  %v3450_v15 = vmul.f32 %v953_v54, %v3371_v61  ;;  %v3453_v0 = vmul.f32 %v1241_v48, %v3148_v11  ;;  %v956_v46 = vmul.f32 %v892_v1, %v3422_v28  ;;  %v4199_v61 = vld [vmem:[#allocation9_spill] sm:$0xff] }
 0x124   : > { %4186 = vst [vmem:[#allocation43_spill] sm:$0xff] %v3437_v45  ;;  %4187 = vst [vmem:[#allocation44_spill] sm:$0xff] %v3440_v24  ;;  %v3457_v12 = vadd.f32 %v762_v30, %v3099_v17  ;;  %v3460_v42 = vmul.f32 %v952_v38, %v3377_v10  ;;  %v3463_v50 = vmul.f32 %v954_v63, %v3391_v19  ;;  %v894_v48 = vmul.f32 0.044715, %v3434_v23 }
 0x125   : > { %4188 = vst [vmem:[#allocation45_spill] sm:$0xff] %v3443_v51  ;;  %4189 = vst [vmem:[#allocation46_spill] sm:$0xff] %v3450_v15  ;;  %v1299_v9 = vmul.f32 %v1235_v7, %v3123_v53  ;;  %v3467_v27 = vmul.f32 %v1237_v33, %v3125_v56  ;;  %v3470_v11 = vmul.f32 %v955_v62, %v3407_v2  ;;  %v895_v38 = vmul.f32 0.044715, %v3437_v45  ;;  %v4195_v56 = vld [vmem:[#allocation19_spill] sm:$0xff]  ;;  %v4197_v2 = vld [vmem:[#allocation6_spill] sm:$0xff] }
 0x126   : > { %4190 = vst [vmem:[#allocation47_spill] sm:$0xff] %v3457_v12  ;;  %4191 = vst [vmem:[#allocation48_spill] sm:$0xff] %v3460_v42  ;;  %v3473_v54 = vmul.f32 %v957_v44, %v3410_v58  ;;  %v3479_v63 = vadd.f32 %v651_v29, %v3101_v20  ;;  %v1052_v53 = vadd.f32 %v3217_v13, %v3141_v4  ;;  %v897_v30 = vmul.f32 0.044715, %v3457_v12 }
 0x127   : > { %4192 = vst [vmem:[#allocation49_spill] sm:$0xff] %v3463_v50  ;;  %4193 = vst [vmem:[#allocation50_spill] sm:$0xff] %v3470_v11  ;;  %v1363_v1 = vpack.c.bf16 %v3447_v6, %v1299_v9  ;;  %v1056_v7 = vadd.f32 %v4195_v56, %v3172_v35  ;;  %v3488_v44 = vmul.f32 %v956_v46, %v3422_v28  ;;  %v3495_v29 = vmul.f32 0.5, %v3141_v4  ;;  %v768_v28 = vpop.f32.mrf.mxu1 }
 0x128   : > { %4194 = vst [vmem:[#allocation51_spill] sm:$0xff] %v3473_v54  ;;  %v3492_v62 = vadd.f32 %v764_v37, %v3103_v21  ;;  %v2650_v6 = vpop.eup %2649  ;;  %v3498_v13 = vmul.f32 0.5, %v3172_v35  ;;  %v1116_v9 = vmul.f32 0.7978846, %v1052_v53  ;;  %v655_v54 = vpop.f32.mrf.mxu0  ;;  %v958_v46 = vmul.f32 %v894_v48, %v3434_v23  ;;  %v4200_v35 = vld [vmem:[#allocation20_spill] sm:$0xff] }
 0x129   : > { %4196 = vst [vmem:[#allocation19_spill] sm:$0xff] %v3488_v44  ;;  %v1120_v56 = vmul.f32 0.7978846, %v1056_v7  ;;  %v2652_v58 = vpop.eup %2651  ;;  %v1236_v33 = vadd.f32 1.0, %v2650_v6  ;;  %v959_v11 = vmul.f32 %v895_v38, %v3437_v45  ;;  %v4198_v44 = vld [vmem:[#allocation16_spill] sm:$0xff]  ;;  %v1058_v51 = vadd.f32 %v4200_v35, %v4199_v61 }
 0x12a   : > { %v1054_v37 = vadd.f32 %v4198_v44, %v4197_v2  ;;  %v1240_v15 = vadd.f32 1.0, %v2652_v58  ;;  %v896_v4 = vmul.f32 0.044715, %v3479_v63  ;;  %2657 = vtanh.f32 %v1116_v9  ;;  %v657_v24 = vpop.f32.mrf.mxu0 }
 0x12b   : > { %v2654_v53 = vpop.eup %2653  ;;  %v898_v7 = vmul.f32 0.044715, %v3492_v62  ;;  %2659 = vtanh.f32 %v1120_v56  ;;  %v3509_v48 = vadd.f32 %v655_v54, %v3097_v16  ;;  %v1300_v50 = vmul.f32 %v1236_v33, %v4202_v52  ;;  %v770_v56 = vpop.f32.mrf.mxu1  ;;  %v4205_v52 = vld [vmem:[#allocation5_spill] sm:$0xff]  ;;  %v4206_v33 = vld [vmem:[#allocation2_spill] sm:$0xff] }
 0x12c   : > { %v1118_v6 = vmul.f32 0.7978846, %v1054_v37  ;;  %v2656_v38 = vpop.eup %2655  ;;  %v1304_v44 = vmul.f32 %v1240_v15, %v3415_v22  ;;  %v1238_v58 = vadd.f32 1.0, %v2654_v53  ;;  %v1122_v19 = vmul.f32 0.7978846, %v1058_v51 }
 0x12d   : > { %4201 = vst [vmem:[#allocation6_spill] sm:$0xff] %v3509_v48  ;;  %v1242_v9 = vadd.f32 1.0, %v2656_v38  ;;  %v961_v55 = vmul.f32 %v897_v30, %v3457_v12  ;;  %v3515_v35 = vadd.f32 %v768_v28, %v3099_v17  ;;  %v3518_v54 = vmul.f32 %v958_v46, %v3434_v23  ;;  %v4207_v30 = vld [vmem:[#allocation13_spill] sm:$0xff] }
 0x12e   : > { %2661 = vtanh.f32 %v1118_v6  ;;  %v1364_v37 = vpack.c.bf16 %v1304_v44, %v1300_v50  ;;  %v3521_v42 = vmul.f32 0.5, %v4197_v2  ;;  %v1302_v22 = vmul.f32 %v1238_v58, %v4205_v52  ;;  %v4209_v6 = vld [vmem:[#allocation7_spill] sm:$0xff]  ;;  %v4210_v2 = vld [vmem:[#allocation17_spill] sm:$0xff] }
 0x12f   : > { %4203 = vst [vmem:[#allocation16_spill] sm:$0xff] %v3515_v35  ;;  %4204 = vst [vmem:[#allocation9_spill] sm:$0xff] %v3518_v54  ;;  %2663 = vtanh.f32 %v1122_v19  ;;  %v1306_v51 = vmul.f32 %v1242_v9, %v794_v14  ;;  %v899_v15 = vmul.f32 0.044715, %v3509_v48  ;;  %v1051_v53 = vadd.f32 %v4207_v30, %v4206_v33  ;;  %v659_v19 = vpop.f32.mrf.mxu0  ;;  %v4211_v9 = vld [vmem:[#allocation4_spill] sm:$0xff]  ;;  %v4212_v52 = vld [vmem:[#allocation15_spill] sm:$0xff] }
 0x130   : > { %1690 = vmatprep.mubr.bf16.mxu0 %v1364_v37  ;;  %v3528_v28 = vmul.f32 %v959_v11, %v3437_v45  ;;  %v960_v50 = vmul.f32 %v896_v4, %v3479_v63  ;;  %v962_v46 = vmul.f32 %v898_v7, %v3492_v62  ;;  %v1055_v38 = vadd.f32 %v4210_v2, %v4209_v6  ;;  %v772_v37 = vpop.f32.mrf.mxu1  ;;  %v4213_v11 = vld [vmem:[#allocation8_spill] sm:$0xff] }
 0x131   : > { %v1366_v44 = vpack.c.bf16 %v1306_v51, %v1302_v22  ;;  %1691 = vmatmul.mubr.bf16.vlgmr.msra.gmra.mxu0 %v1363_v1  ;;  %v901_v14 = vmul.f32 0.044715, %v3515_v35  ;;  %v1115_v58 = vmul.f32 0.7978846, %v1051_v53  ;;  %v1053_v30 = vadd.f32 %v4212_v52, %v4211_v9 }
 0x132   : > { %4208 = vst [vmem:[#allocation20_spill] sm:$0xff] %v3528_v28  ;;  %v1119_v54 = vmul.f32 0.7978846, %v1055_v38  ;;  %v4214_v28 = vld [vmem:[#allocation18_spill] sm:$0xff]  ;;  %v3540_v4 = vadd.f32 %v657_v24, %v3101_v20  ;;  %v3543_v7 = vadd.f32 %v770_v56, %v3103_v21  ;;  %v963_v1 = vmul.f32 %v899_v15, %v3509_v48 }
 0x133   : > { %v1057_v45 = vadd.f32 %v4214_v28, %v4213_v11  ;;  %1787 = vmatprep.mubr.bf16.mxu1 %v1366_v44  ;;  %2665 = vtanh.f32 %v1115_v58  ;;  %v1117_v22 = vmul.f32 0.7978846, %v1053_v30  ;;  %v3547_v51 = vadd.f32 %v659_v19, %v3097_v16  ;;  %v661_v19 = vpop.f32.mrf.mxu0 }
 0x134   : > { %4215 = vst [vmem:[#allocation3_spill] sm:$0xff] %v3543_v7  ;;  %v4217_v53 = vpack.c.bf16 %v3453_v0, %v3467_v27  ;;  %v3553_v28 = vmul.f32 %v961_v55, %v3457_v12  ;;  %2667 = vtanh.f32 %v1119_v54  ;;  %v3556_v56 = vadd.f32 %v772_v37, %v3099_v17 }
 0x135   : > { %4216 = vst [vmem:[#allocation5_spill] sm:$0xff] %v3547_v51  ;;  %v1121_v24 = vmul.f32 0.7978846, %v1057_v45  ;;  %v802_v2 = vmul.f32 0.5, %v4199_v61  ;;  %v965_v15 = vmul.f32 %v901_v14, %v3515_v35  ;;  %2669 = vtanh.f32 %v1117_v22 }
 0x136   : > { %1788 = vmatmul.mubr.bf16.vlgmr.msra.gmra.mxu1 %v4217_v53  ;;  %4218 = vst [vmem:[#allocation2_spill] sm:$0xff] %v3553_v28  ;;  %v900_v38 = vmul.f32 0.044715, %v3540_v4  ;;  %v3562_v44 = vmul.f32 %v960_v50, %v3479_v63  ;;  %v902_v55 = vmul.f32 0.044715, %v3543_v7  ;;  %v3567_v27 = vmul.f32 %v962_v46, %v3492_v62  ;;  %v774_v50 = vpop.f32.mrf.mxu1 }
 0x137   : > { %2671 = vtanh.f32 %v1121_v24  ;;  %v903_v0 = vmul.f32 0.044715, %v3547_v51  ;;  %v2658_v45 = vpop.eup %2657  ;;  %v3570_v61 = vmul.f32 %v963_v1, %v3509_v48  ;;  %v3573_v54 = vmul.f32 0.5, %v4206_v33 }
 0x138   : > { %4219 = vst [vmem:[#allocation13_spill] sm:$0xff] %v3567_v27  ;;  %v3576_v14 = vmul.f32 0.5, %v4209_v6  ;;  %v2660_v58 = vpop.eup %2659  ;;  %v1244_v52 = vadd.f32 1.0, %v2658_v45  ;;  %v3579_v30 = vmul.f32 0.5, %v4211_v9  ;;  %v905_v37 = vmul.f32 0.044715, %v3556_v56 }
 0x139   : > { %4220 = vst [vmem:[#allocation7_spill] sm:$0xff] %v3570_v61  ;;  %v3583_v46 = vadd.f32 %v661_v19, %v3101_v20  ;;  %v1248_v22 = vadd.f32 1.0, %v2660_v58  ;;  %v3586_v1 = vmul.f32 %v965_v15, %v3515_v35  ;;  %v3589_v33 = vmul.f32 0.5, %v4213_v11  ;;  %v4222_v61 = vld [vmem:[#allocation12_spill] sm:$0xff]  ;;  %v4223_v19 = vld [vmem:[#allocation23_spill] sm:$0xff] }
 0x13a   : > { %v964_v6 = vmul.f32 %v900_v38, %v3540_v4  ;;  %v966_v24 = vmul.f32 %v902_v55, %v3543_v7  ;;  %v967_v9 = vmul.f32 %v903_v0, %v3547_v51  ;;  %v3595_v45 = vadd.f32 %v774_v50, %v3103_v21  ;;  %v665_v50 = vpop.f32.mrf.mxu0 }
 0x13b   : > { %4221 = vst [vmem:[#allocation17_spill] sm:$0xff] %v3586_v1  ;;  %v2662_v53 = vpop.eup %2661  ;;  %v1060_v48 = vadd.f32 %v4223_v19, %v4222_v61  ;;  %v1308_v15 = vmul.f32 %v1244_v52, %v3495_v29  ;;  %v1312_v1 = vmul.f32 %v1248_v22, %v3498_v13  ;;  %v1064_v38 = vadd.f32 %v3336_v60, %v3229_v31  ;;  %v4224_v13 = vld [vmem:[#allocation14_spill] sm:$0xff]  ;;  %v4225_v22 = vld [vmem:[#allocation28_spill] sm:$0xff] }
 0x13c   : > { %v2664_v58 = vpop.eup %2663  ;;  %v1246_v11 = vadd.f32 1.0, %v2662_v53  ;;  %v969_v55 = vmul.f32 %v905_v37, %v3556_v56  ;;  %v904_v0 = vmul.f32 0.044715, %v3583_v46  ;;  %v3607_v19 = vmul.f32 0.5, %v4222_v61  ;;  %v778_v37 = vpop.f32.mrf.mxu1 }
 0x13d   : > { %v1250_v35 = vadd.f32 1.0, %v2664_v58  ;;  %v1124_v28 = vmul.f32 0.7978846, %v1060_v48  ;;  %v1368_v12 = vpack.c.bf16 %v1312_v1, %v1308_v15  ;;  %v1128_v29 = vmul.f32 0.7978846, %v1064_v38  ;;  %v667_v15 = vpop.f32.mrf.mxu0  ;;  %v4228_v38 = vld [vmem:[#allocation10_spill] sm:$0xff] }
 0x13e   : > { %v1310_v27 = vmul.f32 %v1246_v11, %v3521_v42  ;;  %v1062_v53 = vadd.f32 %v4225_v22, %v4224_v13  ;;  %v1066_v60 = vadd.f32 %v3339_v39, %v3235_v36  ;;  %v3614_v48 = vmul.f32 %v964_v6, %v3540_v4 }
 0x13f   : > { %v1314_v52 = vmul.f32 %v1250_v35, %v802_v2  ;;  %2673 = vtanh.f32 %v1124_v28  ;;  %1698 = vmatprep.mubr.bf16.mxu0 %v1368_v12  ;;  %v906_v1 = vmul.f32 0.044715, %v3595_v45  ;;  %v3618_v42 = vadd.f32 %v665_v50, %v3097_v16 }
 0x140   : > { %2675 = vtanh.f32 %v1128_v29  ;;  %v2666_v61 = vpop.eup %2665  ;;  %v3621_v28 = vmul.f32 %v966_v24, %v3543_v7  ;;  %v1126_v2 = vmul.f32 0.7978846, %v1062_v53  ;;  %v1130_v58 = vmul.f32 0.7978846, %v1066_v60  ;;  %v4229_v29 = vld [vmem:[#allocation21_spill] sm:$0xff] }
 0x141   : > { %v1370_v35 = vpack.c.bf16 %v1314_v52, %v1310_v27  ;;  %v2668_v39 = vpop.eup %2667  ;;  %v1243_v11 = vadd.f32 1.0, %v2666_v61  ;;  %v3624_v12 = vmul.f32 %v967_v9, %v3547_v51  ;;  %v3627_v6 = vadd.f32 %v778_v37, %v3099_v17  ;;  %v4230_v52 = vld [vmem:[#allocation29_spill] sm:$0xff] }
 0x142   : > { %4226 = vst [vmem:[#allocation4_spill] sm:$0xff] %v3621_v28  ;;  %v1059_v50 = vadd.f32 %v4229_v29, %v4228_v38  ;;  %v2670_v22 = vpop.eup %2669  ;;  %v1247_v27 = vadd.f32 1.0, %v2668_v39  ;;  %v968_v24 = vmul.f32 %v904_v0, %v3583_v46  ;;  %2677 = vtanh.f32 %v1126_v2  ;;  %v669_v28 = vpop.f32.mrf.mxu0 }
 0x143   : > { %4227 = vst [vmem:[#allocation15_spill] sm:$0xff] %v3624_v12  ;;  %1795 = vmatprep.mubr.bf16.mxu1 %v1370_v35  ;;  %v1063_v53 = vadd.f32 %v4230_v52, %v3211_v8  ;;  %v1245_v61 = vadd.f32 1.0, %v2670_v22  ;;  %v970_v9 = vmul.f32 %v906_v1, %v3595_v45  ;;  %2679 = vtanh.f32 %v1130_v58  ;;  %v780_v12 = vpop.f32.mrf.mxu1 }
 0x144   : > { %v2672_v60 = vpop.eup %2671  ;;  %v907_v37 = vmul.f32 0.044715, %v3618_v42  ;;  %v1307_v51 = vmul.f32 %v1243_v11, %v3573_v54  ;;  %v1311_v29 = vmul.f32 %v1247_v27, %v3576_v14  ;;  %v1123_v39 = vmul.f32 0.7978846, %v1059_v50  ;;  %v4231_v54 = vld [vmem:[#allocation11_spill] sm:$0xff]  ;;  %v4232_v14 = vld [vmem:[#allocation22_spill] sm:$0xff] }
 0x145   : > { %v1249_v35 = vadd.f32 1.0, %v2672_v60  ;;  %v3639_v0 = vmul.f32 %v969_v55, %v3556_v56  ;;  %v808_v2 = vmul.f32 0.5, %v3229_v31  ;;  %v909_v22 = vmul.f32 0.044715, %v3627_v6  ;;  %v4233_v50 = vld [vmem:[#allocation30_spill] sm:$0xff]  ;;  %v782_v31 = vpop.f32.mrf.mxu1 }
 0x146   : > { %v1127_v52 = vmul.f32 0.7978846, %v1063_v53  ;;  %v1367_v1 = vpack.c.bf16 %v1311_v29, %v1307_v51  ;;  %v1309_v58 = vmul.f32 %v1245_v61, %v3579_v30  ;;  %2681 = vtanh.f32 %v1123_v39  ;;  %v671_v53 = vpop.f32.mrf.mxu0 }
 0x147   : > { %v1313_v7 = vmul.f32 %v1249_v35, %v3589_v33  ;;  %v1061_v11 = vadd.f32 %v4232_v14, %v4231_v54  ;;  %v1065_v27 = vadd.f32 %v4233_v50, %v3221_v18  ;;  %v3650_v55 = vadd.f32 %v667_v15, %v3101_v20 }
 0x148   : > { %2683 = vtanh.f32 %v1127_v52  ;;  %1699 = vmatmul.mubr.bf16.gmra.mxu0 %v1367_v1  ;;  %v3653_v51 = vmul.f32 %v968_v24, %v3583_v46  ;;  %v3656_v30 = vmul.f32 %v970_v9, %v3595_v45  ;;  %v971_v33 = vmul.f32 %v907_v37, %v3618_v42 }
 0x149   : > { %v1369_v60 = vpack.c.bf16 %v1313_v7, %v1309_v58  ;;  %v1125_v61 = vmul.f32 0.7978846, %v1061_v11  ;;  %v1129_v29 = vmul.f32 0.7978846, %v1065_v27  ;;  %v3660_v35 = vadd.f32 %v780_v12, %v3103_v21  ;;  %v784_v58 = vpop.f32.mrf.mxu1 }
 0x14a   : > { %v3663_v15 = vadd.f32 %v669_v28, %v3097_v16  ;;  %v806_v7 = vmul.f32 0.5, %v4224_v13  ;;  %v973_v24 = vmul.f32 %v909_v22, %v3627_v6  ;;  %v908_v39 = vmul.f32 0.044715, %v3650_v55 }
 0x14b   : > { %1796 = vmatmul.mubr.bf16.gmra.mxu1 %v1369_v60  ;;  %v3669_v9 = vadd.f32 %v782_v31, %v3099_v17  ;;  %v810_v52 = vmul.f32 0.5, %v3235_v36  ;;  %v803_v1 = vmul.f32 0.5, %v4228_v38  ;;  %2685 = vtanh.f32 %v1125_v61 }
 0x14c   : > { %v2674_v37 = vpop.eup %2673  ;;  %v3674_v12 = vadd.f32 %v671_v53, %v3101_v20  ;;  %v807_v13 = vmul.f32 0.5, %v3211_v8  ;;  %v3678_v22 = vmul.f32 0.5, %v4231_v54  ;;  %2687 = vtanh.f32 %v1129_v29 }
 0x14d   : > { %v2676_v16 = vpop.eup %2675  ;;  %v1252_v28 = vadd.f32 1.0, %v2674_v37  ;;  %v3681_v14 = vmul.f32 %v971_v33, %v3618_v42  ;;  %v910_v36 = vmul.f32 0.044715, %v3660_v35  ;;  %v911_v38 = vmul.f32 0.044715, %v3663_v15 }
 0x14e   : > { %v1256_v17 = vadd.f32 1.0, %v2676_v16  ;;  %v3686_v20 = vmul.f32 %v973_v24, %v3627_v6  ;;  %v3689_v11 = vmul.f32 0.5, %v3221_v18  ;;  %v972_v8 = vmul.f32 %v908_v39, %v3650_v55 }
 0x14f   : > { %v913_v54 = vmul.f32 0.044715, %v3669_v9  ;;  %v2678_v50 = vpop.eup %2677  ;;  %v1316_v27 = vmul.f32 %v1252_v28, %v3607_v19  ;;  %v912_v60 = vmul.f32 0.044715, %v3674_v12  ;;  %v3696_v33 = vadd.f32 %v784_v58, %v3103_v21 }
 0x150   : > { %v1320_v31 = vmul.f32 %v1256_v17, %v808_v2  ;;  %v2680_v53 = vpop.eup %2679  ;;  %v1254_v61 = vadd.f32 1.0, %v2678_v50  ;;  %v3699_v29 = vmul.f32 0.5, %v3263_v5  ;;  %v1068_v18 = vadd.f32 %v3354_v3, %v3263_v5 }
 0x151   : > { %v1072_v24 = vadd.f32 %v3374_v25, %v3295_v40  ;;  %v1258_v37 = vadd.f32 1.0, %v2680_v53  ;;  %v974_v19 = vmul.f32 %v910_v36, %v3660_v35  ;;  %v975_v2 = vmul.f32 %v911_v38, %v3663_v15 }
 0x152   : > { %v1372_v39 = vpack.c.bf16 %v1320_v31, %v1316_v27  ;;  %v3708_v21 = vmul.f32 %v972_v8, %v3650_v55  ;;  %v977_v16 = vmul.f32 %v913_v54, %v3669_v9  ;;  %v1132_v28 = vmul.f32 0.7978846, %v1068_v18 }
 0x153   : > { %v1136_v58 = vmul.f32 0.7978846, %v1072_v24  ;;  %v2682_v17 = vpop.eup %2681  ;;  %v1318_v50 = vmul.f32 %v1254_v61, %v806_v7  ;;  %v1322_v5 = vmul.f32 %v1258_v37, %v810_v52  ;;  %v1070_v3 = vadd.f32 %v3357_v43, %v3277_v26 }
 0x154   : > { %1706 = vmatprep.mubr.bf16.mxu0 %v1372_v39  ;;  %v1074_v25 = vadd.f32 %v3384_v34, %v3302_v41  ;;  %v1251_v27 = vadd.f32 1.0, %v2682_v17  ;;  %v3716_v38 = vmul.f32 %v912_v60, %v3674_v12  ;;  %2689 = vtanh.f32 %v1132_v28  ;;  %v4234_v39 = vld [vmem:[#allocation31_spill] sm:$0xff]  ;;  %v4236_v28 = vld [vmem:[#allocation33_spill] sm:$0xff] }
 0x155   : > { %v2684_v36 = vpop.eup %2683  ;;  %v1067_v8 = vadd.f32 %v3342_v47, %v3243_v49  ;;  %v1374_v54 = vpack.c.bf16 %v1322_v5, %v1318_v50  ;;  %2691 = vtanh.f32 %v1136_v58  ;;  %v1134_v7 = vmul.f32 0.7978846, %v1070_v3 }
 0x156   : > { %v1255_v31 = vadd.f32 1.0, %v2684_v36  ;;  %v3721_v52 = vmul.f32 %v974_v19, %v3660_v35  ;;  %v1138_v43 = vmul.f32 0.7978846, %v1074_v25  ;;  %v1071_v34 = vadd.f32 %v3362_v59, %v3283_v32  ;;  %v4235_v19 = vld [vmem:[#allocation24_spill] sm:$0xff]  ;;  %v4238_v36 = vld [vmem:[#allocation27_spill] sm:$0xff] }
 0x157   : > { %v1131_v53 = vmul.f32 0.7978846, %v1067_v8  ;;  %1803 = vmatprep.mubr.bf16.mxu1 %v1374_v54  ;;  %v1315_v61 = vmul.f32 %v1251_v27, %v803_v1  ;;  %v3726_v18 = vmul.f32 %v975_v2, %v3663_v15  ;;  %2693 = vtanh.f32 %v1134_v7  ;;  %v4239_v27 = vld [vmem:[#allocation39_spill] sm:$0xff]  ;;  %v4240_v54 = vld [vmem:[#allocation48_spill] sm:$0xff] }
 0x158   : > { %v1319_v60 = vmul.f32 %v1255_v31, %v807_v13  ;;  %v2686_v47 = vpop.eup %2685  ;;  %2695 = vtanh.f32 %v1138_v43  ;;  %v1135_v24 = vmul.f32 0.7978846, %v1071_v34  ;;  %v1069_v37 = vadd.f32 %v4234_v39, %v3253_v57 }
 0x159   : > { %v1073_v58 = vadd.f32 %v4236_v28, %v4235_v19  ;;  %v2688_v17 = vpop.eup %2687  ;;  %v1253_v59 = vadd.f32 1.0, %v2686_v47  ;;  %v3733_v5 = vmul.f32 0.044715, %v3696_v33  ;;  %2697 = vtanh.f32 %v1131_v53  ;;  %v4244_v28 = vld [vmem:[#allocation49_spill] sm:$0xff] }
 0x15a   : > { %v1371_v50 = vpack.c.bf16 %v1319_v60, %v1315_v61  ;;  %v1257_v1 = vadd.f32 1.0, %v2688_v17  ;;  %2699 = vtanh.f32 %v1135_v24  ;;  %v1133_v13 = vmul.f32 0.7978846, %v1069_v37  ;;  %v4242_v60 = vld [vmem:[#allocation44_spill] sm:$0xff]  ;;  %v4243_v37 = vld [vmem:[#allocation37_spill] sm:$0xff] }
 0x15b   : > { %v1137_v2 = vmul.f32 0.7978846, %v1073_v58  ;;  %v3736_v3 = vmul.f32 %v977_v16, %v3669_v9  ;;  %v816_v25 = vmul.f32 0.5, %v3295_v40  ;;  %v1076_v8 = vadd.f32 %v4239_v27, %v4238_v36  ;;  %v4241_v16 = vld [vmem:[#allocation32_spill] sm:$0xff] }
 0x15c   : > { %1707 = vmatmul.mubr.bf16.gmra.mxu0 %v1371_v50  ;;  %v1080_v31 = vadd.f32 %v4240_v54, %v3377_v10  ;;  %v1317_v7 = vmul.f32 %v1253_v59, %v3678_v22  ;;  %v1321_v43 = vmul.f32 %v1257_v1, %v3689_v11  ;;  %v814_v34 = vmul.f32 0.5, %v3277_v26  ;;  %v4245_v11 = vld [vmem:[#allocation25_spill] sm:$0xff]  ;;  %v4246_v17 = vld [vmem:[#allocation36_spill] sm:$0xff]  ;;  %v4247_v50 = vld [vmem:[#allocation34_spill] sm:$0xff] }
 0x15d   : > { %4237 = vst [vmem:[#allocation8_spill] sm:$0xff] %v3736_v3  ;;  %2701 = vtanh.f32 %v1133_v13  ;;  %v1140_v53 = vmul.f32 0.7978846, %v1076_v8  ;;  %v1078_v47 = vadd.f32 %v4242_v60, %v4241_v16  ;;  %v818_v24 = vmul.f32 0.5, %v3302_v41  ;;  %v4248_v59 = vld [vmem:[#allocation45_spill] sm:$0xff]  ;;  %v4249_v54 = vld [vmem:[#allocation26_spill] sm:$0xff] }
 0x15e   : > { %2703 = vtanh.f32 %v1137_v2  ;;  %v1144_v61 = vmul.f32 0.7978846, %v1080_v31  ;;  %v1373_v40 = vpack.c.bf16 %v1321_v43, %v1317_v7  ;;  %v811_v39 = vmul.f32 0.5, %v3243_v49  ;;  %v4250_v31 = vld [vmem:[#allocation38_spill] sm:$0xff] }
 0x15f   : > { %v1082_v58 = vadd.f32 %v4244_v28, %v4243_v37  ;;  %2705 = vtanh.f32 %v1140_v53  ;;  %v1142_v22 = vmul.f32 0.7978846, %v1078_v47  ;;  %v1075_v26 = vadd.f32 %v4246_v17, %v4245_v11  ;;  %v4251_v47 = vld [vmem:[#allocation35_spill] sm:$0xff] }
 0x160   : > { %v1079_v1 = vadd.f32 %v4248_v59, %v4247_v50  ;;  %1804 = vmatmul.mubr.bf16.gmra.mxu1 %v1373_v40  ;;  %v815_v13 = vmul.f32 0.5, %v3283_v32  ;;  %v3758_v2 = vmul.f32 0.5, %v3253_v57  ;;  %2707 = vtanh.f32 %v1144_v61  ;;  %v4252_v40 = vld [vmem:[#allocation46_spill] sm:$0xff]  ;;  %v4254_v59 = vld [vmem:[#allocation19_spill] sm:$0xff] }
 0x161   : > { %v1146_v41 = vmul.f32 0.7978846, %v1082_v58  ;;  %v2690_v49 = vpop.eup %2689  ;;  %2709 = vtanh.f32 %v1142_v22  ;;  %v1139_v27 = vmul.f32 0.7978846, %v1075_v26  ;;  %v1077_v7 = vadd.f32 %v4250_v31, %v4249_v54  ;;  %v4253_v26 = vld [vmem:[#allocation42_spill] sm:$0xff] }
 0x162   : > { %v1143_v8 = vmul.f32 0.7978846, %v1079_v1  ;;  %v2692_v43 = vpop.eup %2691  ;;  %v1260_v53 = vadd.f32 1.0, %v2690_v49  ;;  %v817_v60 = vmul.f32 0.5, %v4235_v19  ;;  %v1081_v32 = vadd.f32 %v4252_v40, %v4251_v47 }
 0x163   : > { %2711 = vtanh.f32 %v1146_v41  ;;  %v1264_v28 = vadd.f32 1.0, %v2692_v43  ;;  %v820_v57 = vmul.f32 0.5, %v4238_v36  ;;  %v1141_v61 = vmul.f32 0.7978846, %v1077_v7 }
 0x164   : > { %2713 = vtanh.f32 %v1139_v27  ;;  %v2694_v58 = vpop.eup %2693  ;;  %v1324_v22 = vmul.f32 %v1260_v53, %v3699_v29  ;;  %v1145_v17 = vmul.f32 0.7978846, %v1081_v32  ;;  %v1084_v1 = vadd.f32 %v4254_v59, %v4253_v26 }
 0x165   : > { %2715 = vtanh.f32 %v1143_v8  ;;  %v2696_v49 = vpop.eup %2695  ;;  %v1328_v31 = vmul.f32 %v1264_v28, %v816_v25  ;;  %v1262_v19 = vadd.f32 1.0, %v2694_v58  ;;  %v1088_v41 = vadd.f32 %v3562_v44, %v3479_v63  ;;  %v4256_v58 = vld [vmem:[#allocation13_spill] sm:$0xff] }
 0x166   : > { %2717 = vtanh.f32 %v1141_v61  ;;  %v2698_v43 = vpop.eup %2697  ;;  %v1266_v40 = vadd.f32 1.0, %v2696_v49  ;;  %v824_v36 = vmul.f32 0.5, %v3377_v10  ;;  %v1148_v27 = vmul.f32 0.7978846, %v1084_v1  ;;  %v4255_v61 = vld [vmem:[#allocation9_spill] sm:$0xff] }
 0x167   : > { %2719 = vtanh.f32 %v1145_v17  ;;  %v2700_v7 = vpop.eup %2699  ;;  %v1376_v29 = vpack.c.bf16 %v1328_v31, %v1324_v22  ;;  %v1259_v8 = vadd.f32 1.0, %v2698_v43  ;;  %v822_v53 = vmul.f32 0.5, %v4241_v16 }
 0x168   : > { %v1152_v32 = vmul.f32 0.7978846, %v1088_v41  ;;  %v1326_v59 = vmul.f32 %v1262_v19, %v814_v34  ;;  %v1330_v3 = vmul.f32 %v1266_v40, %v818_v24  ;;  %v1263_v25 = vadd.f32 1.0, %v2700_v7  ;;  %v4258_v7 = vld [vmem:[#allocation50_spill] sm:$0xff] }
 0x169   : > { %2721 = vtanh.f32 %v1148_v27  ;;  %1714 = vmatprep.mubr.bf16.mxu0 %v1376_v29  ;;  %v826_v44 = vmul.f32 0.5, %v4243_v37  ;;  %v1086_v10 = vadd.f32 %v4255_v61, %v3434_v23  ;;  %v1090_v17 = vadd.f32 %v4256_v58, %v3492_v62  ;;  %v4257_v27 = vld [vmem:[#allocation40_spill] sm:$0xff] }
 0x16a   : > { %v2702_v28 = vpop.eup %2701  ;;  %2723 = vtanh.f32 %v1152_v32  ;;  %v1378_v1 = vpack.c.bf16 %v1330_v3, %v1326_v59  ;;  %v1323_v49 = vmul.f32 %v1259_v8, %v811_v39  ;;  %v1327_v16 = vmul.f32 %v1263_v25, %v815_v13  ;;  %v4259_v32 = vld [vmem:[#allocation43_spill] sm:$0xff]  ;;  %v4260_v61 = vld [vmem:[#allocation20_spill] sm:$0xff] }
 0x16b   : > { %v2704_v22 = vpop.eup %2703  ;;  %v1261_v31 = vadd.f32 1.0, %v2702_v28  ;;  %v819_v24 = vmul.f32 0.5, %v4245_v11  ;;  %v1150_v19 = vmul.f32 0.7978846, %v1086_v10  ;;  %v1154_v41 = vmul.f32 0.7978846, %v1090_v17 }
 0x16c   : > { %v1265_v34 = vadd.f32 1.0, %v2704_v22  ;;  %v2706_v43 = vpop.eup %2705  ;;  %1811 = vmatprep.mubr.bf16.mxu1 %v1378_v1  ;;  %v1375_v37 = vpack.c.bf16 %v1327_v16, %v1323_v49  ;;  %v823_v40 = vmul.f32 0.5, %v4247_v50  ;;  %v1083_v29 = vadd.f32 %v4258_v7, %v4257_v27 }
 0x16d   : > { %v1087_v58 = vadd.f32 %v4260_v61, %v4259_v32  ;;  %v2708_v3 = vpop.eup %2707  ;;  %v1325_v39 = vmul.f32 %v1261_v31, %v3758_v2  ;;  %v1268_v8 = vadd.f32 1.0, %v2706_v43  ;;  %2725 = vtanh.f32 %v1150_v19  ;;  %v4261_v2 = vld [vmem:[#allocation41_spill] sm:$0xff] }
 0x16e   : > { %v1329_v13 = vmul.f32 %v1265_v34, %v817_v60  ;;  %v2710_v11 = vpop.eup %2709  ;;  %1715 = vmatmul.mubr.bf16.gmra.mxu0 %v1375_v37  ;;  %v1272_v59 = vadd.f32 1.0, %v2708_v3  ;;  %2727 = vtanh.f32 %v1154_v41  ;;  %v1147_v25 = vmul.f32 0.7978846, %v1083_v29  ;;  %v4262_v60 = vld [vmem:[#allocation51_spill] sm:$0xff]  ;;  %v4264_v37 = vld [vmem:[#allocation2_spill] sm:$0xff] }
 0x16f   : > { %v1151_v28 = vmul.f32 0.7978846, %v1087_v58  ;;  %v1332_v17 = vmul.f32 %v1268_v8, %v820_v57  ;;  %v1270_v22 = vadd.f32 1.0, %v2710_v11  ;;  %v821_v1 = vmul.f32 0.5, %v4249_v54  ;;  %v4263_v41 = vld [vmem:[#allocation47_spill] sm:$0xff] }
 0x170   : > { %v2712_v10 = vpop.eup %2711  ;;  %v1377_v50 = vpack.c.bf16 %v1329_v13, %v1325_v39  ;;  %v1336_v16 = vmul.f32 %v1272_v59, %v824_v36  ;;  %2729 = vtanh.f32 %v1147_v25  ;;  %v1085_v31 = vadd.f32 %v4262_v60, %v4261_v2 }
 0x171   : > { %v2714_v49 = vpop.eup %2713  ;;  %v1274_v7 = vadd.f32 1.0, %v2712_v10  ;;  %v1334_v19 = vmul.f32 %v1270_v22, %v822_v53  ;;  %2731 = vtanh.f32 %v1151_v28  ;;  %v1089_v29 = vadd.f32 %v4264_v37, %v4263_v41 }
 0x172   : > { %v2716_v34 = vpop.eup %2715  ;;  %1812 = vmatmul.mubr.bf16.gmra.mxu1 %v1377_v50  ;;  %v1267_v43 = vadd.f32 1.0, %v2714_v49  ;;  %v1380_v57 = vpack.c.bf16 %v1336_v16, %v1332_v17  ;;  %v1149_v54 = vmul.f32 0.7978846, %v1085_v31  ;;  %v825_v13 = vmul.f32 0.5, %v4251_v47  ;;  %v4265_v31 = vld [vmem:[#allocation3_spill] sm:$0xff] }
 0x173   : > { %v2718_v61 = vpop.eup %2717  ;;  %v1338_v58 = vmul.f32 %v1274_v7, %v826_v44  ;;  %v1271_v3 = vadd.f32 1.0, %v2716_v34  ;;  %v1153_v11 = vmul.f32 0.7978846, %v1089_v29  ;;  %v1040_v10 = vmul.f32 %v3716_v38, %v3674_v12  ;;  %v4266_v34 = vld [vmem:[#allocation4_spill] sm:$0xff] }
 0x174   : > { %v2720_v39 = vpop.eup %2719  ;;  %v1331_v36 = vmul.f32 %v1267_v43, %v819_v24  ;;  %v1269_v8 = vadd.f32 1.0, %v2718_v61  ;;  %1722 = vmatprep.mubr.bf16.mxu0 %v1380_v57  ;;  %2733 = vtanh.f32 %v1149_v54  ;;  %v1092_v44 = vadd.f32 %v3614_v48, %v3540_v4  ;;  %v4267_v61 = vld [vmem:[#allocation6_spill] sm:$0xff] }
 0x175   : > { %v1382_v59 = vpack.c.bf16 %v1338_v58, %v1334_v19  ;;  %v1335_v25 = vmul.f32 %v1271_v3, %v823_v40  ;;  %v1273_v53 = vadd.f32 1.0, %v2720_v39  ;;  %2735 = vtanh.f32 %v1153_v11 }
 0x176   : > { %v2722_v28 = vpop.eup %2721  ;;  %v1333_v50 = vmul.f32 %v1269_v8, %v821_v1  ;;  %v1096_v49 = vadd.f32 %v3653_v51, %v3583_v46  ;;  %v828_v40 = vmul.f32 0.5, %v4253_v26  ;;  %v832_v16 = vmul.f32 0.5, %v3479_v63 }
 0x177   : > { %v2724_v17 = vpop.eup %2723  ;;  %1819 = vmatprep.mubr.bf16.mxu1 %v1382_v59  ;;  %v1379_v24 = vpack.c.bf16 %v1335_v25, %v1331_v36  ;;  %v1337_v47 = vmul.f32 %v1273_v53, %v825_v13  ;;  %v1276_v22 = vadd.f32 1.0, %v2722_v28  ;;  %v1156_v60 = vmul.f32 0.7978846, %v1092_v44  ;;  %v4269_v36 = vld [vmem:[#allocation5_spill] sm:$0xff]  ;;  %v4270_v13 = vld [vmem:[#allocation15_spill] sm:$0xff] }
 0x178   : > { %v1280_v7 = vadd.f32 1.0, %v2724_v17  ;;  %v978_v38 = vmul.f32 %v3733_v5, %v3696_v33  ;;  %v1160_v48 = vmul.f32 0.7978846, %v1096_v49  ;;  %v1094_v19 = vadd.f32 %v4266_v34, %v4265_v31  ;;  %v4268_v5 = vld [vmem:[#allocation7_spill] sm:$0xff] }
 0x179   : > { %1723 = vmatmul.mubr.bf16.gmra.mxu0 %v1379_v24  ;;  %v1381_v1 = vpack.c.bf16 %v1337_v47, %v1333_v50  ;;  %v1340_v43 = vmul.f32 %v1276_v22, %v828_v40  ;;  %2737 = vtanh.f32 %v1156_v60  ;;  %v1098_v51 = vadd.f32 %v3656_v30, %v3595_v45  ;;  %v4271_v24 = vld [vmem:[#allocation16_spill] sm:$0xff]  ;;  %v4272_v47 = vld [vmem:[#allocation17_spill] sm:$0xff] }
 0x17a   : > { %v1344_v37 = vmul.f32 %v1280_v7, %v832_v16  ;;  %v2726_v26 = vpop.eup %2725  ;;  %v830_v63 = vmul.f32 0.5, %v3434_v23  ;;  %2739 = vtanh.f32 %v1160_v48  ;;  %v1158_v29 = vmul.f32 0.7978846, %v1094_v19 }
 0x17b   : > { %1820 = vmatmul.mubr.bf16.gmra.mxu1 %v1381_v1  ;;  %v1091_v57 = vadd.f32 %v4268_v5, %v4267_v61  ;;  %v2728_v58 = vpop.eup %2727  ;;  %v1278_v54 = vadd.f32 1.0, %v2726_v26  ;;  %v1162_v39 = vmul.f32 0.7978846, %v1098_v51  ;;  %v1095_v8 = vadd.f32 %v4270_v13, %v4269_v36 }
 0x17c   : > { %v1384_v3 = vpack.c.bf16 %v1344_v37, %v1340_v43  ;;  %v834_v11 = vmul.f32 0.5, %v3492_v62  ;;  %v1282_v59 = vadd.f32 1.0, %v2728_v58  ;;  %2741 = vtanh.f32 %v1158_v29 }
 0x17d   : > { %v1155_v30 = vmul.f32 0.7978846, %v1091_v57  ;;  %v2730_v25 = vpop.eup %2729  ;;  %v1342_v23 = vmul.f32 %v1278_v54, %v830_v63  ;;  %v827_v53 = vmul.f32 0.5, %v4257_v27  ;;  %2743 = vtanh.f32 %v1162_v39 }
 0x17e   : > { %1730 = vmatprep.mubr.bf16.mxu0 %v1384_v3  ;;  %v1159_v28 = vmul.f32 0.7978846, %v1095_v8  ;;  %v2732_v50 = vpop.eup %2731  ;;  %v1346_v44 = vmul.f32 %v1282_v59, %v834_v11  ;;  %v1275_v17 = vadd.f32 1.0, %v2730_v25  ;;  %v1093_v22 = vadd.f32 %v4272_v47, %v4271_v24 }
 0x17f   : > { %2745 = vtanh.f32 %v1155_v30  ;;  %v831_v49 = vmul.f32 0.5, %v4259_v32  ;;  %v1279_v62 = vadd.f32 1.0, %v2732_v50  ;;  %v1097_v40 = vadd.f32 %v3639_v0, %v3556_v56 }
 0x180   : > { %2747 = vtanh.f32 %v1159_v28  ;;  %v1042_v16 = vmul.f32 %v978_v38, %v3696_v33  ;;  %v1386_v7 = vpack.c.bf16 %v1346_v44, %v1342_v23  ;;  %v1339_v27 = vmul.f32 %v1275_v17, %v827_v53 }
 0x181   : > { %v1157_v60 = vmul.f32 0.7978846, %v1093_v22  ;;  %v2734_v1 = vpop.eup %2733  ;;  %v1343_v48 = vmul.f32 %v1279_v62, %v831_v49  ;;  %v1161_v34 = vmul.f32 0.7978846, %v1097_v40  ;;  %v1100_v19 = vadd.f32 %v3708_v21, %v3650_v55 }
 0x182   : > { %v1104_v43 = vadd.f32 %v1040_v10, %v3674_v12  ;;  %v2736_v37 = vpop.eup %2735  ;;  %1827 = vmatprep.mubr.bf16.mxu1 %v1386_v7  ;;  %v829_v32 = vmul.f32 0.5, %v4261_v2  ;;  %v833_v51 = vmul.f32 0.5, %v4263_v41  ;;  %v1277_v0 = vadd.f32 1.0, %v2734_v1 }
 0x183   : > { %2749 = vtanh.f32 %v1157_v60  ;;  %v1383_v38 = vpack.c.bf16 %v1343_v48, %v1339_v27  ;;  %v1281_v26 = vadd.f32 1.0, %v2736_v37  ;;  %v1164_v63 = vmul.f32 0.7978846, %v1100_v19 }
 0x184   : > { %2751 = vtanh.f32 %v1161_v34  ;;  %v836_v29 = vmul.f32 0.5, %v3540_v4  ;;  %v1168_v5 = vmul.f32 0.7978846, %v1104_v43  ;;  %v1102_v21 = vadd.f32 %v3721_v52, %v3660_v35 }
 0x185   : > { %v1106_v10 = vadd.f32 %v1042_v16, %v3696_v33  ;;  %1731 = vmatmul.mubr.bf16.gmra.mxu0 %v1383_v38  ;;  %v1341_v57 = vmul.f32 %v1277_v0, %v829_v32  ;;  %v1345_v58 = vmul.f32 %v1281_v26, %v833_v51  ;;  %v840_v2 = vmul.f32 0.5, %v3583_v46 }
 0x186   : > { %2753 = vtanh.f32 %v1164_v63  ;;  %v2738_v41 = vpop.eup %2737  ;;  %v1166_v3 = vmul.f32 0.7978846, %v1102_v21  ;;  %v1099_v39 = vadd.f32 %v3681_v14, %v3618_v42  ;;  %v838_v52 = vmul.f32 0.5, %v4265_v31  ;;  %v4273_v31 = vld [vmem:[#allocation8_spill] sm:$0xff] }
 0x187   : > { %2755 = vtanh.f32 %v1168_v5  ;;  %v1170_v54 = vmul.f32 0.7978846, %v1106_v10  ;;  %v2740_v4 = vpop.eup %2739  ;;  %v1385_v13 = vpack.c.bf16 %v1345_v58, %v1341_v57  ;;  %v1284_v8 = vadd.f32 1.0, %v2738_v41 }
 0x188   : > { %v1103_v11 = vadd.f32 %v3726_v18, %v3663_v15  ;;  %v1288_v59 = vadd.f32 1.0, %v2740_v4  ;;  %v842_v30 = vmul.f32 0.5, %v3595_v45  ;;  %2757 = vtanh.f32 %v1166_v3 }
 0x189   : > { %v1163_v46 = vmul.f32 0.7978846, %v1099_v39  ;;  %v2742_v25 = vpop.eup %2741  ;;  %1828 = vmatmul.mubr.bf16.gmra.mxu1 %v1385_v13  ;;  %v1348_v23 = vmul.f32 %v1284_v8, %v836_v29  ;;  %2759 = vtanh.f32 %v1170_v54  ;;  %v1101_v14 = vadd.f32 %v3686_v20, %v3627_v6 }
 0x18a   : > { %v1167_v53 = vmul.f32 0.7978846, %v1103_v11  ;;  %v2744_v28 = vpop.eup %2743  ;;  %v1352_v50 = vmul.f32 %v1288_v59, %v840_v2  ;;  %v1286_v44 = vadd.f32 1.0, %v2742_v25  ;;  %v1105_v18 = vadd.f32 %v4273_v31, %v3669_v9 }
 0x18b   : > { %2761 = vtanh.f32 %v1163_v46  ;;  %v1290_v47 = vadd.f32 1.0, %v2744_v28  ;;  %v835_v45 = vmul.f32 0.5, %v4267_v61  ;;  %v1165_v22 = vmul.f32 0.7978846, %v1101_v14 }
 0x18c   : > { %v2746_v17 = vpop.eup %2745  ;;  %2763 = vtanh.f32 %v1167_v53  ;;  %v1388_v62 = vpack.c.bf16 %v1352_v50, %v1348_v23  ;;  %v839_v40 = vmul.f32 0.5, %v4269_v36  ;;  %v1169_v7 = vmul.f32 0.7978846, %v1105_v18 }
 0x18d   : > { %v2748_v49 = vpop.eup %2747  ;;  %v1283_v16 = vadd.f32 1.0, %v2746_v17  ;;  %v1350_v20 = vmul.f32 %v1286_v44, %v838_v52  ;;  %v1354_v27 = vmul.f32 %v1290_v47, %v842_v30  ;;  %2765 = vtanh.f32 %v1165_v22  ;;  %v3853_v17 = vld [vmem:[%s4087_s4] ss:$0 sm:$0xff] }
 0x18e   : > { %v1287_v60 = vadd.f32 1.0, %v2748_v49  ;;  %1738 = vmatprep.mubr.bf16.mxu0 %v1388_v62  ;;  %2767 = vtanh.f32 %v1169_v7  ;;  %v837_v32 = vmul.f32 0.5, %v4271_v24  ;;  %v841_v36 = vmul.f32 0.5, %v3556_v56 }
 0x18f   : > { %v1390_v48 = vpack.c.bf16 %v1354_v27, %v1350_v20  ;;  %v1347_v34 = vmul.f32 %v1283_v16, %v835_v45  ;;  %v844_v5 = vmul.f32 0.5, %v3650_v55  ;;  %v848_v21 = vmul.f32 0.5, %v3674_v12  ;;  %v2801_v16 = vld [vmem:[%s2965_s22] sm:$0xff]  }
 0x190   : > { %v2750_v1 = vpop.eup %2749  ;;  %v1351_v19 = vmul.f32 %v1287_v60, %v839_v40  ;;  %v846_v56 = vmul.f32 0.5, %v3660_v35  ;;  %v850_v39 = vmul.f32 0.5, %v3696_v33  ;;  %v843_v55 = vmul.f32 0.5, %v3618_v42 }
 0x191   : > { %v2752_v43 = vpop.eup %2751  ;;  %v1285_v61 = vadd.f32 1.0, %v2750_v1  ;;  %1835 = vmatprep.mubr.bf16.mxu1 %v1390_v48  ;;  %v847_v59 = vmul.f32 0.5, %v3663_v15  ;;  %v845_v33 = vmul.f32 0.5, %v3627_v6  ;;  %v849_v28 = vmul.f32 0.5, %v3669_v9 }
 0x192   : > { %v1387_v37 = vpack.c.bf16 %v1351_v19, %v1347_v34  ;;  %v1289_v51 = vadd.f32 1.0, %v2752_v43  ;;  %v1852_v7 = vunpack.c.l.bf16 %v2801_v16  ;;  %v1853_v43 = vunpack.c.h.bf16 %v2801_v16  ;;  %v2804_v16 = vld [vmem:[%s2965_s22 + $0x18] sm:$0xff]  }
 0x193   : > { %v2754_v0 = vpop.eup %2753  ;;  %v1349_v26 = vmul.f32 %v1285_v61, %v837_v32 }
 0x194   : > { %v2756_v38 = vpop.eup %2755  ;;  %1739 = vmatmul.mubr.bf16.gmra.mxu0 %v1387_v37  ;;  %v1353_v63 = vmul.f32 %v1289_v51, %v841_v36  ;;  %v1292_v29 = vadd.f32 1.0, %v2754_v0 }
 0x195   : > { %v1296_v10 = vadd.f32 1.0, %v2756_v38  ;;  %v2758_v57 = vpop.eup %2757 }
 0x196   : > { %v1389_v58 = vpack.c.bf16 %v1353_v63, %v1349_v26  ;;  %v2760_v2 = vpop.eup %2759  ;;  %v1356_v41 = vmul.f32 %v1292_v29, %v844_v5  ;;  %v1294_v24 = vadd.f32 1.0, %v2758_v57  ;;  %v2802_v5 = vld [vmem:[%s2965_s22 + $0x8] sm:$0xff]  }
 0x197   : > { %v1360_v3 = vmul.f32 %v1296_v10, %v848_v21  ;;  %v1298_v4 = vadd.f32 1.0, %v2760_v2  ;;  %v1854_v21 = vunpack.c.l.bf16 %v2802_v5 }
 0x198   : > { %v2762_v54 = vpop.eup %2761  ;;  %1836 = vmatmul.mubr.bf16.gmra.mxu1 %v1389_v58  ;;  %v1358_v12 = vmul.f32 %v1294_v24, %v846_v56  ;;  %v1855_v56 = vunpack.c.h.bf16 %v2802_v5 }
 0x199   : > { %v2764_v13 = vpop.eup %2763  ;;  %v1392_v8 = vpack.c.bf16 %v1360_v3, %v1356_v41  ;;  %v1291_v52 = vadd.f32 1.0, %v2762_v54  ;;  %v1362_v11 = vmul.f32 %v1298_v4, %v850_v39 }
 0x19a   : > { %v1295_v30 = vadd.f32 1.0, %v2764_v13  ;;  %v2766_v46 = vpop.eup %2765 }
 0x19b   : > { %1746 = vmatprep.mubr.bf16.mxu0 %v1392_v8  ;;  %v2768_v25 = vpop.eup %2767  ;;  %v1394_v23 = vpack.c.bf16 %v1362_v11, %v1358_v12  ;;  %v1355_v53 = vmul.f32 %v1291_v52, %v843_v55  ;;  %v1293_v35 = vadd.f32 1.0, %v2766_v46 }
 0x19c   : > { %v1359_v14 = vmul.f32 %v1295_v30, %v847_v59  ;;  %v1297_v50 = vadd.f32 1.0, %v2768_v25 }
 0x19d   : > { %1843 = vmatprep.mubr.bf16.mxu1 %v1394_v23  ;;  %v1357_v44 = vmul.f32 %v1293_v35, %v845_v33  ;;  %v2803_v23 = vld [vmem:[%s2965_s22 + $0x10] sm:$0xff]  }
 0x19e   : > { %v1391_v42 = vpack.c.bf16 %v1359_v14, %v1355_v53  ;;  %v1361_v31 = vmul.f32 %v1297_v50, %v849_v28  ;;  %v1856_v53 = vunpack.c.l.bf16 %v2803_v23 }
 0x1a0   : > { %1747 = vmatmul.mubr.bf16.gmra.mxu0 %v1391_v42  ;;  %v1393_v15 = vpack.c.bf16 %v1361_v31, %v1357_v44  ;;  %v1857_v44 = vunpack.c.h.bf16 %v2803_v23 }
 0x1a2   : > { %1844 = vmatmul.mubr.bf16.gmra.mxu1 %v1393_v15 }
 0x1f1   : > { %v2424_v18 = vpop.f32.mrf.mxu0 }
 0x1f3   : > { %v2425_v47 = vpop.f32.mrf.mxu0 }
 0x1f4   : > { %v2426_v6 = vadd.f32 %v2425_v47, %v2424_v18 }
 0x1f5   : > { %v2427_v22 = vpop.f32.mrf.mxu0 }
 0x1f6   : > { %v2488_v45 = vpop.f32.mrf.mxu1  ;;  %v1693_v9 = vadd.f32 %v2426_v6, %v3853_v17 }
 0x1f7   : > { %v2428_v40 = vpop.f32.mrf.mxu0 }
 0x1f8   : > { %v2489_v49 = vpop.f32.mrf.mxu1  ;;  %v2429_v27 = vadd.f32 %v2428_v40, %v2427_v22 }
 0x1f9   : > { %v2490_v62 = vadd.f32 %v2489_v49, %v2488_v45 }
 0x1fa   : > { %v2491_v20 = vpop.f32.mrf.mxu1  ;;  %v1696_v1 = vadd.f32 %v2429_v27, %v3853_v17 }
 0x1fb   : > { %v1790_v60 = vadd.f32 %v2490_v62, %v1693_v9 }
 0x1fc   : > { %v2492_v48 = vpop.f32.mrf.mxu1 }
 0x1fd   : > { %v2493_v34 = vadd.f32 %v2492_v48, %v2491_v20  ;;  %v3858_v19 = vadd.f32 %v1852_v7, %v1790_v60  ;;  %v1858_v7 = vunpack.c.l.bf16 %v2804_v16 }
 0x1ff   : > { %v1793_v61 = vadd.f32 %v2493_v34, %v1696_v1  ;;  %1886 = vadd.xlane.f32.xlu0 %v3858_v19 }
 0x201   : > { %v3861_v37 = vadd.f32 %v1853_v43, %v1793_v61 }
 0x203   : > { %1888 = vadd.xlane.f32.xlu0 %v3861_v37 }
 0x208   : > { %v2430_v32 = vpop.f32.mrf.mxu0 }
 0x20a   : > { %v2431_v51 = vpop.f32.mrf.mxu0 }
 0x20b   : > { %v2494_v36 = vpop.f32.mrf.mxu1  ;;  %v2432_v0 = vadd.f32 %v2431_v51, %v2430_v32  ;;  %v1859_v32 = vunpack.c.h.bf16 %v2804_v16 }
 0x20c   : > { %v2433_v26 = vpop.f32.mrf.mxu0 }
 0x20d   : > { %v2495_v38 = vpop.f32.mrf.mxu1  ;;  %v1701_v63 = vadd.f32 %v2432_v0, %v3853_v17 }
 0x20e   : > { %v2496_v29 = vadd.f32 %v2495_v38, %v2494_v36  ;;  %v2434_v57 = vpop.f32.mrf.mxu0 }
 0x20f   : > { %v2497_v10 = vpop.f32.mrf.mxu1  ;;  %v2435_v2 = vadd.f32 %v2434_v57, %v2433_v26 }
 0x210   : > { %v1798_v58 = vadd.f32 %v2496_v29, %v1701_v63 }
 0x211   : > { %v2498_v41 = vpop.f32.mrf.mxu1  ;;  %v1704_v3 = vadd.f32 %v2435_v2, %v3853_v17 }
 0x212   : > { %v2499_v24 = vadd.f32 %v2498_v41, %v2497_v10  ;;  %v3867_v54 = vadd.f32 %v1854_v21, %v1798_v58  ;;  %v2805_v10 = vld [vmem:[%s2965_s22 + $0x20] sm:$0xff]  }
 0x213   : > { %v1860_v57 = vunpack.c.l.bf16 %v2805_v10 }
 0x214   : > { %v1801_v39 = vadd.f32 %v2499_v24, %v1704_v3  ;;  %1890 = vadd.xlane.f32.xlu1 %v3867_v54 }
 0x216   : > { %v3870_v4 = vadd.f32 %v1855_v56, %v1801_v39 }
 0x218   : > { %1892 = vadd.xlane.f32.xlu1 %v3870_v4 }
 0x21c   : > { %v2436_v13 = vpop.f32.mrf.mxu0 }
 0x21e   : > { %v2437_v8 = vpop.f32.mrf.mxu0 }
 0x21f   : > { %v2438_v55 = vadd.f32 %v2437_v8, %v2436_v13  ;;  %v1861_v8 = vunpack.c.h.bf16 %v2805_v10 }
 0x220   : > { %v2439_v52 = vpop.f32.mrf.mxu0  ;;  %v2500_v12 = vpop.f32.mrf.mxu1 }
 0x221   : > { %v1709_v11 = vadd.f32 %v2438_v55, %v3853_v17 }
 0x222   : > { %v2440_v59 = vpop.f32.mrf.mxu0  ;;  %v2501_v30 = vpop.f32.mrf.mxu1 }
 0x223   : > { %v2441_v46 = vadd.f32 %v2440_v59, %v2439_v52  ;;  %v2502_v25 = vadd.f32 %v2501_v30, %v2500_v12 }
 0x224   : > { %v2503_v14 = vpop.f32.mrf.mxu1 }
 0x225   : > { %v1806_v35 = vadd.f32 %v2502_v25, %v1709_v11  ;;  %v1712_v33 = vadd.f32 %v2441_v46, %v3853_v17 }
 0x226   : > { %v2504_v28 = vpop.f32.mrf.mxu1 }
 0x227   : > { %v2505_v50 = vadd.f32 %v2504_v28, %v2503_v14  ;;  %v3876_v42 = vadd.f32 %v1856_v53, %v1806_v35 }
 0x229   : > { %v1809_v31 = vadd.f32 %v2505_v50, %v1712_v33  ;;  %1894 = vadd.xlane.f32.xlu0 %v3876_v42  ;;  %v2806_v33 = vld [vmem:[%s2965_s22 + $0x28] sm:$0xff]  }
 0x22a   : > { %v1862_v28 = vunpack.c.l.bf16 %v2806_v33 }
 0x22b   : > { %v3879_v15 = vadd.f32 %v1857_v44, %v1809_v31 }
 0x22d   : > { %1896 = vadd.xlane.f32.xlu1 %v3879_v15 }
 0x22e   : > { %v2442_v18 = vpop.f32.mrf.mxu0 }
 0x230   : > { %v2443_v47 = vpop.f32.mrf.mxu0 }
 0x231   : > { %v2444_v6 = vadd.f32 %v2443_v47, %v2442_v18 }
 0x232   : > { %v2506_v45 = vpop.f32.mrf.mxu1  ;;  %v2445_v22 = vpop.f32.mrf.mxu0 }
 0x233   : > { %v1717_v9 = vadd.f32 %v2444_v6, %v3853_v17  ;;  %v1863_v6 = vunpack.c.h.bf16 %v2806_v33 }
 0x234   : > { %v2507_v49 = vpop.f32.mrf.mxu1  ;;  %v2446_v40 = vpop.f32.mrf.mxu0 }
 0x235   : > { %v2508_v62 = vadd.f32 %v2507_v49, %v2506_v45  ;;  %v2447_v27 = vadd.f32 %v2446_v40, %v2445_v22 }
 0x236   : > { %v2509_v20 = vpop.f32.mrf.mxu1 }
 0x237   : > { %v1814_v60 = vadd.f32 %v2508_v62, %v1717_v9  ;;  %v1720_v1 = vadd.f32 %v2447_v27, %v3853_v17 }
 0x238   : > { %v2510_v48 = vpop.f32.mrf.mxu1 }
 0x239   : > { %v2511_v34 = vadd.f32 %v2510_v48, %v2509_v20  ;;  %v2448_v43 = vpop.f32.mrf.mxu0  ;;  %v3885_v61 = vadd.f32 %v1858_v7, %v1814_v60 }
 0x23b   : > { %v1817_v36 = vadd.f32 %v2511_v34, %v1720_v1  ;;  %v2512_v51 = vpop.f32.mrf.mxu1  ;;  %v2449_v0 = vpop.f32.mrf.mxu0  ;;  %1898 = vadd.xlane.f32.xlu0 %v3885_v61  ;;  %v2807_v34 = vld [vmem:[%s2965_s22 + $0x30] sm:$0xff]  }
 0x23c   : > { %v2450_v38 = vadd.f32 %v2449_v0, %v2448_v43  ;;  %v1864_v43 = vunpack.c.l.bf16 %v2807_v34 }
 0x23d   : > { %v2513_v26 = vpop.f32.mrf.mxu1  ;;  %v2451_v63 = vpop.f32.mrf.mxu0  ;;  %v3888_v29 = vadd.f32 %v1859_v32, %v1817_v36 }
 0x23e   : > { %v1725_v5 = vadd.f32 %v2450_v38, %v3853_v17  ;;  %v2514_v21 = vadd.f32 %v2513_v26, %v2512_v51 }
 0x23f   : > { %v2515_v58 = vpop.f32.mrf.mxu1  ;;  %v2452_v2 = vpop.f32.mrf.mxu0  ;;  %1900 = vadd.xlane.f32.xlu1 %v3888_v29 }
 0x240   : > { %v1822_v41 = vadd.f32 %v2514_v21, %v1725_v5  ;;  %v2453_v3 = vadd.f32 %v2452_v2, %v2451_v63  ;;  %v1865_v63 = vunpack.c.h.bf16 %v2807_v34 }
 0x241   : > { %v2516_v24 = vpop.f32.mrf.mxu1 }
 0x242   : > { %v1728_v56 = vadd.f32 %v2453_v3, %v3853_v17  ;;  %v2517_v39 = vadd.f32 %v2516_v24, %v2515_v58  ;;  %v3894_v13 = vadd.f32 %v1860_v57, %v1822_v41 }
 0x244   : > { %v1825_v55 = vadd.f32 %v2517_v39, %v1728_v56  ;;  %1902 = vadd.xlane.f32.xlu0 %v3894_v13 }
 0x245   : > { %v2454_v52 = vpop.f32.mrf.mxu0 }
 0x246   : > { %v3897_v12 = vadd.f32 %v1861_v8, %v1825_v55  ;;  %v2808_v8 = vld [vmem:[%s2965_s22 + $0x38] sm:$0xff]  }
 0x247   : > { %v2455_v11 = vpop.f32.mrf.mxu0  ;;  %v1866_v55 = vunpack.c.l.bf16 %v2808_v8 }
 0x248   : > { %1904 = vadd.xlane.f32.xlu1 %v3897_v12  ;;  %v2456_v59 = vadd.f32 %v2455_v11, %v2454_v52 }
 0x249   : > { %v2518_v30 = vpop.f32.mrf.mxu1  ;;  %v2457_v46 = vpop.f32.mrf.mxu0 }
 0x24a   : > { %v1733_v25 = vadd.f32 %v2456_v59, %v3853_v17 }
 0x24b   : > { %v2519_v23 = vpop.f32.mrf.mxu1  ;;  %v2458_v53 = vpop.f32.mrf.mxu0 }
 0x24c   : > { %v2520_v14 = vadd.f32 %v2519_v23, %v2518_v30  ;;  %v2459_v35 = vadd.f32 %v2458_v53, %v2457_v46  ;;  %v1867_v53 = vunpack.c.h.bf16 %v2808_v8 }
 0x24d   : > { %v2521_v50 = vpop.f32.mrf.mxu1 }
 0x24e   : > { %v1830_v44 = vadd.f32 %v2520_v14, %v1733_v25  ;;  %v1736_v31 = vadd.f32 %v2459_v35, %v3853_v17 }
 0x24f   : > { %v2522_v18 = vpop.f32.mrf.mxu1 }
 0x250   : > { %v2523_v47 = vadd.f32 %v2522_v18, %v2521_v50  ;;  %v3903_v45 = vadd.f32 %v1862_v28, %v1830_v44 }
 0x252   : > { %v1833_v22 = vadd.f32 %v2523_v47, %v1736_v31  ;;  %1906 = vadd.xlane.f32.xlu0 %v3903_v45 }
 0x254   : > { %v2460_v9 = vpop.f32.mrf.mxu0  ;;  %v3906_v49 = vadd.f32 %v1863_v6, %v1833_v22 }
 0x256   : > { %v2461_v62 = vpop.f32.mrf.mxu0  ;;  %1908 = vadd.xlane.f32.xlu1 %v3906_v49 }
 0x257   : > { %v2462_v40 = vadd.f32 %v2461_v62, %v2460_v9 }
 0x258   : > { %v2524_v16 = vpop.f32.mrf.mxu1  ;;  %v2463_v7 = vpop.f32.mrf.mxu0 }
 0x259   : > { %v1741_v20 = vadd.f32 %v2462_v40, %v3853_v17 }
 0x25a   : > { %v2525_v27 = vpop.f32.mrf.mxu1  ;;  %v2464_v60 = vpop.f32.mrf.mxu0 }
 0x25b   : > { %v2526_v1 = vadd.f32 %v2525_v27, %v2524_v16  ;;  %v2465_v48 = vadd.f32 %v2464_v60, %v2463_v7 }
 0x25c   : > { %v2527_v32 = vpop.f32.mrf.mxu1 }
 0x25d   : > { %v1838_v36 = vadd.f32 %v2526_v1, %v1741_v20  ;;  %v1744_v51 = vadd.f32 %v2465_v48, %v3853_v17 }
 0x25e   : > { %v2528_v0 = vpop.f32.mrf.mxu1 }
 0x25f   : > { %v2529_v38 = vadd.f32 %v2528_v0, %v2527_v32  ;;  %v3912_v26 = vadd.f32 %v1864_v43, %v1838_v36 }
 0x260   : > { %v2466_v5 = vpop.f32.mrf.mxu0 }
 0x261   : > { %v1841_v21 = vadd.f32 %v2529_v38, %v1744_v51  ;;  %1910 = vadd.xlane.f32.xlu0 %v3912_v26 }
 0x262   : > { %v2467_v10 = vpop.f32.mrf.mxu0  ;;  %v2530_v57 = vpop.f32.mrf.mxu1 }
 0x263   : > { %v2468_v58 = vadd.f32 %v2467_v10, %v2466_v5  ;;  %v3915_v2 = vadd.f32 %v1865_v63, %v1841_v21 }
 0x264   : > { %v2469_v41 = vpop.f32.mrf.mxu0  ;;  %v2531_v24 = vpop.f32.mrf.mxu1 }
 0x265   : > { %v1749_v3 = vadd.f32 %v2468_v58, %v3853_v17  ;;  %1912 = vadd.xlane.f32.xlu1 %v3915_v2  ;;  %v2532_v56 = vadd.f32 %v2531_v24, %v2530_v57 }
 0x266   : > { %v2470_v39 = vpop.f32.mrf.mxu0  ;;  %v2533_v52 = vpop.f32.mrf.mxu1 }
 0x267   : > { %v2471_v11 = vadd.f32 %v2470_v39, %v2469_v41  ;;  %v1846_v59 = vadd.f32 %v2532_v56, %v1749_v3 }
 0x268   : > { %v2534_v46 = vpop.f32.mrf.mxu1 }
 0x269   : > { %v1752_v30 = vadd.f32 %v2471_v11, %v3853_v17  ;;  %v2535_v25 = vadd.f32 %v2534_v46, %v2533_v52  ;;  %v3921_v23 = vadd.f32 %v1866_v55, %v1846_v59 }
 0x26b   : > { %v1849_v14 = vadd.f32 %v2535_v25, %v1752_v30  ;;  %1914 = vadd.xlane.f32.xlu0 %v3921_v23 }
 0x26d   : > { %v3924_v35 = vadd.f32 %v1867_v53, %v1849_v14 }
 0x26f   : > { %1916 = vadd.xlane.f32.xlu1 %v3924_v35 }
 0x288   : > { %v1887_v33 = vpop.xlane.xlu0 %1886 }
 0x289   : > { %v1919_v28 = vmul.f32 0.0078125, %v1887_v33 }
 0x28b   : > { %v3928_v50 = vsub.f32 %v3858_v19, %v1919_v28 }
 0x28c   : > { %v1889_v44 = vpop.xlane.xlu0 %1888 }
 0x28d   : > { %v1920_v31 = vmul.f32 0.0078125, %v1889_v44  ;;  %v1951_v17 = vmul.f32 %v3928_v50, %v3928_v50 }
 0x28f   : > { %v3933_v18 = vsub.f32 %v3861_v37, %v1920_v31  ;;  %1967 = vadd.xlane.f32.xlu0 %v1951_v17 }
 0x291   : > { %v1952_v47 = vmul.f32 %v3933_v18, %v3933_v18 }
 0x293   : > { %1969 = vadd.xlane.f32.xlu1 %v1952_v47 }
 0x29d   : > { %v1891_v6 = vpop.xlane.xlu1 %1890 }
 0x29e   : > { %v1921_v22 = vmul.f32 0.0078125, %v1891_v6 }
 0x2a0   : > { %v3938_v9 = vsub.f32 %v3867_v54, %v1921_v22 }
 0x2a1   : > { %v1893_v19 = vpop.xlane.xlu1 %1892 }
 0x2a2   : > { %v1922_v62 = vmul.f32 0.0078125, %v1893_v19  ;;  %v1953_v40 = vmul.f32 %v3938_v9, %v3938_v9 }
 0x2a4   : > { %v3943_v16 = vsub.f32 %v3870_v4, %v1922_v62  ;;  %1971 = vadd.xlane.f32.xlu0 %v1953_v40 }
 0x2a6   : > { %v1954_v37 = vmul.f32 %v3943_v16, %v3943_v16 }
 0x2a8   : > { %1973 = vadd.xlane.f32.xlu1 %v1954_v37 }
 0x2b2   : > { %v1895_v7 = vpop.xlane.xlu0 %1894 }
 0x2b3   : > { %v1923_v20 = vmul.f32 0.0078125, %v1895_v7 }
 0x2b5   : > { %v3948_v27 = vsub.f32 %v3876_v42, %v1923_v20 }
 0x2b6   : > { %v1897_v54 = vpop.xlane.xlu1 %1896 }
 0x2b7   : > { %v1924_v60 = vmul.f32 0.0078125, %v1897_v54  ;;  %v1955_v1 = vmul.f32 %v3948_v27, %v3948_v27  ;;  %v4018_v54 = vld [vmem:[%s4089_s6] ss:$0 sm:$0xff] }
 0x2b9   : > { %v3953_v48 = vsub.f32 %v3879_v15, %v1924_v60  ;;  %1975 = vadd.xlane.f32.xlu0 %v1955_v1 }
 0x2bb   : > { %v1956_v4 = vmul.f32 %v3953_v48, %v3953_v48 }
 0x2bd   : > { %1977 = vadd.xlane.f32.xlu1 %v1956_v4 }
 0x2c4   : > { %v1899_v34 = vpop.xlane.xlu0 %1898 }
 0x2c5   : > { %v1925_v43 = vmul.f32 0.0078125, %v1899_v34 }
 0x2c7   : > { %v3958_v32 = vsub.f32 %v3885_v61, %v1925_v43 }
 0x2c8   : > { %v1901_v42 = vpop.xlane.xlu1 %1900 }
 0x2c9   : > { %v1926_v36 = vmul.f32 0.0078125, %v1901_v42  ;;  %v1957_v51 = vmul.f32 %v3958_v32, %v3958_v32 }
 0x2cb   : > { %v3963_v0 = vsub.f32 %v3888_v29, %v1926_v36  ;;  %1979 = vadd.xlane.f32.xlu0 %v1957_v51 }
 0x2cd   : > { %v1903_v15 = vpop.xlane.xlu0 %1902  ;;  %v1958_v38 = vmul.f32 %v3963_v0, %v3963_v0 }
 0x2ce   : > { %v1927_v63 = vmul.f32 0.0078125, %v1903_v15 }
 0x2cf   : > { %1981 = vadd.xlane.f32.xlu1 %v1958_v38 }
 0x2d0   : > { %v3968_v5 = vsub.f32 %v3894_v13, %v1927_v63 }
 0x2d1   : > { %v1905_v61 = vpop.xlane.xlu1 %1904 }
 0x2d2   : > { %v1928_v21 = vmul.f32 0.0078125, %v1905_v61  ;;  %v1959_v10 = vmul.f32 %v3968_v5, %v3968_v5 }
 0x2d4   : > { %v3973_v57 = vsub.f32 %v3897_v12, %v1928_v21  ;;  %1983 = vadd.xlane.f32.xlu0 %v1959_v10 }
 0x2d6   : > { %v1960_v29 = vmul.f32 %v3973_v57, %v3973_v57 }
 0x2d8   : > { %1985 = vadd.xlane.f32.xlu1 %v1960_v29 }
 0x2db   : > { %v1907_v58 = vpop.xlane.xlu0 %1906 }
 0x2dc   : > { %v1929_v41 = vmul.f32 0.0078125, %v1907_v58 }
 0x2de   : > { %v3978_v3 = vsub.f32 %v3903_v45, %v1929_v41 }
 0x2df   : > { %v1909_v13 = vpop.xlane.xlu1 %1908 }
 0x2e0   : > { %v1930_v24 = vmul.f32 0.0078125, %v1909_v13  ;;  %v1961_v56 = vmul.f32 %v3978_v3, %v3978_v3 }
 0x2e2   : > { %v3983_v39 = vsub.f32 %v3906_v49, %v1930_v24  ;;  %1987 = vadd.xlane.f32.xlu0 %v1961_v56 }
 0x2e4   : > { %v1962_v12 = vmul.f32 %v3983_v39, %v3983_v39 }
 0x2e6   : > { %1989 = vadd.xlane.f32.xlu1 %v1962_v12 }
 0x2ea   : > { %v1911_v8 = vpop.xlane.xlu0 %1910 }
 0x2eb   : > { %v1931_v55 = vmul.f32 0.0078125, %v1911_v8 }
 0x2ed   : > { %v3988_v52 = vsub.f32 %v3912_v26, %v1931_v55 }
 0x2ee   : > { %v1913_v45 = vpop.xlane.xlu1 %1912 }
 0x2ef   : > { %v1932_v11 = vmul.f32 0.0078125, %v1913_v45  ;;  %v1963_v59 = vmul.f32 %v3988_v52, %v3988_v52 }
 0x2f1   : > { %v3993_v30 = vsub.f32 %v3915_v2, %v1932_v11  ;;  %1991 = vadd.xlane.f32.xlu0 %v1963_v59 }
 0x2f3   : > { %v1964_v49 = vmul.f32 %v3993_v30, %v3993_v30 }
 0x2f4   : > { %v1915_v46 = vpop.xlane.xlu0 %1914 }
 0x2f5   : > { %1993 = vadd.xlane.f32.xlu1 %v1964_v49  ;;  %v1933_v25 = vmul.f32 0.0078125, %v1915_v46 }
 0x2f7   : > { %v3998_v53 = vsub.f32 %v3921_v23, %v1933_v25 }
 0x2f8   : > { %v1917_v26 = vpop.xlane.xlu1 %1916 }
 0x2f9   : > { %v1934_v14 = vmul.f32 0.0078125, %v1917_v26  ;;  %v1965_v33 = vmul.f32 %v3998_v53, %v3998_v53 }
 0x2fb   : > { %v4003_v28 = vsub.f32 %v3924_v35, %v1934_v14  ;;  %1995 = vadd.xlane.f32.xlu0 %v1965_v33  ;;  %v4011_v35 = vld [vmem:[%s4088_s5] ss:$0 sm:$0xff] }
 0x2fd   : > { %v1966_v2 = vmul.f32 %v4003_v28, %v4003_v28 }
 0x2ff   : > { %1997 = vadd.xlane.f32.xlu1 %v1966_v2 }
 0x318   : > { %v1968_v44 = vpop.xlane.xlu0 %1967 }
 0x319   : > { %v1999_v31 = vmul.f32 0.0078125, %v1968_v44 }
 0x31b   : > { %v2015_v17 = vadd.f32 1e-12, %v1999_v31 }
 0x31c   : > { %v1970_v47 = vpop.xlane.xlu1 %1969 }
 0x31d   : > { %2769 = vrsqrt.f32 %v2015_v17  ;;  %v2000_v23 = vmul.f32 0.0078125, %v1970_v47 }
 0x31f   : > { %v2016_v6 = vadd.f32 1e-12, %v2000_v23 }
 0x321   : > { %2771 = vrsqrt.f32 %v2016_v6 }
 0x32a   : > { %v2770_v22 = vpop.eup %2769 }
 0x32b   : > { %v2047_v19 = vmul.f32 %v2770_v22, %v3928_v50 }
 0x32d   : > { %v1972_v40 = vpop.xlane.xlu0 %1971  ;;  %v2069_v37 = vmul.f32 %v4011_v35, %v2047_v19 }
 0x32e   : > { %v2772_v62 = vpop.eup %2771  ;;  %v2001_v20 = vmul.f32 0.0078125, %v1972_v40 }
 0x32f   : > { %v2048_v7 = vmul.f32 %v2772_v62, %v3933_v18  ;;  %v2091_v4 = vadd.f32 %v4018_v54, %v2069_v37 }
 0x330   : > { %v2017_v50 = vadd.f32 1e-12, %v2001_v20 }
 0x331   : > { %v2070_v60 = vmul.f32 %v4011_v35, %v2048_v7  ;;  %v1974_v1 = vpop.xlane.xlu1 %1973 }
 0x332   : > { %2773 = vrsqrt.f32 %v2017_v50  ;;  %v2002_v43 = vmul.f32 0.0078125, %v1974_v1 }
 0x333   : > { %v2092_v34 = vadd.f32 %v4018_v54, %v2070_v60 }
 0x334   : > { %v2018_v42 = vadd.f32 1e-12, %v2002_v43 }
 0x335   : > { %v2364_v18 = vpack.c.bf16 %v2092_v34, %v2091_v4 }
 0x336   : > { %2775 = vrsqrt.f32 %v2018_v42 }
 0x337   : > { %2365 = vst [vmem:[%s4028_s28] sm:$0xff] %v2364_v18  }
 0x33f   : > { %v2774_v36 = vpop.eup %2773 }
 0x340   : > { %v2049_v51 = vmul.f32 %v2774_v36, %v3938_v9 }
 0x342   : > { %v1976_v38 = vpop.xlane.xlu0 %1975  ;;  %v2071_v63 = vmul.f32 %v4011_v35, %v2049_v51 }
 0x343   : > { %v2776_v15 = vpop.eup %2775  ;;  %v2003_v21 = vmul.f32 0.0078125, %v1976_v38 }
 0x344   : > { %v2050_v61 = vmul.f32 %v2776_v15, %v3943_v16  ;;  %v2093_v41 = vadd.f32 %v4018_v54, %v2071_v63 }
 0x345   : > { %v2019_v29 = vadd.f32 1e-12, %v2003_v21 }
 0x346   : > { %v2072_v10 = vmul.f32 %v4011_v35, %v2050_v61  ;;  %v1978_v58 = vpop.xlane.xlu1 %1977 }
 0x347   : > { %2777 = vrsqrt.f32 %v2019_v29  ;;  %v2004_v24 = vmul.f32 0.0078125, %v1978_v58 }
 0x348   : > { %v2094_v13 = vadd.f32 %v4018_v54, %v2072_v10 }
 0x349   : > { %v2020_v12 = vadd.f32 1e-12, %v2004_v24 }
 0x34a   : > { %v2369_v56 = vpack.c.bf16 %v2094_v13, %v2093_v41 }
 0x34b   : > { %2779 = vrsqrt.f32 %v2020_v12 }
 0x34c   : > { %2401 = vst [vmem:[%s4028_s28 + $0x8] sm:$0xff] %v2369_v56  }
 0x354   : > { %v1980_v9 = vpop.xlane.xlu0 %1979  ;;  %v2778_v8 = vpop.eup %2777 }
 0x355   : > { %v2005_v55 = vmul.f32 0.0078125, %v1980_v9  ;;  %v2051_v16 = vmul.f32 %v2778_v8, %v3948_v27 }
 0x357   : > { %v2021_v45 = vadd.f32 1e-12, %v2005_v55  ;;  %v2073_v46 = vmul.f32 %v4011_v35, %v2051_v16 }
 0x358   : > { %v1982_v11 = vpop.xlane.xlu1 %1981  ;;  %v2780_v59 = vpop.eup %2779 }
 0x359   : > { %2781 = vrsqrt.f32 %v2021_v45  ;;  %v2006_v49 = vmul.f32 0.0078125, %v1982_v11  ;;  %v2052_v25 = vmul.f32 %v2780_v59, %v3953_v48  ;;  %v2095_v2 = vadd.f32 %v4018_v54, %v2073_v46 }
 0x35b   : > { %v2022_v26 = vadd.f32 1e-12, %v2006_v49  ;;  %v2074_v14 = vmul.f32 %v4011_v35, %v2052_v25 }
 0x35d   : > { %2783 = vrsqrt.f32 %v2022_v26  ;;  %v1984_v33 = vpop.xlane.xlu0 %1983  ;;  %v2096_v44 = vadd.f32 %v4018_v54, %v2074_v14 }
 0x35e   : > { %v2007_v27 = vmul.f32 0.0078125, %v1984_v33 }
 0x35f   : > { %v2374_v31 = vpack.c.bf16 %v2096_v44, %v2095_v2 }
 0x360   : > { %v2023_v17 = vadd.f32 1e-12, %v2007_v27 }
 0x361   : > { %v1986_v47 = vpop.xlane.xlu1 %1985  ;;  %2402 = vst [vmem:[%s4028_s28 + $0x10] sm:$0xff] %v2374_v31  }
 0x362   : > { %2785 = vrsqrt.f32 %v2023_v17  ;;  %v2008_v23 = vmul.f32 0.0078125, %v1986_v47 }
 0x364   : > { %v2024_v6 = vadd.f32 1e-12, %v2008_v23 }
 0x366   : > { %v2782_v22 = vpop.eup %2781  ;;  %2787 = vrsqrt.f32 %v2024_v6 }
 0x367   : > { %v2053_v48 = vmul.f32 %v2782_v22, %v3958_v32 }
 0x369   : > { %v2075_v62 = vmul.f32 %v4011_v35, %v2053_v48 }
 0x36a   : > { %v2784_v19 = vpop.eup %2783 }
 0x36b   : > { %v2054_v40 = vmul.f32 %v2784_v19, %v3963_v0  ;;  %v1988_v37 = vpop.xlane.xlu0 %1987  ;;  %v2097_v50 = vadd.f32 %v4018_v54, %v2075_v62 }
 0x36c   : > { %v2009_v20 = vmul.f32 0.0078125, %v1988_v37 }
 0x36d   : > { %v2076_v7 = vmul.f32 %v4011_v35, %v2054_v40 }
 0x36e   : > { %v2025_v4 = vadd.f32 1e-12, %v2009_v20 }
 0x36f   : > { %v2786_v60 = vpop.eup %2785  ;;  %v2098_v1 = vadd.f32 %v4018_v54, %v2076_v7  ;;  %v1990_v43 = vpop.xlane.xlu1 %1989 }
 0x370   : > { %v2055_v34 = vmul.f32 %v2786_v60, %v3968_v5  ;;  %2789 = vrsqrt.f32 %v2025_v4  ;;  %v2010_v18 = vmul.f32 0.0078125, %v1990_v43 }
 0x371   : > { %v2379_v32 = vpack.c.bf16 %v2098_v1, %v2097_v50 }
 0x372   : > { %v2026_v0 = vadd.f32 1e-12, %v2010_v18  ;;  %v2077_v36 = vmul.f32 %v4011_v35, %v2055_v34 }
 0x373   : > { %v2788_v42 = vpop.eup %2787  ;;  %2403 = vst [vmem:[%s4028_s28 + $0x18] sm:$0xff] %v2379_v32  }
 0x374   : > { %v2056_v51 = vmul.f32 %v2788_v42, %v3973_v57  ;;  %2791 = vrsqrt.f32 %v2026_v0  ;;  %v2099_v38 = vadd.f32 %v4018_v54, %v2077_v36 }
 0x376   : > { %v2078_v15 = vmul.f32 %v4011_v35, %v2056_v51 }
 0x378   : > { %v2100_v63 = vadd.f32 %v4018_v54, %v2078_v15 }
 0x37a   : > { %v2384_v5 = vpack.c.bf16 %v2100_v63, %v2099_v38  ;;  %v1992_v61 = vpop.xlane.xlu0 %1991 }
 0x37b   : > { %v2011_v21 = vmul.f32 0.0078125, %v1992_v61 }
 0x37c   : > { %2404 = vst [vmem:[%s4028_s28 + $0x20] sm:$0xff] %v2384_v5  }
 0x37d   : > { %v2027_v10 = vadd.f32 1e-12, %v2011_v21  ;;  %v2790_v29 = vpop.eup %2789 }
 0x37e   : > { %v1994_v58 = vpop.xlane.xlu1 %1993  ;;  %v2057_v41 = vmul.f32 %v2790_v29, %v3978_v3 }
 0x37f   : > { %2793 = vrsqrt.f32 %v2027_v10  ;;  %v2012_v13 = vmul.f32 0.0078125, %v1994_v58 }
 0x380   : > { %v2079_v56 = vmul.f32 %v4011_v35, %v2057_v41 }
 0x381   : > { %v2028_v57 = vadd.f32 1e-12, %v2012_v13  ;;  %v2792_v24 = vpop.eup %2791 }
 0x382   : > { %v2058_v12 = vmul.f32 %v2792_v24, %v3983_v39  ;;  %v2101_v16 = vadd.f32 %v4018_v54, %v2079_v56 }
 0x383   : > { %2795 = vrsqrt.f32 %v2028_v57 }
 0x384   : > { %v2080_v9 = vmul.f32 %v4011_v35, %v2058_v12  ;;  %v1996_v8 = vpop.xlane.xlu0 %1995 }
 0x385   : > { %v2013_v55 = vmul.f32 0.0078125, %v1996_v8 }
 0x386   : > { %v2102_v45 = vadd.f32 %v4018_v54, %v2080_v9 }
 0x387   : > { %v2029_v11 = vadd.f32 1e-12, %v2013_v55 }
 0x388   : > { %v2389_v3 = vpack.c.bf16 %v2102_v45, %v2101_v16  ;;  %v1998_v59 = vpop.xlane.xlu1 %1997 }
 0x389   : > { %2797 = vrsqrt.f32 %v2029_v11  ;;  %v2014_v49 = vmul.f32 0.0078125, %v1998_v59 }
 0x38a   : > { %2405 = vst [vmem:[%s4028_s28 + $0x28] sm:$0xff] %v2389_v3  }
 0x38b   : > { %v2030_v25 = vadd.f32 1e-12, %v2014_v49 }
 0x38c   : > { %v2794_v46 = vpop.eup %2793 }
 0x38d   : > { %v2059_v39 = vmul.f32 %v2794_v46, %v3988_v52  ;;  %2799 = vrsqrt.f32 %v2030_v25 }
 0x38f   : > { %v2081_v14 = vmul.f32 %v4011_v35, %v2059_v39 }
 0x390   : > { %v2796_v26 = vpop.eup %2795 }
 0x391   : > { %v2060_v33 = vmul.f32 %v2796_v26, %v3993_v30  ;;  %v2103_v44 = vadd.f32 %v4018_v54, %v2081_v14 }
 0x393   : > { %v2082_v2 = vmul.f32 %v4011_v35, %v2060_v33 }
 0x395   : > { %v2104_v27 = vadd.f32 %v4018_v54, %v2082_v2 }
 0x396   : > { %v2798_v31 = vpop.eup %2797 }
 0x397   : > { %v2394_v17 = vpack.c.bf16 %v2104_v27, %v2103_v44  ;;  %v2061_v47 = vmul.f32 %v2798_v31, %v3998_v53 }
 0x399   : > { %2406 = vst [vmem:[%s4028_s28 + $0x30] sm:$0xff] %v2394_v17   ;;  %v2083_v52 = vmul.f32 %v4011_v35, %v2061_v47 }
 0x39a   : > { %v2800_v23 = vpop.eup %2799 }
 0x39b   : > { %v2062_v6 = vmul.f32 %v2800_v23, %v4003_v28  ;;  %v2105_v30 = vadd.f32 %v4018_v54, %v2083_v52 }
 0x39d   : > { %v2084_v22 = vmul.f32 %v4011_v35, %v2062_v6 }
 0x39f   : > { %v2106_v48 = vadd.f32 %v4018_v54, %v2084_v22 }
 0x3a1   : > { %v2399_v19 = vpack.c.bf16 %v2106_v48, %v2105_v30 }
 0x3a3   : > { %2407 = vst [vmem:[%s4028_s28 + $0x38] sm:$0xff] %v2399_v19  }
 0x3a4 PF: > { %s17_s24 = sadd.s32 1, %s2815_s24  }
 0x3a5   : > { %p14_p4 = scmp.ge.s32.totalorder %s17_s24, 4  }
 0x3a7   :  { %16 = sbr.rel (!%p14_p4) target bundleno = 1 (0x1), region = 78 }

// kernel: xlnet_finetune_forward.17
= control target key start
LH: loop header
LB: loop body
LE: loop exit
PB: predicated region body
PF: predicated region fallthrough
CT: control target
= control target key end

     0   :  { %s448_s14 = smov 0   ;;  %s516_s0 = inlined_call_operand.vmem [shape: bf16[256,128], index: 0, kind: input, shape index: {}]   ;;  %s517_s1 = inlined_call_operand.vmem [shape: bf16[1,128], index: 1, kind: input, shape index: {}]   ;;  %s518_s2 = inlined_call_operand.<no memory space> [shape: f32[1,1], index: 2, kind: input, shape index: {}]   ;;  %s519_s3 = inlined_call_operand.vmem [shape: f32[256,1], index: 3, kind: output, shape index: {}]  }
   0x1   :  { %v8_v0 = vstv %s518_s2 }
   0x2   :  { %9 = vst [vmem:[#allocation2] sm:$0x1] %v8_v0 }
   0x3 LB: > { %s358_s15 = sadd.s32 4294967295, %s423_s14   ;;  %p362_p0 = scmp.ge.s32.totalorder %s423_s14, 1  ;;  %s423_s14 = sphi %s448_s14, %s15_s14  }
   0x4   : > { %p140_p1 = scmp.lt.s32.totalorder %s423_s14, 3 }
   0x6   : > { %p141_p2 = pnand %p362_p0, %p140_p1 }
   0x7   : > { %s363_s16 = sshll.u32 (!%p141_p2), %s358_s15, 4 }
   0x8   : > { %144 = sbr.rel (%p141_p2) target bundleno = 192 (0xc0), region = 32  ;;  %p165_p3 = scmp.lt.s32.totalorder (!%p141_p2), %s363_s16, 31 }
   0xd   : > { %v208_v1 = vld [vmem:[%s517_s1] sm:$0x1]  ;;  %v210_v2 = vlaneseq  ;;  %s521_s16 = smov (!%p165_p3, %s363_s16), 31  ;;  %vm285_vm0 = vcmask 7168  }
   0xe   : > { %v209_v3 = vunpack.c.l.bf16 %v208_v1  ;;  %s364_s2 = sshll.u32 %s521_s16, 2  ;;  %s366_s22 = sshll.u32 %s521_s16, 3  ;;  %v367_v47 = vld [vmem:[#allocation2] ss:$0 sm:$0xff] }
   0xf   : > { %v211_v4 = vshrl.u32 %v210_v2, 7  ;;  %s465_s21 = scalar_lea.vmem %s516_s0, %s364_s2  ;;  %s479_s25 = scalar_lea.vmem %s519_s3, %s366_s22 }
  0x10   : > { %v402_v7 = vld [vmem:[%s465_s21 + $0x8] sm:$0xff]   ;;  %v371_v8 = vld [vmem:[%s465_s21] sm:$0xff]   ;;  %v403_v13 = vld [vmem:[%s465_s21 + $0x10] sm:$0xff]  }
  0x11   : > { %v212_v5 = vsub.s32 0, %v211_v4  ;;  %v376_v9 = vunpack.c.l.bf16 %v402_v7  ;;  %v372_v10 = vunpack.c.l.bf16 %v371_v8  ;;  %v377_v11 = vunpack.c.h.bf16 %v402_v7  ;;  %v404_v20 = vld [vmem:[%s465_s21 + $0x18] sm:$0xff]   ;;  %v405_v25 = vld [vmem:[%s465_s21 + $0x20] sm:$0xff]   ;;  %v406_v30 = vld [vmem:[%s465_s21 + $0x28] sm:$0xff]  }
  0x12   : > { %v373_v12 = vunpack.c.h.bf16 %v371_v8  ;;  %v381_v18 = vunpack.c.h.bf16 %v403_v13  ;;  %v380_v19 = vunpack.c.l.bf16 %v403_v13  ;;  %v385_v23 = vunpack.c.h.bf16 %v404_v20  ;;  %v407_v35 = vld [vmem:[%s465_s21 + $0x30] sm:$0xff]   ;;  %v408_v40 = vld [vmem:[%s465_s21 + $0x38] sm:$0xff]  }
  0x13   : > { %v213_v6 = vrot.slane %v209_v3, %v212_v5  ;;  %v384_v24 = vunpack.c.l.bf16 %v404_v20  ;;  %v389_v28 = vunpack.c.h.bf16 %v405_v25  ;;  %v388_v29 = vunpack.c.l.bf16 %v405_v25 }
  0x14   : > { %v393_v33 = vunpack.c.h.bf16 %v406_v30  ;;  %v392_v34 = vunpack.c.l.bf16 %v406_v30  ;;  %v397_v38 = vunpack.c.h.bf16 %v407_v35  ;;  %v396_v39 = vunpack.c.l.bf16 %v407_v35 }
  0x15   : > { %v216_v14 = vmul.f32 %v376_v9, %v213_v6  ;;  %v214_v15 = vmul.f32 %v372_v10, %v213_v6  ;;  %v217_v16 = vmul.f32 %v377_v11, %v213_v6  ;;  %v215_v17 = vmul.f32 %v373_v12, %v213_v6 }
  0x16   : > { %v219_v21 = vmul.f32 %v381_v18, %v213_v6  ;;  %v218_v22 = vmul.f32 %v380_v19, %v213_v6  ;;  %v221_v26 = vmul.f32 %v385_v23, %v213_v6  ;;  %v220_v27 = vmul.f32 %v384_v24, %v213_v6 }
  0x17   : > { %234 = vadd.xlane.f32.xlu1 %v216_v14  ;;  %230 = vadd.xlane.f32.xlu0 %v214_v15  ;;  %v223_v31 = vmul.f32 %v389_v28, %v213_v6  ;;  %v222_v32 = vmul.f32 %v388_v29, %v213_v6  ;;  %v225_v36 = vmul.f32 %v393_v33, %v213_v6  ;;  %v401_v43 = vunpack.c.h.bf16 %v408_v40 }
  0x18   : > { %v224_v37 = vmul.f32 %v392_v34, %v213_v6  ;;  %v227_v41 = vmul.f32 %v397_v38, %v213_v6  ;;  %v226_v42 = vmul.f32 %v396_v39, %v213_v6  ;;  %v400_v44 = vunpack.c.l.bf16 %v408_v40 }
  0x19   : > { %v229_v45 = vmul.f32 %v401_v43, %v213_v6 }
  0x1a   : > { %v228_v46 = vmul.f32 %v400_v44, %v213_v6 }
  0x1b   : > { %236 = vadd.xlane.f32.xlu1 %v217_v16  ;;  %232 = vadd.xlane.f32.xlu0 %v215_v17 }
  0x1f   : > { %240 = vadd.xlane.f32.xlu1 %v219_v21  ;;  %238 = vadd.xlane.f32.xlu0 %v218_v22 }
  0x23   : > { %244 = vadd.xlane.f32.xlu1 %v221_v26  ;;  %242 = vadd.xlane.f32.xlu0 %v220_v27 }
  0x27   : > { %248 = vadd.xlane.f32.xlu1 %v223_v31  ;;  %246 = vadd.xlane.f32.xlu0 %v222_v32 }
  0x2b   : > { %252 = vadd.xlane.f32.xlu1 %v225_v36  ;;  %250 = vadd.xlane.f32.xlu0 %v224_v37 }
  0x2f   : > { %256 = vadd.xlane.f32.xlu1 %v227_v41  ;;  %254 = vadd.xlane.f32.xlu0 %v226_v42 }
  0x33   : > { %260 = vadd.xlane.f32.xlu1 %v229_v45  ;;  %258 = vadd.xlane.f32.xlu0 %v228_v46 }
  0xa0   : > { %v235_v48 = vpop.xlane.xlu1 %234  ;;  %v231_v49 = vpop.xlane.xlu0 %230 }
  0xa1   : > { %v271_v50 = vadd.f32 %v367_v47, %v235_v48  ;;  %v269_v51 = vadd.f32 %v367_v47, %v231_v49 }
  0xa3   : > { %288 = vst.msk [vmem:[%s479_s25 + $0x10] sm:$0xff] %vm285_vm0, %v271_v50  ;;  %286 = vst.msk [vmem:[%s479_s25] sm:$0xff] %vm285_vm0, %v269_v51 }
  0xa4   : > { %v237_v52 = vpop.xlane.xlu1 %236  ;;  %v233_v53 = vpop.xlane.xlu0 %232 }
  0xa5   : > { %v272_v54 = vadd.f32 %v367_v47, %v237_v52  ;;  %v270_v55 = vadd.f32 %v367_v47, %v233_v53 }
  0xa7   : > { %289 = vst.msk [vmem:[%s479_s25 + $0x18] sm:$0xff] %vm285_vm0, %v272_v54  ;;  %287 = vst.msk [vmem:[%s479_s25 + $0x8] sm:$0xff] %vm285_vm0, %v270_v55 }
  0xa8   : > { %v241_v56 = vpop.xlane.xlu1 %240  ;;  %v239_v57 = vpop.xlane.xlu0 %238 }
  0xa9   : > { %v274_v58 = vadd.f32 %v367_v47, %v241_v56  ;;  %v273_v59 = vadd.f32 %v367_v47, %v239_v57 }
  0xab   : > { %291 = vst.msk [vmem:[%s479_s25 + $0x28] sm:$0xff] %vm285_vm0, %v274_v58  ;;  %290 = vst.msk [vmem:[%s479_s25 + $0x20] sm:$0xff] %vm285_vm0, %v273_v59 }
  0xac   : > { %v245_v60 = vpop.xlane.xlu1 %244  ;;  %v243_v61 = vpop.xlane.xlu0 %242 }
  0xad   : > { %v276_v62 = vadd.f32 %v367_v47, %v245_v60  ;;  %v275_v63 = vadd.f32 %v367_v47, %v243_v61 }
  0xaf   : > { %293 = vst.msk [vmem:[%s479_s25 + $0x38] sm:$0xff] %vm285_vm0, %v276_v62  ;;  %292 = vst.msk [vmem:[%s479_s25 + $0x30] sm:$0xff] %vm285_vm0, %v275_v63 }
  0xb0   : > { %v249_v0 = vpop.xlane.xlu1 %248  ;;  %v247_v1 = vpop.xlane.xlu0 %246 }
  0xb1   : > { %v278_v2 = vadd.f32 %v367_v47, %v249_v0  ;;  %v277_v3 = vadd.f32 %v367_v47, %v247_v1 }
  0xb3   : > { %295 = vst.msk [vmem:[%s479_s25 + $0x48] sm:$0xff] %vm285_vm0, %v278_v2  ;;  %294 = vst.msk [vmem:[%s479_s25 + $0x40] sm:$0xff] %vm285_vm0, %v277_v3 }
  0xb4   : > { %v253_v4 = vpop.xlane.xlu1 %252  ;;  %v251_v5 = vpop.xlane.xlu0 %250 }
  0xb5   : > { %v280_v6 = vadd.f32 %v367_v47, %v253_v4  ;;  %v279_v7 = vadd.f32 %v367_v47, %v251_v5 }
  0xb7   : > { %297 = vst.msk [vmem:[%s479_s25 + $0x58] sm:$0xff] %vm285_vm0, %v280_v6  ;;  %296 = vst.msk [vmem:[%s479_s25 + $0x50] sm:$0xff] %vm285_vm0, %v279_v7 }
  0xb8   : > { %v257_v8 = vpop.xlane.xlu1 %256  ;;  %v255_v9 = vpop.xlane.xlu0 %254 }
  0xb9   : > { %v282_v10 = vadd.f32 %v367_v47, %v257_v8  ;;  %v281_v11 = vadd.f32 %v367_v47, %v255_v9 }
  0xbb   : > { %299 = vst.msk [vmem:[%s479_s25 + $0x68] sm:$0xff] %vm285_vm0, %v282_v10  ;;  %298 = vst.msk [vmem:[%s479_s25 + $0x60] sm:$0xff] %vm285_vm0, %v281_v11 }
  0xbc   : > { %v261_v12 = vpop.xlane.xlu1 %260  ;;  %v259_v13 = vpop.xlane.xlu0 %258 }
  0xbd   : > { %v284_v14 = vadd.f32 %v367_v47, %v261_v12  ;;  %v283_v15 = vadd.f32 %v367_v47, %v259_v13 }
  0xbf   : > { %301 = vst.msk [vmem:[%s479_s25 + $0x78] sm:$0xff] %vm285_vm0, %v284_v14  ;;  %300 = vst.msk [vmem:[%s479_s25 + $0x70] sm:$0xff] %vm285_vm0, %v283_v15 }
  0xc0 PF: > { %s15_s14 = sadd.s32 1, %s423_s14  }
  0xc1   : > { %p12_p4 = scmp.ge.s32.totalorder %s15_s14, 4  }
  0xc3   :  { %14 = sbr.rel (!%p12_p4) target bundleno = 3 (0x3), region = 62 }

</bundles_post_ra>
